<compile_context>
chip_gen: v6e
topology: v6e:2x2x1
jax: 0.10.0
libtpu: 0.0.40
codegen_flags: <defaults>
</compile_context>

<pallas_src>
import jax
import jax.numpy as jnp
from jax.experimental import pallas as pl
from jax.experimental.pallas import tpu as pltpu

LANES = 128  # TPU lane width; channel dims are padded to this.


def _round_up(x, m):
    return ((x + m - 1) // m) * m


def _normalize_pad(p):
    if isinstance(p, int):
        return (p, p, p, p)
    l, r, t, b = p
    return (l, r, t, b)


def _conv_stack_geometry(H, W, kernels, paddings):
    geoms = []
    h, w = H, W
    for k, pad in zip(kernels, paddings):
        l, r, t, b = _normalize_pad(pad)
        Ho = h + t + b - k + 1
        Wo = w + l + r - k + 1
        col_store = _round_up(l, 8)  # 8-aligned column where the interior is stored
        geoms.append(dict(k=k, left=l, right=r, top=t, bot=b,
                          Hin=h, Win=w, Ho=Ho, Wo=Wo,
                          col_store=col_store,
                          buf_h=t + h + b,
                          buf_w=col_store + w + r))
        h, w = Ho, Wo
    return geoms


# ---------------------------------------------------------------------------
# Single fused kernel: [pad -> conv -> BN(folded) -> ReLU] x n_layers, then
# the reduction conv (kernel == stride) + end-of-block ReLU.  One image per
# grid step; all intermediate activations stay in VMEM.
# ---------------------------------------------------------------------------
def _make_block_kernel(geoms, rk, Hr, Wr):
    n_layers = len(geoms)

    def kernel(*refs):
        x_ref = refs[0]
        w_refs = [refs[1 + 2 * i] for i in range(n_layers)]
        b_refs = [refs[2 + 2 * i] for i in range(n_layers)]
        wr_ref = refs[1 + 2 * n_layers]
        br_ref = refs[2 + 2 * n_layers]
        o_ref = refs[3 + 2 * n_layers]
        scr = refs[4 + 2 * n_layers:]
        pad_bufs = list(scr[:n_layers - 1])   # padded inputs of layers 1..n-1
        yl_ref = scr[n_layers - 1]            # last conv layer's activation
        acc = scr[n_layers]                   # shared f32 accumulator

        # ---------------- conv stack ----------------
        src = x_ref   # padded input of the current layer (VMEM ref)
        col0 = 0      # column of `src` holding conceptual padded column 0
        for i, g in enumerate(geoms):
            k, Ho, Wo = g["k"], g["Ho"], g["Wo"]
            M = Ho * Wo
            first = True
            for kj in range(k):
                # One sublane-unaligned window per kj (hoisted out of the ki
                # loop); the ki row slice below is a free major-dim slice.
                x_kj = src[:, col0 + kj:col0 + kj + Wo, :]   # (Ho+k-1, Wo, 128)
                for ki in range(k):
                    lhs = (x_kj[ki:ki + Ho]
                           .reshape(M, LANES).astype(jnp.bfloat16))
                    contrib = jnp.dot(lhs, w_refs[i][ki * k + kj],
                                      preferred_element_type=jnp.float32)
                    if first:
                        acc[:M, :] = contrib
                        first = False
                    else:
                        acc[:M, :] += contrib
            # folded-BN bias + ReLU (f32)
            y = jnp.maximum(acc[:M, :] + b_refs[i][...], 0.0)

            if i + 1 < n_layers:
                ng = geoms[i + 1]
                buf = pad_bufs[i]
                t_, b_, l_, r_ = ng["top"], ng["bot"], ng["left"], ng["right"]
                cs = ng["col_store"]
                bh, bw = ng["buf_h"], ng["buf_w"]
                Hin, Win = ng["Hin"], ng["Win"]              # == Ho, Wo
                # Zero only the thin padding-margin strips (interior is fully
                # overwritten below).  Done every step -> correct on any core.
                if t_ > 0:
                    buf[0:t_, :, :] = jnp.zeros((t_, bw, LANES), buf.dtype)
                if b_ > 0:
                    buf[t_ + Hin:bh, :, :] = jnp.zeros((bh - t_ - Hin, bw, LANES),
                                                       buf.dtype)
                if l_ > 0:
                    buf[t_:t_ + Hin, cs - l_:cs, :] = jnp.zeros((Hin, l_, LANES),
                                                                buf.dtype)
                if r_ > 0:
                    buf[t_:t_ + Hin, cs + Win:bw, :] = jnp.zeros((Hin, r_, LANES),
                                                                 buf.dtype)
                # Interior store starts at an 8-aligned sublane offset.
                buf[t_:t_ + Hin, cs:cs + Win, :] = y.reshape(Ho, Wo, LANES)
                src = buf
                col0 = cs - l_
            else:
                yl_ref[...] = y.reshape(Ho, Wo, LANES)

        # ------- fused reduction conv (kernel == stride == rk, pad 0) -------
        Mr = Hr * Wr
        first = True
        for kj in range(rk):
            # Sublane-strided space-to-depth read of the VMEM-resident
            # activation (no HBM round trip / XLA transpose / extra launch).
            cols = yl_ref[:, pl.ds(kj, Wr, stride=rk), :]    # (Hr*rk, Wr, 128)
            cols = cols.reshape(Hr, rk, Wr, LANES)           # major-dim split only
            for ki in range(rk):
                lhs = cols[:, ki].reshape(Mr, LANES).astype(jnp.bfloat16)
                contrib = jnp.dot(lhs, wr_ref[ki * rk + kj],
                                  preferred_element_type=jnp.float32)
                if first:
                    acc[:Mr, :] = contrib
                    first = False
                else:
                    acc[:Mr, :] += contrib
        # reduce-conv bias + end-of-block ReLU
        o_ref[...] = jnp.maximum(acc[:Mr, :] + br_ref[...], 0.0).reshape(Hr, Wr, LANES)

    return kernel


def conv_block_pallas(x_padded, ws, bs, wr, br, geoms, rk):
    """x_padded: (N, Hp0, Wp0, 128) bf16, spatially padded for layer 0."""
    N, Hp0, Wp0, _ = x_padded.shape
    n_layers = len(geoms)
    HoL, WoL = geoms[-1]["Ho"], geoms[-1]["Wo"]
    Hr, Wr = HoL // rk, WoL // rk
    max_m = max([g["Ho"] * g["Wo"] for g in geoms] + [Hr * Wr])

    in_specs = [pl.BlockSpec((None, Hp0, Wp0, LANES), lambda n: (n, 0, 0, 0))]
    args = [x_padded]
    for i in range(n_layers):
        kk = geoms[i]["k"] ** 2
        # grid-invariant blocks: copied to VMEM once, reused for every image
        in_specs.append(pl.BlockSpec((kk, LANES, LANES), lambda n: (0, 0, 0)))
        in_specs.append(pl.BlockSpec((1, LANES), lambda n: (0, 0)))
        args += [ws[i], bs[i]]
    in_specs.append(pl.BlockSpec((rk * rk, LANES, LANES), lambda n: (0, 0, 0)))
    in_specs.append(pl.BlockSpec((1, LANES), lambda n: (0, 0)))
    args += [wr, br]

    scratch = [pltpu.VMEM((geoms[i]["buf_h"], geoms[i]["buf_w"], LANES), jnp.float32)
               for i in range(1, n_layers)]
    scratch.append(pltpu.VMEM((HoL, WoL, LANES), jnp.float32))   # last conv act
    scratch.append(pltpu.VMEM((max_m, LANES), jnp.float32))      # accumulator

    # Explicit VMEM budget: double-buffered in/out blocks + single scratches.
    fp = 2 * Hp0 * Wp0 * LANES * 2                                       # bf16 input
    fp += 2 * sum(geoms[i]["k"] ** 2 * LANES * LANES * 2 for i in range(n_layers))
    fp += 2 * rk * rk * LANES * LANES * 2                                # reduce w
    fp += 2 * (n_layers + 1) * LANES * 4                                 # biases
    fp += 2 * Hr * Wr * LANES * 4                                        # f32 output
    fp += sum(geoms[i]["buf_h"] * geoms[i]["buf_w"] * LANES * 4
              for i in range(1, n_layers))
    fp += (HoL * WoL + max_m) * LANES * 4
    vmem_limit = int(min(max(2 * fp, 16 * 2 ** 20), 64 * 2 ** 20))
    # TODO(synk): for large images add an H-row tile grid axis with a (k-1)-row
    # halo instead of whole-image blocks (required to fit v7x's 64 MiB VMEM).

    return pl.pallas_call(
        _make_block_kernel(geoms, rk, Hr, Wr),
        out_shape=jax.ShapeDtypeStruct((N, Hr, Wr, LANES), jnp.float32),
        grid_spec=pltpu.PrefetchScalarGridSpec(
            num_scalar_prefetch=0,
            grid=(N,),
            in_specs=in_specs,
            out_specs=pl.BlockSpec((None, Hr, Wr, LANES), lambda n: (n, 0, 0, 0)),
            scratch_shapes=scratch,
        ),
        compiler_params=pltpu.CompilerParams(
            dimension_semantics=("parallel",),
            vmem_limit_bytes=vmem_limit,
        ),
    )(*args)


# ---------------------------------------------------------------------------
# Host-side parameter packing (eval-mode BN fold, 128-lane pad, tap layout).
# ---------------------------------------------------------------------------
def _fold_conv_bn(weight, conv_bias, gamma, beta, mean, var, eps=1e-5):
    # Eval-mode BatchNorm (running statistics), matching nn.BatchNorm2d.eval().
    scale = gamma / jnp.sqrt(var + eps)
    w = weight * scale[:, None, None, None]
    b = (conv_bias - mean) * scale + beta
    return w, b


def _pack_conv_weight(w, dtype=jnp.bfloat16):
    """(Cout, Cin, kh, kw) -> (kh*kw, 128, 128) bf16, zero-padded, tap-major."""
    Cout, Cin, kh, kw = w.shape
    wp = jnp.zeros((LANES, LANES, kh, kw), jnp.float32).at[:Cout, :Cin].set(w)
    return wp.transpose(2, 3, 1, 0).reshape(kh * kw, LANES, LANES).astype(dtype)


def _pack_bias(b):
    return jnp.zeros((1, LANES), jnp.float32).at[0, :b.shape[0]].set(b)


# ---------------------------------------------------------------------------
# ConvBaseBlock forward (activation='relu', reduction_strat='conv').
# ---------------------------------------------------------------------------
# TODO(synk): 'hardswish' activation, 'max_pool'/'avg_pool' reduction, layer
# stride > 1, reduction_kernel != reduction_stride, and training-mode BN are
# supported by the PyTorch module but not wired here (defaults only).
def conv_base_block_forward(x, params, config):
    assert config["activation"] == "relu"
    assert config["reduction_strat"] == "conv"
    assert all(s == 1 for s in config["stride"])

    N, C, H, W = x.shape
    n_layers = config["n_layers"]
    geoms = _conv_stack_geometry(H, W, config["kernel_size"], config["padding"])
    g0 = geoms[0]

    # NCHW -> NHWC in bf16 (halves HBM/DMA), spatial pad for layer 0,
    # channel pad to 128 lanes.
    xh = jnp.transpose(x, (0, 2, 3, 1)).astype(jnp.bfloat16)
    xh = jnp.pad(xh, ((0, 0), (g0["top"], g0["bot"]), (g0["left"], g0["right"]),
                      (0, LANES - C)))

    ws, bs = [], []
    for i in range(n_layers):
        p = params["layers"][i]
        wf, bf = _fold_conv_bn(p["weight"], p["bias"], p["gamma"], p["beta"],
                               p["running_mean"], p["running_var"])
        ws.append(_pack_conv_weight(wf))
        bs.append(_pack_bias(bf))

    rk, rs = config["reduction_kernel"], config["reduction_stride"]
    assert rk == rs and config.get("reduction_pad") in (0, None)
    HoL, WoL = geoms[-1]["Ho"], geoms[-1]["Wo"]
    assert HoL % rk == 0 and WoL % rk == 0

    rp = params["reduce"]
    cout_r = rp["weight"].shape[0]
    wr = _pack_conv_weight(rp["weight"])
    br = _pack_bias(rp["bias"])

    o = conv_block_pallas(xh, ws, bs, wr, br, geoms, rk)   # (N, Hr, Wr, 128) f32
    # Back to PyTorch NCHW with the real channel count.
    return jnp.transpose(o[..., :cout_r], (0, 3, 1, 2))


def init_params(key, config):
    params = {"layers": []}
    cin = config["n_input_channels"]
    for i, cout in enumerate(config["n_filters_per_layer"]):
        key, kw_, kb, kg, kbe, km, kv = jax.random.split(key, 7)
        k = config["kernel_size"][i]
        params["layers"].append({
            "weight": 0.1 * jax.random.normal(kw_, (cout, cin, k, k), jnp.float32),
            "bias": 0.1 * jax.random.normal(kb, (cout,), jnp.float32),
            "gamma": 1.0 + 0.1 * jax.random.normal(kg, (cout,), jnp.float32),
            "beta": 0.1 * jax.random.normal(kbe, (cout,), jnp.float32),
            "running_mean": 0.05 * jax.random.normal(km, (cout,), jnp.float32),
            "running_var": 1.0 + 0.1 * jax.random.uniform(kv, (cout,), jnp.float32),
        })
        cin = cout
    key, kw_, kb = jax.random.split(key, 3)
    rk = config["reduction_kernel"]
    params["reduce"] = {
        "weight": 0.1 * jax.random.normal(kw_, (cin, cin, rk, rk), jnp.float32),
        "bias": 0.1 * jax.random.normal(kb, (cin,), jnp.float32),
    }
    return params


if __name__ == "__main__":
    config = dict(
        block_num=0,
        n_input_channels=4,
        n_layers=2,
        n_filters_per_layer=[8, 16],
        kernel_size=[3, 3],
        stride=[1, 1],
        padding=[1, 1],
        activation="relu",
        reduction_strat="conv",
        reduction_kernel=2,
        reduction_stride=2,
        reduction_pad=0,
    )
    key = jax.random.PRNGKey(0)
    key, kx, kp = jax.random.split(key, 3)
    x = jax.random.normal(kx, (2, 4, 16, 16), jnp.float32)  # NCHW, like PyTorch
    params = init_params(kp, config)

    fwd = jax.jit(lambda xx, pp: conv_base_block_forward(xx, pp, config))
    out = jax.block_until_ready(fwd(x, params))
    assert out.shape == (2, 16, 8, 8), out.shape
    assert bool(jnp.all(jnp.isfinite(out)))
    print("KERNEL_OK")
</pallas_src>

<mosaic_0001>
module attributes {stable_mosaic.version = 11 : i64} {
  func.func @kernel(%arg0: i32, %arg1: memref<1x18x18x128xbf16, #tpu.memory_space<vmem>>, %arg2: memref<9x128x128xbf16, #tpu.memory_space<vmem>>, %arg3: memref<1x128xf32, #tpu.memory_space<vmem>>, %arg4: memref<9x128x128xbf16, #tpu.memory_space<vmem>>, %arg5: memref<1x128xf32, #tpu.memory_space<vmem>>, %arg6: memref<4x128x128xbf16, #tpu.memory_space<vmem>>, %arg7: memref<1x128xf32, #tpu.memory_space<vmem>>, %arg8: memref<1x8x8x128xf32, #tpu.memory_space<vmem>>, %arg9: memref<18x25x128xf32, #tpu.memory_space<vmem>>, %arg10: memref<16x16x128xf32, #tpu.memory_space<vmem>>, %arg11: memref<256x128xf32, #tpu.memory_space<vmem>>) attributes {dimension_semantics = [#tpu.dimension_semantics<parallel>], iteration_bounds = array<i64: 2>, scalar_prefetch = 0 : i64, scratch_operands = 3 : i64, tpu.core_type = #tpu.core_type<tc>, window_params = [{transform_indices = @transform_0, window_bounds = array<i64: 1, 18, 18, 128>}, {pipeline_mode = #tpu.pipeline_mode<synchronous>, transform_indices = @transform_1, window_bounds = array<i64: 9, 128, 128>}, {pipeline_mode = #tpu.pipeline_mode<synchronous>, transform_indices = @transform_2, window_bounds = array<i64: 1, 128>}, {pipeline_mode = #tpu.pipeline_mode<synchronous>, transform_indices = @transform_3, window_bounds = array<i64: 9, 128, 128>}, {pipeline_mode = #tpu.pipeline_mode<synchronous>, transform_indices = @transform_4, window_bounds = array<i64: 1, 128>}, {pipeline_mode = #tpu.pipeline_mode<synchronous>, transform_indices = @transform_5, window_bounds = array<i64: 4, 128, 128>}, {pipeline_mode = #tpu.pipeline_mode<synchronous>, transform_indices = @transform_6, window_bounds = array<i64: 1, 128>}, {transform_indices = @transform_7, window_bounds = array<i64: 1, 8, 8, 128>}]} {
    %c0 = arith.constant 0 : index
    %c0_0 = arith.constant 0 : index
    %c0_1 = arith.constant 0 : index
    %c0_2 = arith.constant 0 : index
    %0 = vector.load %arg1[%c0, %c0_0, %c0_1, %c0_2] : memref<1x18x18x128xbf16, #tpu.memory_space<vmem>>, vector<1x18x16x128xbf16>
    %1 = vector.shape_cast %0 : vector<1x18x16x128xbf16> to vector<18x16x128xbf16>
    %2 = vector.extract_strided_slice %1 {offsets = [0, 0, 0], sizes = [16, 16, 128], strides = [1, 1, 1]} : vector<18x16x128xbf16> to vector<16x16x128xbf16>
    %3 = vector.shape_cast %2 : vector<16x16x128xbf16> to vector<256x128xbf16>
    %c0_3 = arith.constant 0 : index
    %c0_4 = arith.constant 0 : index
    %c0_5 = arith.constant 0 : index
    %4 = vector.load %arg2[%c0_3, %c0_4, %c0_5] : memref<9x128x128xbf16, #tpu.memory_space<vmem>>, vector<1x128x128xbf16>
    %5 = vector.shape_cast %4 : vector<1x128x128xbf16> to vector<128x128xbf16>
    %cst = arith.constant dense<0.000000e+00> : vector<256x128xf32>
    %6 = tpu.matmul %3, %5, %cst {dimension_numbers = #tpu.dot_dimension_numbers<[1], [0], [0], [1], [0, 0, 1, 1], [], []>} : vector<256x128xbf16>, vector<128x128xbf16>, vector<256x128xf32> -> vector<256x128xf32>
    %c0_6 = arith.constant 0 : index
    %c0_7 = arith.constant 0 : index
    %7 = vector.load %arg11[%c0_6, %c0_7] : memref<256x128xf32, #tpu.memory_space<vmem>>, vector<256x128xf32>
    tpu.vector_store %arg11[%c0_6, %c0_7], %6 {strides = array<i32>} : memref<256x128xf32, #tpu.memory_space<vmem>>, vector<256x128xf32>,
    %8 = vector.extract_strided_slice %1 {offsets = [1, 0, 0], sizes = [16, 16, 128], strides = [1, 1, 1]} : vector<18x16x128xbf16> to vector<16x16x128xbf16>
    %9 = vector.shape_cast %8 : vector<16x16x128xbf16> to vector<256x128xbf16>
    %c3 = arith.constant 3 : index
    %c0_8 = arith.constant 0 : index
    %c0_9 = arith.constant 0 : index
    %10 = vector.load %arg2[%c3, %c0_8, %c0_9] : memref<9x128x128xbf16, #tpu.memory_space<vmem>>, vector<1x128x128xbf16>
    %11 = vector.shape_cast %10 : vector<1x128x128xbf16> to vector<128x128xbf16>
    %cst_10 = arith.constant dense<0.000000e+00> : vector<256x128xf32>
    %12 = tpu.matmul %9, %11, %cst_10 {dimension_numbers = #tpu.dot_dimension_numbers<[1], [0], [0], [1], [0, 0, 1, 1], [], []>} : vector<256x128xbf16>, vector<128x128xbf16>, vector<256x128xf32> -> vector<256x128xf32>
    %c0_11 = arith.constant 0 : index
    %c0_12 = arith.constant 0 : index
    %13 = vector.load %arg11[%c0_11, %c0_12] : memref<256x128xf32, #tpu.memory_space<vmem>>, vector<256x128xf32>
    %14 = arith.addf %13, %12 : vector<256x128xf32>
    %c0_13 = arith.constant 0 : index
    %c0_14 = arith.constant 0 : index
    %15 = vector.load %arg11[%c0_13, %c0_14] : memref<256x128xf32, #tpu.memory_space<vmem>>, vector<256x128xf32>
    tpu.vector_store %arg11[%c0_13, %c0_14], %14 {strides = array<i32>} : memref<256x128xf32, #tpu.memory_space<vmem>>, vector<256x128xf32>,
    %16 = vector.extract_strided_slice %1 {offsets = [2, 0, 0], sizes = [16, 16, 128], strides = [1, 1, 1]} : vector<18x16x128xbf16> to vector<16x16x128xbf16>
    %17 = vector.shape_cast %16 : vector<16x16x128xbf16> to vector<256x128xbf16>
    %c6 = arith.constant 6 : index
    %c0_15 = arith.constant 0 : index
    %c0_16 = arith.constant 0 : index
    %18 = vector.load %arg2[%c6, %c0_15, %c0_16] : memref<9x128x128xbf16, #tpu.memory_space<vmem>>, vector<1x128x128xbf16>
    %19 = vector.shape_cast %18 : vector<1x128x128xbf16> to vector<128x128xbf16>
    %cst_17 = arith.constant dense<0.000000e+00> : vector<256x128xf32>
    %20 = tpu.matmul %17, %19, %cst_17 {dimension_numbers = #tpu.dot_dimension_numbers<[1], [0], [0], [1], [0, 0, 1, 1], [], []>} : vector<256x128xbf16>, vector<128x128xbf16>, vector<256x128xf32> -> vector<256x128xf32>
    %c0_18 = arith.constant 0 : index
    %c0_19 = arith.constant 0 : index
    %21 = vector.load %arg11[%c0_18, %c0_19] : memref<256x128xf32, #tpu.memory_space<vmem>>, vector<256x128xf32>
    %22 = arith.addf %21, %20 : vector<256x128xf32>
    %c0_20 = arith.constant 0 : index
    %c0_21 = arith.constant 0 : index
    %23 = vector.load %arg11[%c0_20, %c0_21] : memref<256x128xf32, #tpu.memory_space<vmem>>, vector<256x128xf32>
    tpu.vector_store %arg11[%c0_20, %c0_21], %22 {strides = array<i32>} : memref<256x128xf32, #tpu.memory_space<vmem>>, vector<256x128xf32>,
    %c0_22 = arith.constant 0 : index
    %c0_23 = arith.constant 0 : index
    %c1 = arith.constant 1 : index
    %c0_24 = arith.constant 0 : index
    %24 = vector.load %arg1[%c0_22, %c0_23, %c1, %c0_24] : memref<1x18x18x128xbf16, #tpu.memory_space<vmem>>, vector<1x18x16x128xbf16>
    %25 = vector.shape_cast %24 : vector<1x18x16x128xbf16> to vector<18x16x128xbf16>
    %26 = vector.extract_strided_slice %25 {offsets = [0, 0, 0], sizes = [16, 16, 128], strides = [1, 1, 1]} : vector<18x16x128xbf16> to vector<16x16x128xbf16>
    %27 = vector.shape_cast %26 : vector<16x16x128xbf16> to vector<256x128xbf16>
    %c1_25 = arith.constant 1 : index
    %c0_26 = arith.constant 0 : index
    %c0_27 = arith.constant 0 : index
    %28 = vector.load %arg2[%c1_25, %c0_26, %c0_27] : memref<9x128x128xbf16, #tpu.memory_space<vmem>>, vector<1x128x128xbf16>
    %29 = vector.shape_cast %28 : vector<1x128x128xbf16> to vector<128x128xbf16>
    %cst_28 = arith.constant dense<0.000000e+00> : vector<256x128xf32>
    %30 = tpu.matmul %27, %29, %cst_28 {dimension_numbers = #tpu.dot_dimension_numbers<[1], [0], [0], [1], [0, 0, 1, 1], [], []>} : vector<256x128xbf16>, vector<128x128xbf16>, vector<256x128xf32> -> vector<256x128xf32>
    %c0_29 = arith.constant 0 : index
    %c0_30 = arith.constant 0 : index
    %31 = vector.load %arg11[%c0_29, %c0_30] : memref<256x128xf32, #tpu.memory_space<vmem>>, vector<256x128xf32>
    %32 = arith.addf %31, %30 : vector<256x128xf32>
    %c0_31 = arith.constant 0 : index
    %c0_32 = arith.constant 0 : index
    %33 = vector.load %arg11[%c0_31, %c0_32] : memref<256x128xf32, #tpu.memory_space<vmem>>, vector<256x128xf32>
    tpu.vector_store %arg11[%c0_31, %c0_32], %32 {strides = array<i32>} : memref<256x128xf32, #tpu.memory_space<vmem>>, vector<256x128xf32>,
    %34 = vector.extract_strided_slice %25 {offsets = [1, 0, 0], sizes = [16, 16, 128], strides = [1, 1, 1]} : vector<18x16x128xbf16> to vector<16x16x128xbf16>
    %35 = vector.shape_cast %34 : vector<16x16x128xbf16> to vector<256x128xbf16>
    %c4 = arith.constant 4 : index
    %c0_33 = arith.constant 0 : index
    %c0_34 = arith.constant 0 : index
    %36 = vector.load %arg2[%c4, %c0_33, %c0_34] : memref<9x128x128xbf16, #tpu.memory_space<vmem>>, vector<1x128x128xbf16>
    %37 = vector.shape_cast %36 : vector<1x128x128xbf16> to vector<128x128xbf16>
    %cst_35 = arith.constant dense<0.000000e+00> : vector<256x128xf32>
    %38 = tpu.matmul %35, %37, %cst_35 {dimension_numbers = #tpu.dot_dimension_numbers<[1], [0], [0], [1], [0, 0, 1, 1], [], []>} : vector<256x128xbf16>, vector<128x128xbf16>, vector<256x128xf32> -> vector<256x128xf32>
    %c0_36 = arith.constant 0 : index
    %c0_37 = arith.constant 0 : index
    %39 = vector.load %arg11[%c0_36, %c0_37] : memref<256x128xf32, #tpu.memory_space<vmem>>, vector<256x128xf32>
    %40 = arith.addf %39, %38 : vector<256x128xf32>
    %c0_38 = arith.constant 0 : index
    %c0_39 = arith.constant 0 : index
    %41 = vector.load %arg11[%c0_38, %c0_39] : memref<256x128xf32, #tpu.memory_space<vmem>>, vector<256x128xf32>
    tpu.vector_store %arg11[%c0_38, %c0_39], %40 {strides = array<i32>} : memref<256x128xf32, #tpu.memory_space<vmem>>, vector<256x128xf32>,
    %42 = vector.extract_strided_slice %25 {offsets = [2, 0, 0], sizes = [16, 16, 128], strides = [1, 1, 1]} : vector<18x16x128xbf16> to vector<16x16x128xbf16>
    %43 = vector.shape_cast %42 : vector<16x16x128xbf16> to vector<256x128xbf16>
    %c7 = arith.constant 7 : index
    %c0_40 = arith.constant 0 : index
    %c0_41 = arith.constant 0 : index
    %44 = vector.load %arg2[%c7, %c0_40, %c0_41] : memref<9x128x128xbf16, #tpu.memory_space<vmem>>, vector<1x128x128xbf16>
    %45 = vector.shape_cast %44 : vector<1x128x128xbf16> to vector<128x128xbf16>
    %cst_42 = arith.constant dense<0.000000e+00> : vector<256x128xf32>
    %46 = tpu.matmul %43, %45, %cst_42 {dimension_numbers = #tpu.dot_dimension_numbers<[1], [0], [0], [1], [0, 0, 1, 1], [], []>} : vector<256x128xbf16>, vector<128x128xbf16>, vector<256x128xf32> -> vector<256x128xf32>
    %c0_43 = arith.constant 0 : index
    %c0_44 = arith.constant 0 : index
    %47 = vector.load %arg11[%c0_43, %c0_44] : memref<256x128xf32, #tpu.memory_space<vmem>>, vector<256x128xf32>
    %48 = arith.addf %47, %46 : vector<256x128xf32>
    %c0_45 = arith.constant 0 : index
    %c0_46 = arith.constant 0 : index
    %49 = vector.load %arg11[%c0_45, %c0_46] : memref<256x128xf32, #tpu.memory_space<vmem>>, vector<256x128xf32>
    tpu.vector_store %arg11[%c0_45, %c0_46], %48 {strides = array<i32>} : memref<256x128xf32, #tpu.memory_space<vmem>>, vector<256x128xf32>,
    %c0_47 = arith.constant 0 : index
    %c0_48 = arith.constant 0 : index
    %c2 = arith.constant 2 : index
    %c0_49 = arith.constant 0 : index
    %50 = vector.load %arg1[%c0_47, %c0_48, %c2, %c0_49] : memref<1x18x18x128xbf16, #tpu.memory_space<vmem>>, vector<1x18x16x128xbf16>
    %51 = vector.shape_cast %50 : vector<1x18x16x128xbf16> to vector<18x16x128xbf16>
    %52 = vector.extract_strided_slice %51 {offsets = [0, 0, 0], sizes = [16, 16, 128], strides = [1, 1, 1]} : vector<18x16x128xbf16> to vector<16x16x128xbf16>
    %53 = vector.shape_cast %52 : vector<16x16x128xbf16> to vector<256x128xbf16>
    %c2_50 = arith.constant 2 : index
    %c0_51 = arith.constant 0 : index
    %c0_52 = arith.constant 0 : index
    %54 = vector.load %arg2[%c2_50, %c0_51, %c0_52] : memref<9x128x128xbf16, #tpu.memory_space<vmem>>, vector<1x128x128xbf16>
    %55 = vector.shape_cast %54 : vector<1x128x128xbf16> to vector<128x128xbf16>
    %cst_53 = arith.constant dense<0.000000e+00> : vector<256x128xf32>
    %56 = tpu.matmul %53, %55, %cst_53 {dimension_numbers = #tpu.dot_dimension_numbers<[1], [0], [0], [1], [0, 0, 1, 1], [], []>} : vector<256x128xbf16>, vector<128x128xbf16>, vector<256x128xf32> -> vector<256x128xf32>
    %c0_54 = arith.constant 0 : index
    %c0_55 = arith.constant 0 : index
    %57 = vector.load %arg11[%c0_54, %c0_55] : memref<256x128xf32, #tpu.memory_space<vmem>>, vector<256x128xf32>
    %58 = arith.addf %57, %56 : vector<256x128xf32>
    %c0_56 = arith.constant 0 : index
    %c0_57 = arith.constant 0 : index
    %59 = vector.load %arg11[%c0_56, %c0_57] : memref<256x128xf32, #tpu.memory_space<vmem>>, vector<256x128xf32>
    tpu.vector_store %arg11[%c0_56, %c0_57], %58 {strides = array<i32>} : memref<256x128xf32, #tpu.memory_space<vmem>>, vector<256x128xf32>,
    %60 = vector.extract_strided_slice %51 {offsets = [1, 0, 0], sizes = [16, 16, 128], strides = [1, 1, 1]} : vector<18x16x128xbf16> to vector<16x16x128xbf16>
    %61 = vector.shape_cast %60 : vector<16x16x128xbf16> to vector<256x128xbf16>
    %c5 = arith.constant 5 : index
    %c0_58 = arith.constant 0 : index
    %c0_59 = arith.constant 0 : index
    %62 = vector.load %arg2[%c5, %c0_58, %c0_59] : memref<9x128x128xbf16, #tpu.memory_space<vmem>>, vector<1x128x128xbf16>
    %63 = vector.shape_cast %62 : vector<1x128x128xbf16> to vector<128x128xbf16>
    %cst_60 = arith.constant dense<0.000000e+00> : vector<256x128xf32>
    %64 = tpu.matmul %61, %63, %cst_60 {dimension_numbers = #tpu.dot_dimension_numbers<[1], [0], [0], [1], [0, 0, 1, 1], [], []>} : vector<256x128xbf16>, vector<128x128xbf16>, vector<256x128xf32> -> vector<256x128xf32>
    %c0_61 = arith.constant 0 : index
    %c0_62 = arith.constant 0 : index
    %65 = vector.load %arg11[%c0_61, %c0_62] : memref<256x128xf32, #tpu.memory_space<vmem>>, vector<256x128xf32>
    %66 = arith.addf %65, %64 : vector<256x128xf32>
    %c0_63 = arith.constant 0 : index
    %c0_64 = arith.constant 0 : index
    %67 = vector.load %arg11[%c0_63, %c0_64] : memref<256x128xf32, #tpu.memory_space<vmem>>, vector<256x128xf32>
    tpu.vector_store %arg11[%c0_63, %c0_64], %66 {strides = array<i32>} : memref<256x128xf32, #tpu.memory_space<vmem>>, vector<256x128xf32>,
    %68 = vector.extract_strided_slice %51 {offsets = [2, 0, 0], sizes = [16, 16, 128], strides = [1, 1, 1]} : vector<18x16x128xbf16> to vector<16x16x128xbf16>
    %69 = vector.shape_cast %68 : vector<16x16x128xbf16> to vector<256x128xbf16>
    %c8 = arith.constant 8 : index
    %c0_65 = arith.constant 0 : index
    %c0_66 = arith.constant 0 : index
    %70 = vector.load %arg2[%c8, %c0_65, %c0_66] : memref<9x128x128xbf16, #tpu.memory_space<vmem>>, vector<1x128x128xbf16>
    %71 = vector.shape_cast %70 : vector<1x128x128xbf16> to vector<128x128xbf16>
    %cst_67 = arith.constant dense<0.000000e+00> : vector<256x128xf32>
    %72 = tpu.matmul %69, %71, %cst_67 {dimension_numbers = #tpu.dot_dimension_numbers<[1], [0], [0], [1], [0, 0, 1, 1], [], []>} : vector<256x128xbf16>, vector<128x128xbf16>, vector<256x128xf32> -> vector<256x128xf32>
    %c0_68 = arith.constant 0 : index
    %c0_69 = arith.constant 0 : index
    %73 = vector.load %arg11[%c0_68, %c0_69] : memref<256x128xf32, #tpu.memory_space<vmem>>, vector<256x128xf32>
    %74 = arith.addf %73, %72 : vector<256x128xf32>
    %c0_70 = arith.constant 0 : index
    %c0_71 = arith.constant 0 : index
    %75 = vector.load %arg11[%c0_70, %c0_71] : memref<256x128xf32, #tpu.memory_space<vmem>>, vector<256x128xf32>
    tpu.vector_store %arg11[%c0_70, %c0_71], %74 {strides = array<i32>} : memref<256x128xf32, #tpu.memory_space<vmem>>, vector<256x128xf32>,
    %c0_72 = arith.constant 0 : index
    %c0_73 = arith.constant 0 : index
    %76 = vector.load %arg11[%c0_72, %c0_73] : memref<256x128xf32, #tpu.memory_space<vmem>>, vector<256x128xf32>
    %c0_74 = arith.constant 0 : index
    %c0_75 = arith.constant 0 : index
    %77 = vector.load %arg3[%c0_74, %c0_75] : memref<1x128xf32, #tpu.memory_space<vmem>>, vector<1x128xf32>
    %78 = vector.broadcast %77 : vector<1x128xf32> to vector<256x128xf32>
    %79 = arith.addf %76, %78 : vector<256x128xf32>
    %cst_76 = arith.constant 0.000000e+00 : f32
    %80 = vector.broadcast %cst_76 : f32 to vector<256x128xf32>
    %81 = arith.maximumf %79, %80 : vector<256x128xf32>
    %cst_77 = arith.constant 0.000000e+00 : f32
    %82 = vector.broadcast %cst_77 : f32 to vector<1x25x128xf32>
    %c0_78 = arith.constant 0 : index
    %c0_79 = arith.constant 0 : index
    %c0_80 = arith.constant 0 : index
    %83 = vector.load %arg9[%c0_78, %c0_79, %c0_80] : memref<18x25x128xf32, #tpu.memory_space<vmem>>, vector<1x25x128xf32>
    tpu.vector_store %arg9[%c0_78, %c0_79, %c0_80], %82 {strides = array<i32>} : memref<18x25x128xf32, #tpu.memory_space<vmem>>, vector<1x25x128xf32>,
    %cst_81 = arith.constant 0.000000e+00 : f32
    %84 = vector.broadcast %cst_81 : f32 to vector<1x25x128xf32>
    %c17 = arith.constant 17 : index
    %c0_82 = arith.constant 0 : index
    %c0_83 = arith.constant 0 : index
    %85 = vector.load %arg9[%c17, %c0_82, %c0_83] : memref<18x25x128xf32, #tpu.memory_space<vmem>>, vector<1x25x128xf32>
    tpu.vector_store %arg9[%c17, %c0_82, %c0_83], %84 {strides = array<i32>} : memref<18x25x128xf32, #tpu.memory_space<vmem>>, vector<1x25x128xf32>,
    %cst_84 = arith.constant 0.000000e+00 : f32
    %86 = vector.broadcast %cst_84 : f32 to vector<16x1x128xf32>
    %c1_85 = arith.constant 1 : index
    %c7_86 = arith.constant 7 : index
    %c0_87 = arith.constant 0 : index
    %87 = vector.load %arg9[%c1_85, %c7_86, %c0_87] : memref<18x25x128xf32, #tpu.memory_space<vmem>>, vector<16x1x128xf32>
    tpu.vector_store %arg9[%c1_85, %c7_86, %c0_87], %86 {strides = array<i32>} : memref<18x25x128xf32, #tpu.memory_space<vmem>>, vector<16x1x128xf32>,
    %cst_88 = arith.constant 0.000000e+00 : f32
    %88 = vector.broadcast %cst_88 : f32 to vector<16x1x128xf32>
    %c1_89 = arith.constant 1 : index
    %c24 = arith.constant 24 : index
    %c0_90 = arith.constant 0 : index
    %89 = vector.load %arg9[%c1_89, %c24, %c0_90] : memref<18x25x128xf32, #tpu.memory_space<vmem>>, vector<16x1x128xf32>
    tpu.vector_store %arg9[%c1_89, %c24, %c0_90], %88 {strides = array<i32>} : memref<18x25x128xf32, #tpu.memory_space<vmem>>, vector<16x1x128xf32>,
    %90 = vector.shape_cast %81 : vector<256x128xf32> to vector<16x16x128xf32>
    %c1_91 = arith.constant 1 : index
    %c8_92 = arith.constant 8 : index
    %c0_93 = arith.constant 0 : index
    %91 = vector.load %arg9[%c1_91, %c8_92, %c0_93] : memref<18x25x128xf32, #tpu.memory_space<vmem>>, vector<16x16x128xf32>
    tpu.vector_store %arg9[%c1_91, %c8_92, %c0_93], %90 {strides = array<i32>} : memref<18x25x128xf32, #tpu.memory_space<vmem>>, vector<16x16x128xf32>,
    %c0_94 = arith.constant 0 : index
    %c7_95 = arith.constant 7 : index
    %c0_96 = arith.constant 0 : index
    %92 = vector.load %arg9[%c0_94, %c7_95, %c0_96] : memref<18x25x128xf32, #tpu.memory_space<vmem>>, vector<18x16x128xf32>
    %93 = vector.extract_strided_slice %92 {offsets = [0, 0, 0], sizes = [16, 16, 128], strides = [1, 1, 1]} : vector<18x16x128xf32> to vector<16x16x128xf32>
    %94 = vector.shape_cast %93 : vector<16x16x128xf32> to vector<256x128xf32>
    %95 = arith.truncf %94 : vector<256x128xf32> to vector<256x128xbf16>
    %c0_97 = arith.constant 0 : index
    %c0_98 = arith.constant 0 : index
    %c0_99 = arith.constant 0 : index
    %96 = vector.load %arg4[%c0_97, %c0_98, %c0_99] : memref<9x128x128xbf16, #tpu.memory_space<vmem>>, vector<1x128x128xbf16>
    %97 = vector.shape_cast %96 : vector<1x128x128xbf16> to vector<128x128xbf16>
    %cst_100 = arith.constant dense<0.000000e+00> : vector<256x128xf32>
    %98 = tpu.matmul %95, %97, %cst_100 {dimension_numbers = #tpu.dot_dimension_numbers<[1], [0], [0], [1], [0, 0, 1, 1], [], []>} : vector<256x128xbf16>, vector<128x128xbf16>, vector<256x128xf32> -> vector<256x128xf32>
    %c0_101 = arith.constant 0 : index
    %c0_102 = arith.constant 0 : index
    %99 = vector.load %arg11[%c0_101, %c0_102] : memref<256x128xf32, #tpu.memory_space<vmem>>, vector<256x128xf32>
    tpu.vector_store %arg11[%c0_101, %c0_102], %98 {strides = array<i32>} : memref<256x128xf32, #tpu.memory_space<vmem>>, vector<256x128xf32>,
    %100 = vector.extract_strided_slice %92 {offsets = [1, 0, 0], sizes = [16, 16, 128], strides = [1, 1, 1]} : vector<18x16x128xf32> to vector<16x16x128xf32>
    %101 = vector.shape_cast %100 : vector<16x16x128xf32> to vector<256x128xf32>
    %102 = arith.truncf %101 : vector<256x128xf32> to vector<256x128xbf16>
    %c3_103 = arith.constant 3 : index
    %c0_104 = arith.constant 0 : index
    %c0_105 = arith.constant 0 : index
    %103 = vector.load %arg4[%c3_103, %c0_104, %c0_105] : memref<9x128x128xbf16, #tpu.memory_space<vmem>>, vector<1x128x128xbf16>
    %104 = vector.shape_cast %103 : vector<1x128x128xbf16> to vector<128x128xbf16>
    %cst_106 = arith.constant dense<0.000000e+00> : vector<256x128xf32>
    %105 = tpu.matmul %102, %104, %cst_106 {dimension_numbers = #tpu.dot_dimension_numbers<[1], [0], [0], [1], [0, 0, 1, 1], [], []>} : vector<256x128xbf16>, vector<128x128xbf16>, vector<256x128xf32> -> vector<256x128xf32>
    %c0_107 = arith.constant 0 : index
    %c0_108 = arith.constant 0 : index
    %106 = vector.load %arg11[%c0_107, %c0_108] : memref<256x128xf32, #tpu.memory_space<vmem>>, vector<256x128xf32>
    %107 = arith.addf %106, %105 : vector<256x128xf32>
    %c0_109 = arith.constant 0 : index
    %c0_110 = arith.constant 0 : index
    %108 = vector.load %arg11[%c0_109, %c0_110] : memref<256x128xf32, #tpu.memory_space<vmem>>, vector<256x128xf32>
    tpu.vector_store %arg11[%c0_109, %c0_110], %107 {strides = array<i32>} : memref<256x128xf32, #tpu.memory_space<vmem>>, vector<256x128xf32>,
    %109 = vector.extract_strided_slice %92 {offsets = [2, 0, 0], sizes = [16, 16, 128], strides = [1, 1, 1]} : vector<18x16x128xf32> to vector<16x16x128xf32>
    %110 = vector.shape_cast %109 : vector<16x16x128xf32> to vector<256x128xf32>
    %111 = arith.truncf %110 : vector<256x128xf32> to vector<256x128xbf16>
    %c6_111 = arith.constant 6 : index
    %c0_112 = arith.constant 0 : index
    %c0_113 = arith.constant 0 : index
    %112 = vector.load %arg4[%c6_111, %c0_112, %c0_113] : memref<9x128x128xbf16, #tpu.memory_space<vmem>>, vector<1x128x128xbf16>
    %113 = vector.shape_cast %112 : vector<1x128x128xbf16> to vector<128x128xbf16>
    %cst_114 = arith.constant dense<0.000000e+00> : vector<256x128xf32>
    %114 = tpu.matmul %111, %113, %cst_114 {dimension_numbers = #tpu.dot_dimension_numbers<[1], [0], [0], [1], [0, 0, 1, 1], [], []>} : vector<256x128xbf16>, vector<128x128xbf16>, vector<256x128xf32> -> vector<256x128xf32>
    %c0_115 = arith.constant 0 : index
    %c0_116 = arith.constant 0 : index
    %115 = vector.load %arg11[%c0_115, %c0_116] : memref<256x128xf32, #tpu.memory_space<vmem>>, vector<256x128xf32>
    %116 = arith.addf %115, %114 : vector<256x128xf32>
    %c0_117 = arith.constant 0 : index
    %c0_118 = arith.constant 0 : index
    %117 = vector.load %arg11[%c0_117, %c0_118] : memref<256x128xf32, #tpu.memory_space<vmem>>, vector<256x128xf32>
    tpu.vector_store %arg11[%c0_117, %c0_118], %116 {strides = array<i32>} : memref<256x128xf32, #tpu.memory_space<vmem>>, vector<256x128xf32>,
    %c0_119 = arith.constant 0 : index
    %c8_120 = arith.constant 8 : index
    %c0_121 = arith.constant 0 : index
    %118 = vector.load %arg9[%c0_119, %c8_120, %c0_121] : memref<18x25x128xf32, #tpu.memory_space<vmem>>, vector<18x16x128xf32>
    %119 = vector.extract_strided_slice %118 {offsets = [0, 0, 0], sizes = [16, 16, 128], strides = [1, 1, 1]} : vector<18x16x128xf32> to vector<16x16x128xf32>
    %120 = vector.shape_cast %119 : vector<16x16x128xf32> to vector<256x128xf32>
    %121 = arith.truncf %120 : vector<256x128xf32> to vector<256x128xbf16>
    %c1_122 = arith.constant 1 : index
    %c0_123 = arith.constant 0 : index
    %c0_124 = arith.constant 0 : index
    %122 = vector.load %arg4[%c1_122, %c0_123, %c0_124] : memref<9x128x128xbf16, #tpu.memory_space<vmem>>, vector<1x128x128xbf16>
    %123 = vector.shape_cast %122 : vector<1x128x128xbf16> to vector<128x128xbf16>
    %cst_125 = arith.constant dense<0.000000e+00> : vector<256x128xf32>
    %124 = tpu.matmul %121, %123, %cst_125 {dimension_numbers = #tpu.dot_dimension_numbers<[1], [0], [0], [1], [0, 0, 1, 1], [], []>} : vector<256x128xbf16>, vector<128x128xbf16>, vector<256x128xf32> -> vector<256x128xf32>
    %c0_126 = arith.constant 0 : index
    %c0_127 = arith.constant 0 : index
    %125 = vector.load %arg11[%c0_126, %c0_127] : memref<256x128xf32, #tpu.memory_space<vmem>>, vector<256x128xf32>
    %126 = arith.addf %125, %124 : vector<256x128xf32>
    %c0_128 = arith.constant 0 : index
    %c0_129 = arith.constant 0 : index
    %127 = vector.load %arg11[%c0_128, %c0_129] : memref<256x128xf32, #tpu.memory_space<vmem>>, vector<256x128xf32>
    tpu.vector_store %arg11[%c0_128, %c0_129], %126 {strides = array<i32>} : memref<256x128xf32, #tpu.memory_space<vmem>>, vector<256x128xf32>,
    %128 = vector.extract_strided_slice %118 {offsets = [1, 0, 0], sizes = [16, 16, 128], strides = [1, 1, 1]} : vector<18x16x128xf32> to vector<16x16x128xf32>
    %129 = vector.shape_cast %128 : vector<16x16x128xf32> to vector<256x128xf32>
    %130 = arith.truncf %129 : vector<256x128xf32> to vector<256x128xbf16>
    %c4_130 = arith.constant 4 : index
    %c0_131 = arith.constant 0 : index
    %c0_132 = arith.constant 0 : index
    %131 = vector.load %arg4[%c4_130, %c0_131, %c0_132] : memref<9x128x128xbf16, #tpu.memory_space<vmem>>, vector<1x128x128xbf16>
    %132 = vector.shape_cast %131 : vector<1x128x128xbf16> to vector<128x128xbf16>
    %cst_133 = arith.constant dense<0.000000e+00> : vector<256x128xf32>
    %133 = tpu.matmul %130, %132, %cst_133 {dimension_numbers = #tpu.dot_dimension_numbers<[1], [0], [0], [1], [0, 0, 1, 1], [], []>} : vector<256x128xbf16>, vector<128x128xbf16>, vector<256x128xf32> -> vector<256x128xf32>
    %c0_134 = arith.constant 0 : index
    %c0_135 = arith.constant 0 : index
    %134 = vector.load %arg11[%c0_134, %c0_135] : memref<256x128xf32, #tpu.memory_space<vmem>>, vector<256x128xf32>
    %135 = arith.addf %134, %133 : vector<256x128xf32>
    %c0_136 = arith.constant 0 : index
    %c0_137 = arith.constant 0 : index
    %136 = vector.load %arg11[%c0_136, %c0_137] : memref<256x128xf32, #tpu.memory_space<vmem>>, vector<256x128xf32>
    tpu.vector_store %arg11[%c0_136, %c0_137], %135 {strides = array<i32>} : memref<256x128xf32, #tpu.memory_space<vmem>>, vector<256x128xf32>,
    %137 = vector.extract_strided_slice %118 {offsets = [2, 0, 0], sizes = [16, 16, 128], strides = [1, 1, 1]} : vector<18x16x128xf32> to vector<16x16x128xf32>
    %138 = vector.shape_cast %137 : vector<16x16x128xf32> to vector<256x128xf32>
    %139 = arith.truncf %138 : vector<256x128xf32> to vector<256x128xbf16>
    %c7_138 = arith.constant 7 : index
    %c0_139 = arith.constant 0 : index
    %c0_140 = arith.constant 0 : index
    %140 = vector.load %arg4[%c7_138, %c0_139, %c0_140] : memref<9x128x128xbf16, #tpu.memory_space<vmem>>, vector<1x128x128xbf16>
    %141 = vector.shape_cast %140 : vector<1x128x128xbf16> to vector<128x128xbf16>
    %cst_141 = arith.constant dense<0.000000e+00> : vector<256x128xf32>
    %142 = tpu.matmul %139, %141, %cst_141 {dimension_numbers = #tpu.dot_dimension_numbers<[1], [0], [0], [1], [0, 0, 1, 1], [], []>} : vector<256x128xbf16>, vector<128x128xbf16>, vector<256x128xf32> -> vector<256x128xf32>
    %c0_142 = arith.constant 0 : index
    %c0_143 = arith.constant 0 : index
    %143 = vector.load %arg11[%c0_142, %c0_143] : memref<256x128xf32, #tpu.memory_space<vmem>>, vector<256x128xf32>
    %144 = arith.addf %143, %142 : vector<256x128xf32>
    %c0_144 = arith.constant 0 : index
    %c0_145 = arith.constant 0 : index
    %145 = vector.load %arg11[%c0_144, %c0_145] : memref<256x128xf32, #tpu.memory_space<vmem>>, vector<256x128xf32>
    tpu.vector_store %arg11[%c0_144, %c0_145], %144 {strides = array<i32>} : memref<256x128xf32, #tpu.memory_space<vmem>>, vector<256x128xf32>,
    %c0_146 = arith.constant 0 : index
    %c9 = arith.constant 9 : index
    %c0_147 = arith.constant 0 : index
    %146 = vector.load %arg9[%c0_146, %c9, %c0_147] : memref<18x25x128xf32, #tpu.memory_space<vmem>>, vector<18x16x128xf32>
    %147 = vector.extract_strided_slice %146 {offsets = [0, 0, 0], sizes = [16, 16, 128], strides = [1, 1, 1]} : vector<18x16x128xf32> to vector<16x16x128xf32>
    %148 = vector.shape_cast %147 : vector<16x16x128xf32> to vector<256x128xf32>
    %149 = arith.truncf %148 : vector<256x128xf32> to vector<256x128xbf16>
    %c2_148 = arith.constant 2 : index
    %c0_149 = arith.constant 0 : index
    %c0_150 = arith.constant 0 : index
    %150 = vector.load %arg4[%c2_148, %c0_149, %c0_150] : memref<9x128x128xbf16, #tpu.memory_space<vmem>>, vector<1x128x128xbf16>
    %151 = vector.shape_cast %150 : vector<1x128x128xbf16> to vector<128x128xbf16>
    %cst_151 = arith.constant dense<0.000000e+00> : vector<256x128xf32>
    %152 = tpu.matmul %149, %151, %cst_151 {dimension_numbers = #tpu.dot_dimension_numbers<[1], [0], [0], [1], [0, 0, 1, 1], [], []>} : vector<256x128xbf16>, vector<128x128xbf16>, vector<256x128xf32> -> vector<256x128xf32>
    %c0_152 = arith.constant 0 : index
    %c0_153 = arith.constant 0 : index
    %153 = vector.load %arg11[%c0_152, %c0_153] : memref<256x128xf32, #tpu.memory_space<vmem>>, vector<256x128xf32>
    %154 = arith.addf %153, %152 : vector<256x128xf32>
    %c0_154 = arith.constant 0 : index
    %c0_155 = arith.constant 0 : index
    %155 = vector.load %arg11[%c0_154, %c0_155] : memref<256x128xf32, #tpu.memory_space<vmem>>, vector<256x128xf32>
    tpu.vector_store %arg11[%c0_154, %c0_155], %154 {strides = array<i32>} : memref<256x128xf32, #tpu.memory_space<vmem>>, vector<256x128xf32>,
    %156 = vector.extract_strided_slice %146 {offsets = [1, 0, 0], sizes = [16, 16, 128], strides = [1, 1, 1]} : vector<18x16x128xf32> to vector<16x16x128xf32>
    %157 = vector.shape_cast %156 : vector<16x16x128xf32> to vector<256x128xf32>
    %158 = arith.truncf %157 : vector<256x128xf32> to vector<256x128xbf16>
    %c5_156 = arith.constant 5 : index
    %c0_157 = arith.constant 0 : index
    %c0_158 = arith.constant 0 : index
    %159 = vector.load %arg4[%c5_156, %c0_157, %c0_158] : memref<9x128x128xbf16, #tpu.memory_space<vmem>>, vector<1x128x128xbf16>
    %160 = vector.shape_cast %159 : vector<1x128x128xbf16> to vector<128x128xbf16>
    %cst_159 = arith.constant dense<0.000000e+00> : vector<256x128xf32>
    %161 = tpu.matmul %158, %160, %cst_159 {dimension_numbers = #tpu.dot_dimension_numbers<[1], [0], [0], [1], [0, 0, 1, 1], [], []>} : vector<256x128xbf16>, vector<128x128xbf16>, vector<256x128xf32> -> vector<256x128xf32>
    %c0_160 = arith.constant 0 : index
    %c0_161 = arith.constant 0 : index
    %162 = vector.load %arg11[%c0_160, %c0_161] : memref<256x128xf32, #tpu.memory_space<vmem>>, vector<256x128xf32>
    %163 = arith.addf %162, %161 : vector<256x128xf32>
    %c0_162 = arith.constant 0 : index
    %c0_163 = arith.constant 0 : index
    %164 = vector.load %arg11[%c0_162, %c0_163] : memref<256x128xf32, #tpu.memory_space<vmem>>, vector<256x128xf32>
    tpu.vector_store %arg11[%c0_162, %c0_163], %163 {strides = array<i32>} : memref<256x128xf32, #tpu.memory_space<vmem>>, vector<256x128xf32>,
    %165 = vector.extract_strided_slice %146 {offsets = [2, 0, 0], sizes = [16, 16, 128], strides = [1, 1, 1]} : vector<18x16x128xf32> to vector<16x16x128xf32>
    %166 = vector.shape_cast %165 : vector<16x16x128xf32> to vector<256x128xf32>
    %167 = arith.truncf %166 : vector<256x128xf32> to vector<256x128xbf16>
    %c8_164 = arith.constant 8 : index
    %c0_165 = arith.constant 0 : index
    %c0_166 = arith.constant 0 : index
    %168 = vector.load %arg4[%c8_164, %c0_165, %c0_166] : memref<9x128x128xbf16, #tpu.memory_space<vmem>>, vector<1x128x128xbf16>
    %169 = vector.shape_cast %168 : vector<1x128x128xbf16> to vector<128x128xbf16>
    %cst_167 = arith.constant dense<0.000000e+00> : vector<256x128xf32>
    %170 = tpu.matmul %167, %169, %cst_167 {dimension_numbers = #tpu.dot_dimension_numbers<[1], [0], [0], [1], [0, 0, 1, 1], [], []>} : vector<256x128xbf16>, vector<128x128xbf16>, vector<256x128xf32> -> vector<256x128xf32>
    %c0_168 = arith.constant 0 : index
    %c0_169 = arith.constant 0 : index
    %171 = vector.load %arg11[%c0_168, %c0_169] : memref<256x128xf32, #tpu.memory_space<vmem>>, vector<256x128xf32>
    %172 = arith.addf %171, %170 : vector<256x128xf32>
    %c0_170 = arith.constant 0 : index
    %c0_171 = arith.constant 0 : index
    %173 = vector.load %arg11[%c0_170, %c0_171] : memref<256x128xf32, #tpu.memory_space<vmem>>, vector<256x128xf32>
    tpu.vector_store %arg11[%c0_170, %c0_171], %172 {strides = array<i32>} : memref<256x128xf32, #tpu.memory_space<vmem>>, vector<256x128xf32>,
    %c0_172 = arith.constant 0 : index
    %c0_173 = arith.constant 0 : index
    %174 = vector.load %arg11[%c0_172, %c0_173] : memref<256x128xf32, #tpu.memory_space<vmem>>, vector<256x128xf32>
    %c0_174 = arith.constant 0 : index
    %c0_175 = arith.constant 0 : index
    %175 = vector.load %arg5[%c0_174, %c0_175] : memref<1x128xf32, #tpu.memory_space<vmem>>, vector<1x128xf32>
    %176 = vector.broadcast %175 : vector<1x128xf32> to vector<256x128xf32>
    %177 = arith.addf %174, %176 : vector<256x128xf32>
    %cst_176 = arith.constant 0.000000e+00 : f32
    %178 = vector.broadcast %cst_176 : f32 to vector<256x128xf32>
    %179 = arith.maximumf %177, %178 : vector<256x128xf32>
    %180 = vector.shape_cast %179 : vector<256x128xf32> to vector<16x16x128xf32>
    %c0_177 = arith.constant 0 : index
    %c0_178 = arith.constant 0 : index
    %c0_179 = arith.constant 0 : index
    %181 = vector.load %arg10[%c0_177, %c0_178, %c0_179] : memref<16x16x128xf32, #tpu.memory_space<vmem>>, vector<16x16x128xf32>
    tpu.vector_store %arg10[%c0_177, %c0_178, %c0_179], %180 {strides = array<i32>} : memref<16x16x128xf32, #tpu.memory_space<vmem>>, vector<16x16x128xf32>,
    %c0_180 = arith.constant 0 : index
    %c0_181 = arith.constant 0 : index
    %c0_182 = arith.constant 0 : index
    %182 = tpu.strided_load %arg10[%c0_180, %c0_181, %c0_182] {strides = array<i32: 1, 2, 1>} : memref<16x16x128xf32, #tpu.memory_space<vmem>>, vector<16x8x128xf32>
    %183 = vector.shape_cast %182 : vector<16x8x128xf32> to vector<8x2x8x128xf32>
    %184 = vector.extract_strided_slice %183 {offsets = [0, 0, 0, 0], sizes = [8, 1, 8, 128], strides = [1, 1, 1, 1]} : vector<8x2x8x128xf32> to vector<8x1x8x128xf32>
    %185 = vector.shape_cast %184 : vector<8x1x8x128xf32> to vector<8x8x128xf32>
    %186 = vector.shape_cast %185 : vector<8x8x128xf32> to vector<64x128xf32>
    %187 = arith.truncf %186 : vector<64x128xf32> to vector<64x128xbf16>
    %c0_183 = arith.constant 0 : index
    %c0_184 = arith.constant 0 : index
    %c0_185 = arith.constant 0 : index
    %188 = vector.load %arg6[%c0_183, %c0_184, %c0_185] : memref<4x128x128xbf16, #tpu.memory_space<vmem>>, vector<1x128x128xbf16>
    %189 = vector.shape_cast %188 : vector<1x128x128xbf16> to vector<128x128xbf16>
    %cst_186 = arith.constant dense<0.000000e+00> : vector<64x128xf32>
    %190 = tpu.matmul %187, %189, %cst_186 {dimension_numbers = #tpu.dot_dimension_numbers<[1], [0], [0], [1], [0, 0, 1, 1], [], []>} : vector<64x128xbf16>, vector<128x128xbf16>, vector<64x128xf32> -> vector<64x128xf32>
    %c0_187 = arith.constant 0 : index
    %c0_188 = arith.constant 0 : index
    %191 = vector.load %arg11[%c0_187, %c0_188] : memref<256x128xf32, #tpu.memory_space<vmem>>, vector<64x128xf32>
    tpu.vector_store %arg11[%c0_187, %c0_188], %190 {strides = array<i32>} : memref<256x128xf32, #tpu.memory_space<vmem>>, vector<64x128xf32>,
    %192 = vector.extract_strided_slice %183 {offsets = [0, 1, 0, 0], sizes = [8, 1, 8, 128], strides = [1, 1, 1, 1]} : vector<8x2x8x128xf32> to vector<8x1x8x128xf32>
    %193 = vector.shape_cast %192 : vector<8x1x8x128xf32> to vector<8x8x128xf32>
    %194 = vector.shape_cast %193 : vector<8x8x128xf32> to vector<64x128xf32>
    %195 = arith.truncf %194 : vector<64x128xf32> to vector<64x128xbf16>
    %c2_189 = arith.constant 2 : index
    %c0_190 = arith.constant 0 : index
    %c0_191 = arith.constant 0 : index
    %196 = vector.load %arg6[%c2_189, %c0_190, %c0_191] : memref<4x128x128xbf16, #tpu.memory_space<vmem>>, vector<1x128x128xbf16>
    %197 = vector.shape_cast %196 : vector<1x128x128xbf16> to vector<128x128xbf16>
    %cst_192 = arith.constant dense<0.000000e+00> : vector<64x128xf32>
    %198 = tpu.matmul %195, %197, %cst_192 {dimension_numbers = #tpu.dot_dimension_numbers<[1], [0], [0], [1], [0, 0, 1, 1], [], []>} : vector<64x128xbf16>, vector<128x128xbf16>, vector<64x128xf32> -> vector<64x128xf32>
    %c0_193 = arith.constant 0 : index
    %c0_194 = arith.constant 0 : index
    %199 = vector.load %arg11[%c0_193, %c0_194] : memref<256x128xf32, #tpu.memory_space<vmem>>, vector<64x128xf32>
    %200 = arith.addf %199, %198 : vector<64x128xf32>
    %c0_195 = arith.constant 0 : index
    %c0_196 = arith.constant 0 : index
    %201 = vector.load %arg11[%c0_195, %c0_196] : memref<256x128xf32, #tpu.memory_space<vmem>>, vector<64x128xf32>
    tpu.vector_store %arg11[%c0_195, %c0_196], %200 {strides = array<i32>} : memref<256x128xf32, #tpu.memory_space<vmem>>, vector<64x128xf32>,
    %c0_197 = arith.constant 0 : index
    %c1_198 = arith.constant 1 : index
    %c0_199 = arith.constant 0 : index
    %202 = tpu.strided_load %arg10[%c0_197, %c1_198, %c0_199] {strides = array<i32: 1, 2, 1>} : memref<16x16x128xf32, #tpu.memory_space<vmem>>, vector<16x8x128xf32>
    %203 = vector.shape_cast %202 : vector<16x8x128xf32> to vector<8x2x8x128xf32>
    %204 = vector.extract_strided_slice %203 {offsets = [0, 0, 0, 0], sizes = [8, 1, 8, 128], strides = [1, 1, 1, 1]} : vector<8x2x8x128xf32> to vector<8x1x8x128xf32>
    %205 = vector.shape_cast %204 : vector<8x1x8x128xf32> to vector<8x8x128xf32>
    %206 = vector.shape_cast %205 : vector<8x8x128xf32> to vector<64x128xf32>
    %207 = arith.truncf %206 : vector<64x128xf32> to vector<64x128xbf16>
    %c1_200 = arith.constant 1 : index
    %c0_201 = arith.constant 0 : index
    %c0_202 = arith.constant 0 : index
    %208 = vector.load %arg6[%c1_200, %c0_201, %c0_202] : memref<4x128x128xbf16, #tpu.memory_space<vmem>>, vector<1x128x128xbf16>
    %209 = vector.shape_cast %208 : vector<1x128x128xbf16> to vector<128x128xbf16>
    %cst_203 = arith.constant dense<0.000000e+00> : vector<64x128xf32>
    %210 = tpu.matmul %207, %209, %cst_203 {dimension_numbers = #tpu.dot_dimension_numbers<[1], [0], [0], [1], [0, 0, 1, 1], [], []>} : vector<64x128xbf16>, vector<128x128xbf16>, vector<64x128xf32> -> vector<64x128xf32>
    %c0_204 = arith.constant 0 : index
    %c0_205 = arith.constant 0 : index
    %211 = vector.load %arg11[%c0_204, %c0_205] : memref<256x128xf32, #tpu.memory_space<vmem>>, vector<64x128xf32>
    %212 = arith.addf %211, %210 : vector<64x128xf32>
    %c0_206 = arith.constant 0 : index
    %c0_207 = arith.constant 0 : index
    %213 = vector.load %arg11[%c0_206, %c0_207] : memref<256x128xf32, #tpu.memory_space<vmem>>, vector<64x128xf32>
    tpu.vector_store %arg11[%c0_206, %c0_207], %212 {strides = array<i32>} : memref<256x128xf32, #tpu.memory_space<vmem>>, vector<64x128xf32>,
    %214 = vector.extract_strided_slice %203 {offsets = [0, 1, 0, 0], sizes = [8, 1, 8, 128], strides = [1, 1, 1, 1]} : vector<8x2x8x128xf32> to vector<8x1x8x128xf32>
    %215 = vector.shape_cast %214 : vector<8x1x8x128xf32> to vector<8x8x128xf32>
    %216 = vector.shape_cast %215 : vector<8x8x128xf32> to vector<64x128xf32>
    %217 = arith.truncf %216 : vector<64x128xf32> to vector<64x128xbf16>
    %c3_208 = arith.constant 3 : index
    %c0_209 = arith.constant 0 : index
    %c0_210 = arith.constant 0 : index
    %218 = vector.load %arg6[%c3_208, %c0_209, %c0_210] : memref<4x128x128xbf16, #tpu.memory_space<vmem>>, vector<1x128x128xbf16>
    %219 = vector.shape_cast %218 : vector<1x128x128xbf16> to vector<128x128xbf16>
    %cst_211 = arith.constant dense<0.000000e+00> : vector<64x128xf32>
    %220 = tpu.matmul %217, %219, %cst_211 {dimension_numbers = #tpu.dot_dimension_numbers<[1], [0], [0], [1], [0, 0, 1, 1], [], []>} : vector<64x128xbf16>, vector<128x128xbf16>, vector<64x128xf32> -> vector<64x128xf32>
    %c0_212 = arith.constant 0 : index
    %c0_213 = arith.constant 0 : index
    %221 = vector.load %arg11[%c0_212, %c0_213] : memref<256x128xf32, #tpu.memory_space<vmem>>, vector<64x128xf32>
    %222 = arith.addf %221, %220 : vector<64x128xf32>
    %c0_214 = arith.constant 0 : index
    %c0_215 = arith.constant 0 : index
    %223 = vector.load %arg11[%c0_214, %c0_215] : memref<256x128xf32, #tpu.memory_space<vmem>>, vector<64x128xf32>
    tpu.vector_store %arg11[%c0_214, %c0_215], %222 {strides = array<i32>} : memref<256x128xf32, #tpu.memory_space<vmem>>, vector<64x128xf32>,
    %c0_216 = arith.constant 0 : index
    %c0_217 = arith.constant 0 : index
    %224 = vector.load %arg11[%c0_216, %c0_217] : memref<256x128xf32, #tpu.memory_space<vmem>>, vector<64x128xf32>
    %c0_218 = arith.constant 0 : index
    %c0_219 = arith.constant 0 : index
    %225 = vector.load %arg7[%c0_218, %c0_219] : memref<1x128xf32, #tpu.memory_space<vmem>>, vector<1x128xf32>
    %226 = vector.broadcast %225 : vector<1x128xf32> to vector<64x128xf32>
    %227 = arith.addf %224, %226 : vector<64x128xf32>
    %cst_220 = arith.constant 0.000000e+00 : f32
    %228 = vector.broadcast %cst_220 : f32 to vector<64x128xf32>
    %229 = arith.maximumf %227, %228 : vector<64x128xf32>
    %230 = vector.shape_cast %229 : vector<64x128xf32> to vector<8x8x128xf32>
    %c0_221 = arith.constant 0 : index
    %c0_222 = arith.constant 0 : index
    %c0_223 = arith.constant 0 : index
    %c0_224 = arith.constant 0 : index
    %231 = vector.load %arg8[%c0_221, %c0_222, %c0_223, %c0_224] : memref<1x8x8x128xf32, #tpu.memory_space<vmem>>, vector<1x8x8x128xf32>
    %232 = vector.shape_cast %231 : vector<1x8x8x128xf32> to vector<8x8x128xf32>
    %233 = vector.shape_cast %230 : vector<8x8x128xf32> to vector<1x8x8x128xf32>
    tpu.vector_store %arg8[%c0_221, %c0_222, %c0_223, %c0_224], %233 {strides = array<i32>} : memref<1x8x8x128xf32, #tpu.memory_space<vmem>>, vector<1x8x8x128xf32>,
    return
  }
  func.func @transform_0(%arg0: i32) -> (i32, i32, i32, i32) {
    %c0_i32 = arith.constant 0 : i32
    %c0_i32_0 = arith.constant 0 : i32
    %c0_i32_1 = arith.constant 0 : i32
    %c0_i32_2 = arith.constant 0 : i32
    return %arg0, %c0_i32, %c0_i32_0, %c0_i32_1 : i32, i32, i32, i32
  }
  func.func @transform_1(%arg0: i32) -> (i32, i32, i32) {
    %c0_i32 = arith.constant 0 : i32
    %c0_i32_0 = arith.constant 0 : i32
    %c0_i32_1 = arith.constant 0 : i32
    %c0_i32_2 = arith.constant 0 : i32
    return %c0_i32, %c0_i32_0, %c0_i32_1 : i32, i32, i32
  }
  func.func @transform_2(%arg0: i32) -> (i32, i32) {
    %c0_i32 = arith.constant 0 : i32
    %c0_i32_0 = arith.constant 0 : i32
    %c0_i32_1 = arith.constant 0 : i32
    return %c0_i32, %c0_i32_0 : i32, i32
  }
  func.func @transform_3(%arg0: i32) -> (i32, i32, i32) {
    %c0_i32 = arith.constant 0 : i32
    %c0_i32_0 = arith.constant 0 : i32
    %c0_i32_1 = arith.constant 0 : i32
    %c0_i32_2 = arith.constant 0 : i32
    return %c0_i32, %c0_i32_0, %c0_i32_1 : i32, i32, i32
  }
  func.func @transform_4(%arg0: i32) -> (i32, i32) {
    %c0_i32 = arith.constant 0 : i32
    %c0_i32_0 = arith.constant 0 : i32
    %c0_i32_1 = arith.constant 0 : i32
    return %c0_i32, %c0_i32_0 : i32, i32
  }
  func.func @transform_5(%arg0: i32) -> (i32, i32, i32) {
    %c0_i32 = arith.constant 0 : i32
    %c0_i32_0 = arith.constant 0 : i32
    %c0_i32_1 = arith.constant 0 : i32
    %c0_i32_2 = arith.constant 0 : i32
    return %c0_i32, %c0_i32_0, %c0_i32_1 : i32, i32, i32
  }
  func.func @transform_6(%arg0: i32) -> (i32, i32) {
    %c0_i32 = arith.constant 0 : i32
    %c0_i32_0 = arith.constant 0 : i32
    %c0_i32_1 = arith.constant 0 : i32
    return %c0_i32, %c0_i32_0 : i32, i32
  }
  func.func @transform_7(%arg0: i32) -> (i32, i32, i32, i32) {
    %c0_i32 = arith.constant 0 : i32
    %c0_i32_0 = arith.constant 0 : i32
    %c0_i32_1 = arith.constant 0 : i32
    %c0_i32_2 = arith.constant 0 : i32
    return %arg0, %c0_i32, %c0_i32_0, %c0_i32_1 : i32, i32, i32, i32
  }
}

</mosaic_0001>

<bundles_post_ra>
// kernel: _lambda_.1
= control target key start
LH: loop header
LB: loop body
LE: loop exit
PB: predicated region body
PF: predicated region fallthrough
CT: control target
= control target key end

     0   :  { %s10466_s24 = smov 0   ;;  %s13368_s0 = inlined_call_operand.vmem [shape: bf16[2,18,18,128], index: 0, kind: input, shape index: {}]   ;;  %s13369_s1 = inlined_call_operand.vmem [shape: bf16[9,128,128], index: 1, kind: input, shape index: {}]   ;;  %s13370_s2 = inlined_call_operand.vmem [shape: f32[1,128], index: 2, kind: input, shape index: {}]   ;;  %s13371_s3 = inlined_call_operand.vmem [shape: bf16[9,128,128], index: 3, kind: input, shape index: {}]   ;;  %s13372_s4 = inlined_call_operand.vmem [shape: f32[1,128], index: 4, kind: input, shape index: {}]   ;;  %s13373_s5 = inlined_call_operand.vmem [shape: bf16[4,128,128], index: 5, kind: input, shape index: {}]   ;;  %s13374_s6 = inlined_call_operand.vmem [shape: f32[1,128], index: 6, kind: input, shape index: {}]   ;;  %s13375_s7 = inlined_call_operand.vmem [shape: f32[2,8,8,128], index: 7, kind: output, shape index: {}]  }
   0x1 LB: > { %s8206_s25 = sadd.s32 4294967295, %s10423_s24   ;;  %p8210_p0 = scmp.ge.s32.totalorder %s10423_s24, 1  ;;  %s10423_s24 = sphi %s10466_s24, %s17_s24  }
   0x2   : > { %p237_p1 = scmp.lt.s32.totalorder %s10423_s24, 3 }
   0x4   : > { %p238_p2 = pnand %p8210_p0, %p237_p1 }
   0x6   : > { %241 = sbr.rel (%p238_p2) target bundleno = 1268 (0x4f4), region = 48 }
   0xb   : > { %v10222_v0 = vld [vmem:[%s13369_s1 + $0x38] sm:$0xff]   ;;  %p269_p3 = scmp.lt.s32.totalorder %s8206_s25, 1  ;;  %v10224_v2 = vld [vmem:[%s13369_s1 + $0x30] sm:$0xff]   ;;  %v10226_v4 = vld [vmem:[%s13369_s1 + $0x28] sm:$0xff]   ;;  %vm1379_vm0 = vsmask.f32 3328 }
   0xc   : > { %v10223_v1 = vld [vmem:[%s13369_s1 + $0xf8] sm:$0xff]   ;;  %9252 = vmatprep.subr.bf16.mxu0 %v10222_v0  ;;  %v10225_v3 = vld [vmem:[%s13369_s1 + $0xf0] sm:$0xff]   ;;  %v10227_v5 = vld [vmem:[%s13369_s1 + $0xe8] sm:$0xff]   ;;  %vm1380_vm1 = vsmask.f32 7440  ;;  %vm2954_vm3 = vcmask 1042432  }
   0xd   : > { %9300 = vmatprep.subr.bf16.mxu1 %v10223_v1  ;;  %9253 = vmatpush3.bf16.msra.mxu0 %v10222_v0  ;;  %s13672_s25 = smov (!%p269_p3, %s8206_s25), 1  ;;  %v10228_v6 = vld [vmem:[%s13369_s1 + $0x20] sm:$0xff]   ;;  %v10230_v8 = vld [vmem:[%s13369_s1 + $0x18] sm:$0xff]   ;;  %v10232_v10 = vld [vmem:[%s13369_s1 + $0x10] sm:$0xff]   ;;  %vm2955_vm4 = vcmask 1046532  }
   0xe   : > { %9301 = vmatpush3.bf16.msra.mxu1 %v10223_v1  ;;  %9254 = vmatprep.subr.bf16.mxu0 %v10224_v2  ;;  %v10229_v7 = vld [vmem:[%s13369_s1 + $0xe0] sm:$0xff]   ;;  %s10212_s19 = smul.u32 216, %s13672_s25  ;;  %v10231_v9 = vld [vmem:[%s13369_s1 + $0xd8] sm:$0xff]   ;;  %v10233_v11 = vld [vmem:[%s13369_s1 + $0xd0] sm:$0xff]   ;;  %s8771_s14 = sshll.u32 %s13672_s25, 6 }
   0xf   : > { %9302 = vmatprep.subr.bf16.mxu1 %v10225_v3  ;;  %v10234_v14 = vld [vmem:[%s13369_s1 + $0x8] sm:$0xff]   ;;  %v10236_v16 = vld [vmem:[%s13369_s1] sm:$0xff]   ;;  %v10241_v18 = vld [vmem:[%s13369_s1 + $0x1b8] sm:$0xff]   ;;  %s13355_s16 = scalar_lea.vmem %s13375_s7, %s8771_s14 }
  0x10   : > { %s10510_s28 = scalar_lea.vmem %s13368_s0, %s10212_s19  ;;  %v10235_v15 = vld [vmem:[%s13369_s1 + $0xc8] sm:$0xff]   ;;  %v10237_v17 = vld [vmem:[%s13369_s1 + $0xc0] sm:$0xff]   ;;  %v10254_v21 = vld [vmem:[%s13369_s1 + $0x78] sm:$0xff]  }
  0x11   : > { %9255 = vmatpush3.bf16.msra.mxu0 %v10224_v2  ;;  %v10238_v12 = vld [vmem:[%s10510_s28] sm:$0xff]   ;;  %v10239_v13 = vld [vmem:[%s10510_s28 + $0xc] sm:$0xff]   ;;  %v10536_v19 = vld [vmem:[%s10510_s28 + $0x18] sm:$0xff]  }
  0x12   : > { %9303 = vmatpush3.bf16.msra.mxu1 %v10225_v3  ;;  %9256 = vmatprep.subr.bf16.mxu0 %v10226_v4  ;;  %v10539_v20 = vld [vmem:[%s10510_s28 + $0x24] sm:$0xff]   ;;  %v10244_v22 = vld [vmem:[%s13369_s1 + $0x1b0] sm:$0xff]   ;;  %v10563_v27 = vld [vmem:[%s10510_s28 + $0x3c] sm:$0xff]  }
  0x13   : > { %9304 = vmatprep.subr.bf16.mxu1 %v10227_v5  ;;  %9268 = vmatprep.mubr.bf16.mxu0 %v10238_v12  ;;  %v10255_v23 = vld [vmem:[%s13369_s1 + $0x70] sm:$0xff]   ;;  %v10247_v24 = vld [vmem:[%s13369_s1 + $0x1a8] sm:$0xff]   ;;  %v10250_v28 = vld [vmem:[%s13369_s1 + $0x1a0] sm:$0xff]  }
  0x14   : > { %9316 = vmatprep.mubr.bf16.mxu1 %v10239_v13  ;;  %v10259_v25 = vld [vmem:[%s13369_s1 + $0x68] sm:$0xff]   ;;  %v10560_v26 = vld [vmem:[%s10510_s28 + $0x30] sm:$0xff]   ;;  %v10260_v29 = vld [vmem:[%s13369_s1 + $0x60] sm:$0xff]  }
  0x15   : > { %9257 = vmatpush3.bf16.msra.mxu0 %v10226_v4  ;;  %v10253_v30 = vld [vmem:[%s13369_s1 + $0x198] sm:$0xff]   ;;  %v10582_v32 = vld [vmem:[%s10510_s28 + $0x48] sm:$0xff]   ;;  %v10258_v34 = vld [vmem:[%s13369_s1 + $0x190] sm:$0xff]  }
  0x16   : > { %9305 = vmatpush3.bf16.msra.mxu1 %v10227_v5  ;;  %9258 = vmatprep.subr.bf16.mxu0 %v10228_v6  ;;  %v10264_v31 = vld [vmem:[%s13369_s1 + $0x58] sm:$0xff]   ;;  %v10265_v35 = vld [vmem:[%s13369_s1 + $0x50] sm:$0xff]   ;;  %v10263_v36 = vld [vmem:[%s13369_s1 + $0x188] sm:$0xff]  }
  0x17   : > { %9306 = vmatprep.subr.bf16.mxu1 %v10229_v7  ;;  %v10585_v33 = vld [vmem:[%s10510_s28 + $0x54] sm:$0xff]   ;;  %v10269_v37 = vld [vmem:[%s13369_s1 + $0x48] sm:$0xff]   ;;  %v10604_v38 = vld [vmem:[%s10510_s28 + $0x60] sm:$0xff]  }
  0x18   : > { %v10607_v39 = vld [vmem:[%s10510_s28 + $0x6c] sm:$0xff]   ;;  %v10268_v40 = vld [vmem:[%s13369_s1 + $0x180] sm:$0xff]   ;;  %v10624_v44 = vld [vmem:[%s13369_s1 + $0x138] sm:$0xff]  }
  0x19   : > { %9259 = vmatpush3.bf16.msra.mxu0 %v10228_v6  ;;  %v10270_v41 = vld [vmem:[%s13369_s1 + $0x40] sm:$0xff]   ;;  %v1328_v49 = vld [vmem:[%s10510_s28 + $0xc] sm:$0xf]  ;;  %v1329_v50 = vld [vmem:[%s10510_s28 + $0x10] sm:$0xf] }
  0x1a   : > { %9307 = vmatpush3.bf16.msra.mxu1 %v10229_v7  ;;  %9260 = vmatprep.subr.bf16.mxu0 %v10230_v8  ;;  %v1325_v42 = vld [vmem:[%s10510_s28] sm:$0xf]  ;;  %v1326_v43 = vld [vmem:[%s10510_s28 + $0x4] sm:$0xf]  ;;  %v10631_v51 = vld [vmem:[%s13369_s1 + $0x1f8] sm:$0xff]   ;;  %v1407_v54 = vshrl.u32 %v1328_v49, 16 }
  0x1b   : > { %9308 = vmatprep.subr.bf16.mxu1 %v10231_v9  ;;  %v1383_v45 = vshrl.u32 %v1325_v42, 16  ;;  %v1386_v46 = vshll.u32 %v1325_v42, 16  ;;  %v1392_v47 = vshll.u32 %v1326_v43, 16  ;;  %v1396_v48 = vshrl.u32 %v1326_v43, 16  ;;  %v10634_v52 = vld [vmem:[%s10510_s28 + $0x78] sm:$0xff]   ;;  %v10637_v53 = vld [vmem:[%s10510_s28 + $0x84] sm:$0xff]   ;;  %vm10667_vm2 = vmor %vm1379_vm0, %vm1380_vm1 }
  0x1c   : > { %v1410_v55 = vshll.u32 %v1328_v49, 16  ;;  %v1416_v56 = vshll.u32 %v1329_v50, 16  ;;  %v1420_v57 = vshrl.u32 %v1329_v50, 16  ;;  %v1327_v62 = vld [vmem:[%s10510_s28 + $0x8] sm:$0x1]  ;;  %v1409_v1 = vrot.slane %v1407_v54, 4  ;;  %vm11218_vm5 = vmor %vm2954_vm3, %vm2955_vm4 }
  0x1d   : > { %9261 = vmatpush3.bf16.msra.mxu0 %v10230_v8  ;;  %v1385_v58 = vrot.slane %v1383_v45, 4  ;;  %v1388_v59 = vrot.slane %v1386_v46, 5  ;;  %v10641_v60 = vrot.slane %v1392_v47, 5  ;;  %v1398_v61 = vrot.slane %v1396_v48, 4  ;;  %v1330_v63 = vld [vmem:[%s10510_s28 + $0x14] sm:$0x1] }
  0x1e   : > { %9309 = vmatpush3.bf16.msra.mxu1 %v10231_v9  ;;  %9262 = vmatprep.subr.bf16.mxu0 %v10232_v10  ;;  %v1331_v0 = vld [vmem:[%s10510_s28 + $0x18] sm:$0xf]  ;;  %v1412_v2 = vrot.slane %v1410_v55, 5  ;;  %v10650_v3 = vrot.slane %v1416_v56, 5  ;;  %v1422_v4 = vrot.slane %v1420_v57, 4  ;;  %v10653_v5 = vld [vmem:[%s10510_s28 + $0x90] sm:$0xff]  }
  0x1f   : > { %9310 = vmatprep.subr.bf16.mxu1 %v10233_v11  ;;  %v1389_v6 = vor.u32 %v1388_v59, %v1385_v58  ;;  %v1399_v7 = vor.u32 %v1398_v61, %v10641_v60  ;;  %v1402_v8 = vshll.u32 %v1327_v62, 16  ;;  %v1332_v9 = vld [vmem:[%s10510_s28 + $0x1c] sm:$0xf]  ;;  %v1431_v12 = vshrl.u32 %v1331_v0, 16  ;;  %v10678_v42 = vld [vmem:[%s10510_s28 + $0xa8] sm:$0xff]   ;;  %v10688_v49 = vld [vmem:[%s10510_s28 + $0xb4] sm:$0xff]  }
  0x20   : > { %v1336_v48 = vld [vmem:[%s10510_s28 + $0x2c] sm:$0x1]  ;;  %v1340_v57 = vld [vmem:[%s10510_s28 + $0x3c] sm:$0xf]  ;;  %v1341_v61 = vld [vmem:[%s10510_s28 + $0x40] sm:$0xf] }
  0x21   : > { %9263 = vmatpush3.bf16.msra.mxu0 %v10232_v10  ;;  %v10658_v10 = vld [vmem:[%s10510_s28 + $0x9c] sm:$0xff]  }
  0x22   : > { %9311 = vmatpush3.bf16.msra.mxu1 %v10233_v11  ;;  %9264 = vmatprep.subr.bf16.mxu0 %v10234_v14  ;;  %v1426_v11 = vshll.u32 %v1330_v63, 16 }
  0x23   : > { %9312 = vmatprep.subr.bf16.mxu1 %v10235_v15 }
  0x25   : > { %9265 = vmatpush3.bf16.msra.mxu0 %v10234_v14  ;;  %v1334_v14 = vld [vmem:[%s10510_s28 + $0x24] sm:$0xf] }
  0x26   : > { %9313 = vmatpush3.bf16.msra.mxu1 %v10235_v15  ;;  %9266 = vmatprep.subr.bf16.mxu0 %v10236_v16  ;;  %v1413_v15 = vor.u32 %v1412_v2, %v1409_v1 }
  0x27   : > { %9314 = vmatprep.subr.bf16.mxu1 %v10237_v17 }
  0x28   : > { %v10680_v43 = vrot.slane %v1413_v15, 4 }
  0x29   : > { %9267 = vmatpush3.bf16.msra.mxu0 %v10236_v16  ;;  %v1423_v16 = vor.u32 %v1422_v4, %v10650_v3 }
  0x2a   : > { %9315 = vmatpush3.bf16.msra.mxu1 %v10237_v17  ;;  %9348 = vmatprep.subr.bf16.mxu0 %v10241_v18  ;;  %v1440_v17 = vshll.u32 %v1332_v9, 16 }
  0x2b   : > { %9396 = vmatprep.subr.bf16.mxu1 %v10254_v21  ;;  %v10682_v45 = vrot.slane %v1423_v16, 4  ;;  %v1503_v16 = vshrl.u32 %v1340_v57, 16 }
  0x2c   : > { %9269 = vmatmul.mubr.bf16.vlgmr.msra.gmra.mxu0 %v10239_v13  ;;  %v1434_v13 = vshll.u32 %v1331_v0, 16  ;;  %v10684_v46 = vrot.slane %v1440_v17, 5  ;;  %v1506_v17 = vshll.u32 %v1340_v57, 16  ;;  %v1345_v57 = vld [vmem:[%s10510_s28 + $0x50] sm:$0x1] }
  0x2d   : > { %9317 = vmatmul.mubr.bf16.vlgmr.msra.gmra.mxu1 %v10536_v19  ;;  %9349 = vmatpush3.bf16.msra.mxu0 %v10241_v18  ;;  %v1444_v18 = vshrl.u32 %v1332_v9, 16 }
  0x2e   : > { %9272 = vmatprep.mubr.bf16.mxu0 %v10536_v19  ;;  %9320 = vmatprep.mubr.bf16.mxu1 %v10539_v20 }
  0x2f   : > { %9350 = vmatprep.subr.bf16.mxu0 %v10244_v22  ;;  %9397 = vmatpush3.bf16.msra.mxu1 %v10254_v21  ;;  %v1335_v21 = vld [vmem:[%s10510_s28 + $0x28] sm:$0xf]  ;;  %v1446_v47 = vrot.slane %v1444_v18, 4 }
  0x30   : > { %9398 = vmatprep.subr.bf16.mxu1 %v10255_v23 }
  0x31   : > { %9351 = vmatpush3.bf16.msra.mxu0 %v10244_v22  ;;  %v1390_v22 = vrot.slane %v1389_v6, 4  ;;  %v1447_v9 = vor.u32 %v1446_v47, %v10684_v46  ;;  %v1505_v47 = vrot.slane %v1503_v16, 4  ;;  %v1546_v16 = vshll.u32 %v1345_v57, 16 }
  0x32   : > { %9352 = vmatprep.subr.bf16.mxu0 %v10247_v24 }
  0x33   : > { %9399 = vmatpush3.bf16.msra.mxu1 %v10255_v23  ;;  %v1400_v23 = vrot.slane %v1399_v7, 4  ;;  %v1395_v50 = vsel %vm10667_vm2, %v1390_v22, %v10641_v60  ;;  %v1474_v60 = vshll.u32 %v1336_v48, 16  ;;  %v1343_v7 = vld [vmem:[%s10510_s28 + $0x48] sm:$0xf]  ;;  %v1516_v22 = vshrl.u32 %v1341_v61, 16 }
  0x34   : > { %9273 = vmatmul.mubr.bf16.gmra.mxu0 %v10539_v20  ;;  %9400 = vmatprep.subr.bf16.mxu1 %v10259_v25  ;;  %v1508_v48 = vrot.slane %v1506_v17, 5 }
  0x35   : > { %9321 = vmatmul.mubr.bf16.gmra.mxu1 %v10560_v26  ;;  %9276 = vmatprep.mubr.bf16.mxu0 %v10560_v26 }
  0x36   : > { %9324 = vmatprep.mubr.bf16.mxu1 %v10563_v27  ;;  %9353 = vmatpush3.bf16.msra.mxu0 %v10247_v24  ;;  %v1404_v24 = vrot.slane %v1402_v8, 5  ;;  %v1419_v8 = vsel %vm10667_vm2, %v10680_v43, %v10650_v3  ;;  %v1342_v43 = vld [vmem:[%s10510_s28 + $0x44] sm:$0x1] }
  0x37   : > { %9354 = vmatprep.subr.bf16.mxu0 %v10250_v28  ;;  %9401 = vmatpush3.bf16.msra.mxu1 %v10259_v25 }
  0x38   : > { %9402 = vmatprep.subr.bf16.mxu1 %v10260_v29  ;;  %v1405_v54 = vsel %vm10667_vm2, %v1400_v23, %v1404_v24 }
  0x39   : > { %v8304_v2 = vcombine.low %v1395_v50, %v1405_v54  ;;  %v1344_v50 = vld [vmem:[%s10510_s28 + $0x4c] sm:$0xf]  ;;  %v1346_v54 = vld [vmem:[%s10510_s28 + $0x54] sm:$0xf] }
  0x3a   : > { %9355 = vmatpush3.bf16.msra.mxu0 %v10250_v28  ;;  %v10671_v28 = vrot.slane %v1426_v11, 5 }
  0x3b   : > { %9356 = vmatprep.subr.bf16.mxu0 %v10253_v30  ;;  %9403 = vmatpush3.bf16.msra.mxu1 %v10260_v29  ;;  %v1433_v29 = vrot.slane %v1431_v12, 4 }
  0x3c   : > { %9277 = vmatmul.mubr.bf16.gmra.mxu0 %v10563_v27  ;;  %9404 = vmatprep.subr.bf16.mxu1 %v10264_v31  ;;  %v1429_v23 = vsel %vm10667_vm2, %v10682_v45, %v10671_v28 }
  0x3d   : > { %9325 = vmatmul.mubr.bf16.gmra.mxu1 %v10582_v32  ;;  %9280 = vmatprep.mubr.bf16.mxu0 %v10582_v32 }
  0x3e   : > { %9328 = vmatprep.mubr.bf16.mxu1 %v10585_v33  ;;  %9357 = vmatpush3.bf16.msra.mxu0 %v10253_v30  ;;  %v1436_v30 = vrot.slane %v1434_v13, 5  ;;  %v1339_v13 = vld [vmem:[%s10510_s28 + $0x38] sm:$0x1] }
  0x3f   : > { %9358 = vmatprep.subr.bf16.mxu0 %v10258_v34  ;;  %9405 = vmatpush3.bf16.msra.mxu1 %v10264_v31  ;;  %v1337_v31 = vld [vmem:[%s10510_s28 + $0x30] sm:$0xf] }
  0x40   : > { %9406 = vmatprep.subr.bf16.mxu1 %v10265_v35  ;;  %v1479_v55 = vshrl.u32 %v1337_v31, 16  ;;  %v1482_v56 = vshll.u32 %v1337_v31, 16  ;;  %v1437_v4 = vor.u32 %v1436_v30, %v1433_v29  ;;  %v1527_v29 = vshrl.u32 %v1343_v7, 16  ;;  %v10718_v31 = vld [vmem:[%s10510_s28 + $0xc0] sm:$0xff]  }
  0x41   : > { %v1530_v30 = vshll.u32 %v1343_v7, 16 }
  0x42   : > { %9359 = vmatpush3.bf16.msra.mxu0 %v10258_v34  ;;  %v1333_v34 = vld [vmem:[%s10510_s28 + $0x20] sm:$0x1]  ;;  %v1481_v11 = vrot.slane %v1479_v55, 4  ;;  %v1484_v12 = vrot.slane %v1482_v56, 5  ;;  %v1438_v24 = vrot.slane %v1437_v4, 4  ;;  %v1518_v56 = vrot.slane %v1516_v22, 4 }
  0x43   : > { %9360 = vmatprep.subr.bf16.mxu0 %v10263_v36  ;;  %9407 = vmatpush3.bf16.msra.mxu1 %v10265_v35  ;;  %v1455_v35 = vshrl.u32 %v1334_v14, 16  ;;  %v1450_v6 = vshll.u32 %v1333_v34, 16  ;;  %v1448_v34 = vrot.slane %v1447_v9, 4  ;;  %v1540_v4 = vshrl.u32 %v1344_v50, 16  ;;  %v10272_v22 = vld [vmem:[%s13369_s1 + $0x130] sm:$0xff]  }
  0x44   : > { %9281 = vmatmul.mubr.bf16.gmra.mxu0 %v10585_v33  ;;  %9408 = vmatprep.subr.bf16.mxu1 %v10269_v37  ;;  %v1509_v9 = vor.u32 %v1508_v48, %v1505_v47 }
  0x45   : > { %9329 = vmatmul.mubr.bf16.gmra.mxu1 %v10604_v38  ;;  %9284 = vmatprep.mubr.bf16.mxu0 %v10604_v38  ;;  %v1457_v62 = vrot.slane %v1455_v35, 4  ;;  %v1452_v35 = vrot.slane %v1450_v6, 5 }
  0x46   : > { %9332 = vmatprep.mubr.bf16.mxu1 %v10607_v39  ;;  %9361 = vmatpush3.bf16.msra.mxu0 %v10263_v36  ;;  %v1458_v36 = vshll.u32 %v1334_v14, 16 }
  0x47   : > { %9362 = vmatprep.subr.bf16.mxu0 %v10268_v40  ;;  %9409 = vmatpush3.bf16.msra.mxu1 %v10269_v37  ;;  %v1464_v37 = vshll.u32 %v1335_v21, 16 }
  0x48   : > { %9410 = vmatprep.subr.bf16.mxu1 %v10270_v41  ;;  %v1460_v63 = vrot.slane %v1458_v36, 5  ;;  %v1476_v36 = vrot.slane %v1474_v60, 5 }
  0x49   : > { %v10697_v0 = vrot.slane %v1464_v37, 5  ;;  %v1498_v37 = vshll.u32 %v1339_v13, 16  ;;  %v1554_v13 = vshll.u32 %v1346_v54, 16 }
  0x4a   : > { %9363 = vmatpush3.bf16.msra.mxu0 %v10268_v40  ;;  %v1468_v40 = vshrl.u32 %v1335_v21, 16  ;;  %v1461_v18 = vor.u32 %v1460_v63, %v1457_v62  ;;  %v1512_v21 = vshll.u32 %v1341_v61, 16  ;;  %v1347_v61 = vld [vmem:[%s10510_s28 + $0x58] sm:$0xf]  ;;  %v10729_v62 = vcombine.low %v1419_v8, %v1429_v23 }
  0x4b   : > { %9411 = vmatpush3.bf16.msra.mxu1 %v10270_v41  ;;  %9444 = vmatprep.subr.bf16.mxu0 %v10624_v44  ;;  %v1338_v41 = vld [vmem:[%s10510_s28 + $0x34] sm:$0xf]  ;;  %v1443_v63 = vsel %vm10667_vm2, %v1438_v24, %v10684_v46  ;;  %v1500_v7 = vrot.slane %v1498_v37, 5  ;;  %v1522_v8 = vshll.u32 %v1342_v43, 16  ;;  %v1453_v46 = vsel %vm10667_vm2, %v1448_v34, %v1452_v35  ;;  %v1350_v34 = vld [vmem:[%s10510_s28 + $0x64] sm:$0xf] }
  0x4c   : > { %9285 = vmatmul.mubr.bf16.gmra.mxu0 %v10607_v39  ;;  %9492 = vmatprep.subr.bf16.mxu1 %v10631_v51  ;;  %v1488_v58 = vshll.u32 %v1338_v41, 16  ;;  %v1492_v59 = vshrl.u32 %v1338_v41, 16  ;;  %v1470_v1 = vrot.slane %v1468_v40, 4  ;;  %v1485_v40 = vor.u32 %v1484_v12, %v1481_v11  ;;  %v1352_v43 = vld [vmem:[%s10510_s28 + $0x6c] sm:$0xf] }
  0x4d   : > { %9333 = vmatmul.mubr.bf16.gmra.mxu1 %v10634_v52  ;;  %9288 = vmatprep.mubr.bf16.mxu0 %v10634_v52  ;;  %v1462_v28 = vrot.slane %v1461_v18, 4  ;;  %v10724_v55 = vrot.slane %v1512_v21, 5  ;;  %v1551_v12 = vshrl.u32 %v1346_v54, 16  ;;  %v1560_v17 = vshll.u32 %v1347_v61, 16  ;;  %v10277_v54 = vld [vmem:[%s13369_s1 + $0x1f0] sm:$0xff]  }
  0x4e   : > { %9336 = vmatprep.mubr.bf16.mxu1 %v10637_v53  ;;  %v10709_v14 = vrot.slane %v1488_v58, 5  ;;  %v1494_v15 = vrot.slane %v1492_v59, 4  ;;  %v1471_v3 = vor.u32 %v1470_v1, %v10697_v0  ;;  %v1529_v58 = vrot.slane %v1527_v29, 4 }
  0x4f   : > { %v1532_v59 = vrot.slane %v1530_v30, 5  ;;  %v1536_v1 = vshll.u32 %v1344_v50, 16  ;;  %v1486_v6 = vrot.slane %v1485_v40, 4  ;;  %v1519_v11 = vor.u32 %v1518_v56, %v10724_v55  ;;  %v1349_v30 = vld [vmem:[%s10510_s28 + $0x60] sm:$0xf] }
  0x50   : > { %v1495_v41 = vor.u32 %v1494_v15, %v10709_v14  ;;  %v1472_v45 = vrot.slane %v1471_v3, 4  ;;  %v10745_v3 = vld [vmem:[%s10510_s28 + $0x5c] sm:$0x1]  ;;  %v1564_v21 = vshrl.u32 %v1347_v61, 16  ;;  %v10757_v29 = vrot.slane %v1509_v9, 4 }
  0x51   : > { %v1533_v15 = vor.u32 %v1532_v59, %v1529_v58  ;;  %v10742_v18 = vrot.slane %v1536_v1, 5  ;;  %v1491_v24 = vsel %vm10667_vm2, %v1486_v6, %v10709_v14  ;;  %v10761_v35 = vrot.slane %v1519_v11, 4  ;;  %v1351_v59 = vld [vmem:[%s10510_s28 + $0x68] sm:$0x1]  ;;  %v1356_v9 = vld [vmem:[%s10510_s28 + $0x7c] sm:$0xf] }
  0x52   : > { %v1496_v60 = vrot.slane %v1495_v41, 4  ;;  %v1477_v23 = vsel %vm10667_vm2, %v1472_v45, %v1476_v36  ;;  %v10763_v37 = vrot.slane %v1522_v8, 5  ;;  %v1553_v40 = vrot.slane %v1551_v12, 4  ;;  %v1353_v36 = vld [vmem:[%s10510_s28 + $0x70] sm:$0xf]  ;;  %v10784_v45 = vld [vmem:[%s13369_s1 + $0x128] sm:$0xff]  }
  0x53   : > { %v1556_v41 = vrot.slane %v1554_v13, 5  ;;  %v10767_v47 = vcombine.low %v1443_v63, %v1453_v46  ;;  %v10769_v48 = vrot.slane %v1533_v15, 4  ;;  %v10771_v14 = vrot.slane %v1546_v16, 5 }
  0x54   : > { %9289 = vmatmul.mubr.bf16.gmra.mxu0 %v10637_v53  ;;  %v10773_v50 = vrot.slane %v1560_v17, 5  ;;  %v1566_v57 = vrot.slane %v1564_v21, 4  ;;  %v1570_v58 = vshll.u32 %v10745_v3, 16  ;;  %v1575_v63 = vshrl.u32 %v1349_v30, 16  ;;  %v10279_v17 = vld [vmem:[%s13369_s1 + $0x1e8] sm:$0xff]  }
  0x55   : > { %9337 = vmatmul.mubr.bf16.gmra.mxu1 %v10653_v5  ;;  %9292 = vmatprep.mubr.bf16.mxu0 %v10653_v5  ;;  %v1578_v1 = vshll.u32 %v1349_v30, 16  ;;  %v1557_v6 = vor.u32 %v1556_v41, %v1553_v40  ;;  %v1599_v11 = vshrl.u32 %v1352_v43, 16  ;;  %v1602_v8 = vshll.u32 %v1352_v43, 16  ;;  %v1354_v30 = vld [vmem:[%s10510_s28 + $0x74] sm:$0x1] }
  0x56   : > { %9340 = vmatprep.mubr.bf16.mxu1 %v10658_v10  ;;  %v1608_v12 = vshll.u32 %v1353_v36, 16  ;;  %v1612_v13 = vshrl.u32 %v1353_v36, 16 }
  0x57   : > { %v1580_v3 = vrot.slane %v1578_v1, 5  ;;  %v1604_v40 = vrot.slane %v1602_v8, 5  ;;  %v10827_v36 = vrot.slane %v1557_v6, 4  ;;  %v1359_v6 = vld [vmem:[%s10510_s28 + $0x88] sm:$0xf] }
  0x58   : > { %v10824_v41 = vrot.slane %v1608_v12, 5  ;;  %v1614_v43 = vrot.slane %v1612_v13, 4  ;;  %v1361_v12 = vld [vmem:[%s10510_s28 + $0x90] sm:$0xf] }
  0x5a   : > { %v1615_v8 = vor.u32 %v1614_v43, %v10824_v41 }
  0x5c   : > { %9293 = vmatmul.mubr.bf16.gmra.mxu0 %v10658_v10 }
  0x5d   : > { %9341 = vmatmul.mubr.bf16.gmra.mxu1 %v10678_v42  ;;  %9296 = vmatprep.mubr.bf16.mxu0 %v10678_v42 }
  0x5e   : > { %9344 = vmatprep.mubr.bf16.mxu1 %v10688_v49 }
  0x64   : > { %9297 = vmatmul.mubr.bf16.gmra.mxu0 %v10688_v49 }
  0x65   : > { %9345 = vmatmul.mubr.bf16.gmra.mxu1 %v10718_v31  ;;  %9364 = vmatprep.mubr.bf16.mxu0 %v10536_v19  ;;  %v1467_v19 = vsel %vm10667_vm2, %v1462_v28, %v10697_v0  ;;  %v1501_v0 = vsel %vm10667_vm2, %v1496_v60, %v1500_v7  ;;  %v1584_v60 = vshll.u32 %v1350_v34, 16  ;;  %v1588_v7 = vshrl.u32 %v1350_v34, 16 }
  0x66   : > { %9412 = vmatprep.mubr.bf16.mxu1 %v8304_v2  ;;  %v1542_v2 = vrot.slane %v1540_v4, 4  ;;  %v10779_v28 = vcombine.low %v1467_v19, %v1477_v23  ;;  %v10791_v61 = vcombine.low %v1491_v24, %v1501_v0  ;;  %v1355_v4 = vld [vmem:[%s10510_s28 + $0x78] sm:$0xf]  ;;  %v1567_v19 = vor.u32 %v1566_v57, %v10773_v50 }
  0x67   : > { %v1623_v15 = vshrl.u32 %v1355_v4, 16  ;;  %v1626_v16 = vshll.u32 %v1355_v4, 16  ;;  %v10818_v21 = vrot.slane %v1584_v60, 5  ;;  %v1590_v23 = vrot.slane %v1588_v7, 4  ;;  %v1358_v4 = vld [vmem:[%s10510_s28 + $0x84] sm:$0xf] }
  0x68   : > { %v1543_v56 = vor.u32 %v1542_v2, %v10742_v18  ;;  %v1577_v2 = vrot.slane %v1575_v63, 4  ;;  %v1632_v24 = vshll.u32 %v1356_v9, 16  ;;  %v1636_v0 = vshrl.u32 %v1356_v9, 16  ;;  %v10282_v9 = vld [vmem:[%s13369_s1 + $0x1d8] sm:$0xff]  }
  0x69   : > { %v1601_v34 = vrot.slane %v1599_v11, 4  ;;  %v1625_v57 = vrot.slane %v1623_v15, 4  ;;  %v1362_v15 = vld [vmem:[%s10510_s28 + $0x94] sm:$0xf] }
  0x6a   : > { %v1544_v46 = vrot.slane %v1543_v56, 4  ;;  %v1357_v56 = vld [vmem:[%s10510_s28 + $0x80] sm:$0x1]  ;;  %v10849_v60 = vrot.slane %v1632_v24, 5  ;;  %v1638_v7 = vrot.slane %v1636_v0, 4  ;;  %v1671_v24 = vshrl.u32 %v1361_v12, 16 }
  0x6b   : > { %v1605_v11 = vor.u32 %v1604_v40, %v1601_v34  ;;  %v1674_v34 = vshll.u32 %v1361_v12, 16  ;;  %v1680_v40 = vshll.u32 %v1362_v15, 16 }
  0x6c   : > { %9365 = vmatmul.mubr.bf16.vlgmr.msra.gmra.mxu0 %v10539_v20  ;;  %v1515_v20 = vsel %vm10667_vm2, %v10757_v29, %v10724_v55  ;;  %v1549_v63 = vsel %vm10667_vm2, %v1544_v46, %v10771_v14  ;;  %v1618_v14 = vshll.u32 %v1354_v30, 16  ;;  %v1642_v46 = vshll.u32 %v1357_v56, 16  ;;  %v10283_v29 = vld [vmem:[%s13369_s1 + $0x1d0] sm:$0xff]   ;;  %v10893_v30 = vld [vmem:[%s10510_s28 + $0x98] sm:$0x1] }
  0x6d   : > { %9445 = vmatpush3.bf16.msra.mxu0 %v10624_v44  ;;  %9413 = vmatmul.mubr.bf16.vlgmr.msra.gmra.mxu1 %v10729_v62  ;;  %v1525_v44 = vsel %vm10667_vm2, %v10761_v35, %v10763_v37  ;;  %v1639_v55 = vor.u32 %v1638_v7, %v10849_v60 }
  0x6e   : > { %9368 = vmatprep.mubr.bf16.mxu0 %v10560_v26  ;;  %9446 = vmatprep.subr.bf16.mxu0 %v10272_v22  ;;  %v1539_v26 = vsel %vm10667_vm2, %v10769_v48, %v10742_v18  ;;  %v10274_v18 = vld [vmem:[%s13369_s1 + $0x120] sm:$0xff]   ;;  %v10829_v48 = vrot.slane %v1570_v58, 5  ;;  %v1581_v58 = vor.u32 %v1580_v3, %v1577_v2  ;;  %v10875_v2 = vld [vmem:[%s10510_s28 + $0x8c] sm:$0x1]  ;;  %v1650_v3 = vshll.u32 %v1358_v4, 16 }
  0x6f   : > { %9416 = vmatprep.mubr.bf16.mxu1 %v10767_v47  ;;  %9493 = vmatpush3.bf16.msra.mxu1 %v10631_v51  ;;  %v1594_v51 = vshll.u32 %v1351_v59, 16  ;;  %v1628_v59 = vrot.slane %v1626_v16, 5  ;;  %v10867_v16 = vcombine.low %v1515_v20, %v1525_v44  ;;  %v10883_v20 = vrot.slane %v1605_v11, 4 }
  0x70   : > { %9494 = vmatprep.subr.bf16.mxu1 %v10277_v54  ;;  %v1582_v35 = vrot.slane %v1581_v58, 4  ;;  %v10885_v44 = vrot.slane %v1615_v8, 4  ;;  %v10890_v0 = vrot.slane %v1642_v46, 5  ;;  %v1652_v56 = vrot.slane %v1650_v3, 5  ;;  %v1365_v8 = vld [vmem:[%s10510_s28 + $0xa0] sm:$0xf] }
  0x71   : > { %9447 = vmatpush3.bf16.msra.mxu0 %v10272_v22  ;;  %v10280_v22 = vld [vmem:[%s13369_s1 + $0x1e0] sm:$0xff]   ;;  %v10842_v1 = vrot.slane %v1594_v51, 5  ;;  %v1629_v13 = vor.u32 %v1628_v59, %v1625_v57  ;;  %v1656_v51 = vshll.u32 %v1359_v6, 16  ;;  %v1684_v57 = vshrl.u32 %v1362_v15, 16 }
  0x72   : > { %9448 = vmatprep.subr.bf16.mxu0 %v10784_v45  ;;  %v1563_v59 = vsel %vm10667_vm2, %v10827_v36, %v10773_v50  ;;  %v1666_v58 = vshll.u32 %v10875_v2, 16  ;;  %v1587_v50 = vsel %vm10667_vm2, %v1582_v35, %v10818_v21  ;;  %v1690_v11 = vshll.u32 %v10893_v30, 16 }
  0x73   : > { %9495 = vmatpush3.bf16.msra.mxu1 %v10277_v54  ;;  %v10837_v54 = vrot.slane %v1567_v19, 4  ;;  %v10869_v19 = vcombine.low %v1539_v26, %v1549_v63  ;;  %v1660_v26 = vshrl.u32 %v1359_v6, 16  ;;  %v1640_v63 = vrot.slane %v1639_v55, 4  ;;  %v10286_v6 = vld [vmem:[%s13369_s1 + $0x1c8] sm:$0xff]  }
  0x74   : > { %9369 = vmatmul.mubr.bf16.gmra.mxu0 %v10563_v27  ;;  %9496 = vmatprep.subr.bf16.mxu1 %v10279_v17  ;;  %v10275_v27 = vld [vmem:[%s13369_s1 + $0x118] sm:$0xff]   ;;  %v1686_v7 = vrot.slane %v1684_v57, 4  ;;  %v1611_v46 = vsel %vm10667_vm2, %v10883_v20, %v10824_v41  ;;  %v1668_v20 = vrot.slane %v1666_v58, 5 }
  0x75   : > { %9417 = vmatmul.mubr.bf16.gmra.mxu1 %v10779_v28  ;;  %9372 = vmatprep.mubr.bf16.mxu0 %v10582_v32  ;;  %v1591_v32 = vor.u32 %v1590_v23, %v10818_v21  ;;  %v10877_v23 = vrot.slane %v1618_v14, 5  ;;  %v10285_v21 = vld [vmem:[%s13369_s1 + $0x100] sm:$0xff]  }
  0x76   : > { %9420 = vmatprep.mubr.bf16.mxu1 %v10791_v61  ;;  %9449 = vmatpush3.bf16.msra.mxu0 %v10784_v45  ;;  %v1647_v45 = vshrl.u32 %v1358_v4, 16  ;;  %v1364_v4 = vld [vmem:[%s10510_s28 + $0x9c] sm:$0xf] }
  0x77   : > { %9450 = vmatprep.subr.bf16.mxu0 %v10274_v18  ;;  %9497 = vmatpush3.bf16.msra.mxu1 %v10279_v17  ;;  %v10278_v17 = vld [vmem:[%s13369_s1 + $0x110] sm:$0xff]   ;;  %v1592_v37 = vrot.slane %v1591_v32, 4  ;;  %v10922_v32 = vrot.slane %v1680_v40, 5  ;;  %v1695_v15 = vshrl.u32 %v1364_v4, 16  ;;  %v1698_v2 = vshll.u32 %v1364_v4, 16 }
  0x78   : > { %9498 = vmatprep.subr.bf16.mxu1 %v10280_v22  ;;  %v1649_v43 = vrot.slane %v1647_v45, 4 }
  0x79   : > { %v1597_v36 = vsel %vm10667_vm2, %v1592_v37, %v10842_v1  ;;  %v1367_v1 = vld [vmem:[%s10510_s28 + $0xa8] sm:$0xf]  ;;  %v1687_v35 = vor.u32 %v1686_v7, %v10922_v32  ;;  %v1704_v37 = vshll.u32 %v1365_v8, 16  ;;  %v1700_v57 = vrot.slane %v1698_v2, 5  ;;  %v1372_v2 = vld [vmem:[%s10510_s28 + $0xbc] sm:$0x1] }
  0x7a   : > { %9451 = vmatpush3.bf16.msra.mxu0 %v10274_v18  ;;  %v10888_v18 = vrot.slane %v1629_v13, 4  ;;  %v10932_v12 = vcombine.low %v1587_v50, %v1597_v36  ;;  %v1368_v13 = vld [vmem:[%s10510_s28 + $0xac] sm:$0xf]  ;;  %v1653_v45 = vor.u32 %v1652_v56, %v1649_v43  ;;  %v1722_v55 = vshll.u32 %v1367_v1, 16  ;;  %v1366_v56 = vld [vmem:[%s10510_s28 + $0xa4] sm:$0x1] }
  0x7b   : > { %9452 = vmatprep.subr.bf16.mxu0 %v10275_v27  ;;  %9499 = vmatpush3.bf16.msra.mxu1 %v10280_v22  ;;  %v10897_v22 = vrot.slane %v1656_v51, 5  ;;  %v1688_v43 = vrot.slane %v1687_v35, 4 }
  0x7c   : > { %9373 = vmatmul.mubr.bf16.gmra.mxu0 %v10585_v33  ;;  %9500 = vmatprep.subr.bf16.mxu1 %v10282_v9  ;;  %v10281_v33 = vld [vmem:[%s13369_s1 + $0x108] sm:$0xff]   ;;  %v1635_v3 = vsel %vm10667_vm2, %v10888_v18, %v10849_v60  ;;  %v1719_v60 = vshrl.u32 %v1367_v1, 16  ;;  %v1724_v4 = vrot.slane %v1722_v55, 5 }
  0x7d   : > { %9421 = vmatmul.mubr.bf16.gmra.mxu1 %v10867_v16  ;;  %9376 = vmatprep.mubr.bf16.mxu0 %v10604_v38  ;;  %v1573_v38 = vsel %vm10667_vm2, %v10837_v54, %v10829_v48  ;;  %v1662_v48 = vrot.slane %v1660_v26, 4  ;;  %v1673_v54 = vrot.slane %v1671_v24, 4  ;;  %v10962_v26 = vld [vmem:[%s13369_s1 + $0xb8] sm:$0xff]  }
  0x7e   : > { %9424 = vmatprep.mubr.bf16.mxu1 %v10869_v19  ;;  %9453 = vmatpush3.bf16.msra.mxu0 %v10275_v27  ;;  %v1676_v27 = vrot.slane %v1674_v34, 5  ;;  %v10924_v14 = vcombine.low %v1563_v59, %v1573_v38  ;;  %v10967_v24 = vld [vmem:[%s13369_s1 + $0x178] sm:$0xff]   ;;  %v1692_v34 = vrot.slane %v1690_v11, 5  ;;  %v1370_v59 = vld [vmem:[%s10510_s28 + $0xb4] sm:$0xf]  ;;  %v1706_v38 = vrot.slane %v1704_v37, 5 }
  0x7f   : > { %9454 = vmatprep.subr.bf16.mxu0 %v10278_v17  ;;  %9501 = vmatpush3.bf16.msra.mxu1 %v10282_v9  ;;  %v10287_v9 = vld [vmem:[%s13369_s1 + $0x1c0] sm:$0xff]   ;;  %v1663_v51 = vor.u32 %v1662_v48, %v10897_v22  ;;  %v1721_v58 = vrot.slane %v1719_v60, 4  ;;  %v1743_v7 = vshrl.u32 %v1370_v59, 16  ;;  %v1746_v11 = vshll.u32 %v1370_v59, 16  ;;  %v1376_v59 = vld [vmem:[%s10510_s28 + $0xcc] sm:$0xf] }
  0x80   : > { %9502 = vmatprep.subr.bf16.mxu1 %v10283_v29  ;;  %v1677_v41 = vor.u32 %v1676_v27, %v1673_v54  ;;  %v1369_v27 = vld [vmem:[%s10510_s28 + $0xb0] sm:$0x1] }
  0x81   : > { %v1664_v30 = vrot.slane %v1663_v51, 4 }
  0x82   : > { %9455 = vmatpush3.bf16.msra.mxu0 %v10278_v17  ;;  %v1621_v17 = vsel %vm10667_vm2, %v10885_v44, %v10877_v23  ;;  %v1708_v23 = vshrl.u32 %v1365_v8, 16  ;;  %v1732_v44 = vshrl.u32 %v1368_v13, 16  ;;  %v1678_v40 = vrot.slane %v1677_v41, 4 }
  0x83   : > { %9456 = vmatprep.subr.bf16.mxu0 %v10281_v33  ;;  %9503 = vmatpush3.bf16.msra.mxu1 %v10283_v29  ;;  %v1654_v29 = vrot.slane %v1653_v45, 4  ;;  %v10969_v18 = vcombine.low %v1611_v46, %v1621_v17  ;;  %v1669_v54 = vsel %vm10667_vm2, %v1664_v30, %v1668_v20  ;;  %v1725_v46 = vor.u32 %v1724_v4, %v1721_v58 }
  0x84   : > { %9377 = vmatmul.mubr.bf16.gmra.mxu0 %v10607_v39  ;;  %9504 = vmatprep.subr.bf16.mxu1 %v10286_v6  ;;  %v1645_v39 = vsel %vm10667_vm2, %v1640_v63, %v10890_v0  ;;  %v1710_v63 = vrot.slane %v1708_v23, 4  ;;  %v1734_v36 = vrot.slane %v1732_v44, 4  ;;  %v1745_v17 = vrot.slane %v1743_v7, 4 }
  0x85   : > { %9425 = vmatmul.mubr.bf16.gmra.mxu1 %v10924_v14  ;;  %9380 = vmatprep.mubr.bf16.mxu0 %v10634_v52  ;;  %v1728_v52 = vshll.u32 %v1368_v13, 16  ;;  %v10971_v0 = vcombine.low %v1635_v3, %v1645_v39  ;;  %v1659_v48 = vsel %vm10667_vm2, %v1654_v29, %v10897_v22  ;;  %v1714_v13 = vshll.u32 %v1366_v56, 16 }
  0x86   : > { %9428 = vmatprep.mubr.bf16.mxu1 %v10932_v12  ;;  %9457 = vmatpush3.bf16.msra.mxu0 %v10281_v33  ;;  %v1697_v33 = vrot.slane %v1695_v15, 4  ;;  %v1711_v1 = vor.u32 %v1710_v63, %v1706_v38  ;;  %v1738_v15 = vshll.u32 %v1369_v27, 16  ;;  %v1748_v3 = vrot.slane %v1746_v11, 5 }
  0x87   : > { %9458 = vmatprep.subr.bf16.mxu0 %v10285_v21  ;;  %9505 = vmatpush3.bf16.msra.mxu1 %v10286_v6  ;;  %v1371_v6 = vld [vmem:[%s10510_s28 + $0xb8] sm:$0xf]  ;;  %v1730_v50 = vrot.slane %v1728_v52, 5  ;;  %v1716_v37 = vrot.slane %v1714_v13, 5  ;;  %v1726_v23 = vrot.slane %v1725_v46, 4  ;;  %v1762_v52 = vshll.u32 %v1372_v2, 16 }
  0x88   : > { %9506 = vmatprep.subr.bf16.mxu1 %v10287_v9  ;;  %v1752_v8 = vshll.u32 %v1371_v6, 16  ;;  %v1701_v22 = vor.u32 %v1700_v57, %v1697_v33  ;;  %v1740_v55 = vrot.slane %v1738_v15, 5  ;;  %v1749_v29 = vor.u32 %v1748_v3, %v1745_v17  ;;  %v1378_v13 = vld [vmem:[%s10510_s28 + $0xd4] sm:$0x1] }
  0x89   : > { %v1735_v45 = vor.u32 %v1734_v36, %v1730_v50  ;;  %v1764_v57 = vrot.slane %v1762_v52, 5 }
  0x8a   : > { %9459 = vmatpush3.bf16.msra.mxu0 %v10285_v21  ;;  %v1756_v21 = vshrl.u32 %v1371_v6, 16  ;;  %v1754_v51 = vrot.slane %v1752_v8, 5  ;;  %v1702_v35 = vrot.slane %v1701_v22, 4  ;;  %v1750_v56 = vrot.slane %v1749_v29, 4  ;;  %v10284_v8 = vld [vmem:[%s10510_s28 + $0xcc] sm:$0xff]  }
  0x8b   : > { %9507 = vmatpush3.bf16.msra.mxu1 %v10287_v9  ;;  %9540 = vmatprep.subr.bf16.mxu0 %v10962_v26  ;;  %v1693_v9 = vsel %vm10667_vm2, %v1688_v43, %v1692_v34  ;;  %v1736_v60 = vrot.slane %v1735_v45, 4  ;;  %v11056_v29 = vld [vmem:[%s10510_s28 + $0x14] sm:$0x1] }
  0x8c   : > { %9381 = vmatmul.mubr.bf16.gmra.mxu0 %v10637_v53  ;;  %9588 = vmatprep.subr.bf16.mxu1 %v10967_v24  ;;  %v1683_v53 = vsel %vm10667_vm2, %v1678_v40, %v10922_v32  ;;  %v1758_v39 = vrot.slane %v1756_v21, 4  ;;  %v1712_v32 = vrot.slane %v1711_v1, 4  ;;  %v1707_v44 = vsel %vm10667_vm2, %v1702_v35, %v1706_v38  ;;  %v1373_v40 = vld [vmem:[%s10510_s28 + $0xc0] sm:$0xf]  ;;  %v1377_v38 = vld [vmem:[%s10510_s28 + $0xd0] sm:$0xf] }
  0x8d   : > { %9429 = vmatmul.mubr.bf16.gmra.mxu1 %v10969_v18  ;;  %9384 = vmatprep.mubr.bf16.mxu0 %v10653_v5  ;;  %v10993_v5 = vcombine.low %v1659_v48, %v1669_v54  ;;  %v10996_v41 = vcombine.low %v1683_v53, %v1693_v9  ;;  %v1741_v34 = vsel %vm10667_vm2, %v1736_v60, %v1740_v55  ;;  %v2153_v58 = vshrl.u32 %v1373_v40, 16  ;;  %v1375_v1 = vld [vmem:[%s10510_s28 + $0xc8] sm:$0x1]  ;;  %v11037_v35 = vld [vmem:[%s10510_s28] sm:$0xe] }
  0x8e   : > { %9432 = vmatprep.mubr.bf16.mxu1 %v10971_v0  ;;  %v1759_v20 = vor.u32 %v1758_v39, %v1754_v51  ;;  %v1717_v30 = vsel %vm10667_vm2, %v1712_v32, %v1716_v37  ;;  %v2156_v4 = vshll.u32 %v1373_v40, 16  ;;  %v2506_v48 = vshll.u32 %v1376_v59, 16  ;;  %v11043_v37 = vld [vmem:[%s10510_s28 + $0x4] sm:$0xf]  ;;  %v11049_v60 = vld [vmem:[%s10510_s28 + $0xc] sm:$0xe] }
  0x8f   : > { %v11012_v43 = vcombine.low %v1707_v44, %v1717_v30  ;;  %v2512_v54 = vshll.u32 %v1377_v38, 16  ;;  %v2516_v27 = vshrl.u32 %v1377_v38, 16  ;;  %v1755_v7 = vsel %vm10667_vm2, %v1750_v56, %v1754_v51  ;;  %v11053_v55 = vld [vmem:[%s10510_s28 + $0x10] sm:$0xf]  ;;  %v11080_v38 = vld [vmem:[%s10510_s28 + $0x1c] sm:$0xf] }
  0x90   : > { %v1760_v33 = vrot.slane %v1759_v20, 4  ;;  %v2155_v21 = vrot.slane %v2153_v58, 4  ;;  %v2508_v9 = vrot.slane %v2506_v48, 5  ;;  %v2172_v3 = vshll.u32 %v1375_v1, 16  ;;  %v10289_v30 = vld [vmem:[%s13369_s1 + $0xb0] sm:$0xff]   ;;  %v10290_v48 = vld [vmem:[%s13369_s1 + $0xa8] sm:$0xff]  }
  0x91   : > { %v11033_v45 = vrot.slane %v2512_v54, 5  ;;  %v2518_v15 = vrot.slane %v2516_v27, 4  ;;  %v2522_v51 = vshll.u32 %v1378_v13, 16  ;;  %v2959_v40 = vrot.slane %v11043_v37, 5  ;;  %v10294_v58 = vld [vmem:[%s13369_s1 + $0x170] sm:$0xff]  }
  0x92   : > { %v1765_v11 = vsel %vm10667_vm2, %v1760_v33, %v1764_v57  ;;  %v11062_v52 = vrot.slane %v2172_v3, 5  ;;  %v8379_v33 = vrot.slane %v11049_v60, 9  ;;  %v2966_v57 = vrot.slane %v11053_v55, 5  ;;  %v11132_v13 = vld [vmem:[%s10510_s28 + $0x3c] sm:$0xe] }
  0x93   : > { %v11031_v46 = vcombine.low %v1755_v7, %v1765_v11  ;;  %v2519_v32 = vor.u32 %v2518_v15, %v11033_v45  ;;  %v11064_v44 = vrot.slane %v2522_v51, 5  ;;  %v11103_v54 = vrot.slane %v2959_v40, 4  ;;  %v11107_v7 = vld [vmem:[%s10510_s28 + $0x24] sm:$0xe]  ;;  %v11110_v11 = vld [vmem:[%s10510_s28 + $0x2c] sm:$0x1] }
  0x94   : > { %9385 = vmatmul.mubr.bf16.gmra.mxu0 %v10658_v10  ;;  %v1731_v10 = vsel %vm10667_vm2, %v1726_v23, %v1730_v50  ;;  %v2503_v50 = vshrl.u32 %v1376_v59, 16  ;;  %v11046_v23 = vld [vmem:[%s10510_s28 + $0x8] sm:$0x1]  ;;  %v2969_v59 = vrot.slane %v11056_v29, 5  ;;  %v2973_v27 = vrot.slane %v11080_v38, 5 }
  0x95   : > { %9433 = vmatmul.mubr.bf16.gmra.mxu1 %v10993_v5  ;;  %9388 = vmatprep.mubr.bf16.mxu0 %v10678_v42  ;;  %v1374_v42 = vld [vmem:[%s10510_s28 + $0xc4] sm:$0xf]  ;;  %v11015_v63 = vcombine.low %v1731_v10, %v1741_v34  ;;  %v8378_v34 = vrot.slane %v11037_v35, 9  ;;  %v11074_v56 = vrot.slane %v2519_v32, 4  ;;  %v11150_v3 = vld [vmem:[%s10510_s28 + $0x58] sm:$0xf]  ;;  %v2967_v35 = vsel %vm11218_vm5, %v8379_v33, %v2966_v57 }
  0x96   : > { %9436 = vmatprep.mubr.bf16.mxu1 %v10996_v41  ;;  %v2162_v6 = vshll.u32 %v1374_v42, 16  ;;  %v2166_v36 = vshrl.u32 %v1374_v42, 16  ;;  %v2962_v42 = vrot.slane %v11046_v23, 5  ;;  %v11143_v15 = vrot.slane %v2973_v27, 4  ;;  %v11274_v37 = vld [vmem:[%s10510_s28 + $0x70] sm:$0xf] }
  0x97   : > { %v13388_v38 = vrot.slane %v11110_v11, 5 }
  0x98   : > { %v11027_v53 = vrot.slane %v2162_v6, 5  ;;  %v2168_v22 = vrot.slane %v2166_v36, 4  ;;  %v11089_v6 = vld [vmem:[%s10510_s28 + $0x28] sm:$0xf]  ;;  %v11092_v36 = vld [vmem:[%s10510_s28 + $0x20] sm:$0x1] }
  0x9a   : > { %v2169_v17 = vor.u32 %v2168_v22, %v11027_v53 }
  0x9c   : > { %9389 = vmatmul.mubr.bf16.gmra.mxu0 %v10688_v49  ;;  %v2158_v49 = vrot.slane %v2156_v4, 5  ;;  %v11086_v4 = vld [vmem:[%s10510_s28 + $0x18] sm:$0xe] }
  0x9d   : > { %9437 = vmatmul.mubr.bf16.gmra.mxu1 %v11012_v43  ;;  %9392 = vmatprep.mubr.bf16.mxu0 %v10718_v31  ;;  %v2505_v31 = vrot.slane %v2503_v50, 4  ;;  %v11095_v50 = vld [vmem:[%s10510_s28 + $0x34] sm:$0xf]  ;;  %v8380_v22 = vrot.slane %v11086_v4, 9 }
  0x9e   : > { %9440 = vmatprep.mubr.bf16.mxu1 %v11015_v63  ;;  %v2159_v2 = vor.u32 %v2158_v49, %v2155_v21  ;;  %v11120_v21 = vld [vmem:[%s10510_s28 + $0x30] sm:$0xe]  ;;  %v11123_v49 = vld [vmem:[%s10510_s28 + $0x38] sm:$0x1]  ;;  %v2987_v1 = vrot.slane %v11095_v50, 5 }
  0x9f   : > { %v2509_v39 = vor.u32 %v2508_v9, %v2505_v31  ;;  %v2990_v32 = vrot.slane %v11123_v49, 5  ;;  %v10292_v9 = vld [vmem:[%s13369_s1 + $0x98] sm:$0xff]   ;;  %v2974_v33 = vsel %vm11218_vm5, %v8380_v22, %v2973_v27 }
  0xa0   : > { %v11058_v20 = vrot.slane %v2159_v2, 4  ;;  %v10297_v2 = vld [vmem:[%s13369_s1 + $0x160] sm:$0xff]  }
  0xa1   : > { %v11069_v10 = vrot.slane %v2509_v39, 4  ;;  %v3008_v39 = vrot.slane %v11150_v3, 5 }
  0xa3   : > { %v11297_v29 = vrot.slane %v3008_v39, 4 }
  0xa4   : > { %9393 = vmatmul.mubr.bf16.gmra.mxu0 %v10284_v8  ;;  %v13376_v8 = vrot.slane %v11089_v6, 5 }
  0xa5   : > { %9441 = vmatmul.mubr.bf16.gmra.mxu1 %v11031_v46  ;;  %9460 = vmatprep.mubr.bf16.mxu0 %v10729_v62  ;;  %v11060_v62 = vrot.slane %v2169_v17, 4  ;;  %v11147_v17 = vld [vmem:[%s10510_s28 + $0x4c] sm:$0xf] }
  0xa6   : > { %9508 = vmatprep.mubr.bf16.mxu1 %v10767_v47  ;;  %v11157_v51 = vrot.slane %v13376_v8, 4  ;;  %v3001_v8 = vrot.slane %v11147_v17, 5 }
  0xa8   : > { %v2984_v4 = vsel %vm11218_vm5, %v11157_v51, %v13388_v38  ;;  %v2886_v38 = vld [vmem:[%s10510_s28 + $0x88] sm:$0xf] }
  0xac   : > { %9461 = vmatmul.mubr.bf16.vlgmr.msra.gmra.mxu0 %v10767_v47  ;;  %v11116_v47 = vrot.slane %v2966_v57, 4  ;;  %v13385_v57 = vrot.slane %v11092_v36, 5  ;;  %v10305_v36 = vld [vmem:[%s13369_s1 + $0x230] sm:$0xff]  }
  0xad   : > { %9541 = vmatpush3.bf16.msra.mxu0 %v10962_v26  ;;  %9509 = vmatmul.mubr.bf16.vlgmr.msra.gmra.mxu1 %v10779_v28  ;;  %v10296_v26 = vld [vmem:[%s13369_s1 + $0x168] sm:$0xff]  }
  0xae   : > { %9464 = vmatprep.mubr.bf16.mxu0 %v10779_v28  ;;  %9542 = vmatprep.subr.bf16.mxu0 %v10289_v30  ;;  %v11139_v28 = vld [vmem:[%s10510_s28 + $0x40] sm:$0xf]  ;;  %v2970_v25 = vsel %vm11218_vm5, %v11116_v47, %v2969_v59  ;;  %v2977_v59 = vsel %vm11218_vm5, %v11143_v15, %v13385_v57  ;;  %v13387_v47 = vrot.slane %v11107_v7, 9  ;;  %v10306_v7 = vld [vmem:[%s13369_s1 + $0x228] sm:$0xff]  }
  0xaf   : > { %9512 = vmatprep.mubr.bf16.mxu1 %v10791_v61  ;;  %9589 = vmatpush3.bf16.msra.mxu1 %v10967_v24  ;;  %v10291_v24 = vld [vmem:[%s13369_s1 + $0xa0] sm:$0xff]   ;;  %v2994_v31 = vrot.slane %v11139_v28, 5  ;;  %v11327_v27 = vcombine.low %v2974_v33, %v2977_v59  ;;  %v2883_v59 = vld [vmem:[%s10510_s28 + $0x7c] sm:$0xf] }
  0xb0   : > { %9590 = vmatprep.subr.bf16.mxu1 %v10294_v58  ;;  %v10307_v28 = vld [vmem:[%s13369_s1 + $0x220] sm:$0xff]  }
  0xb1   : > { %9543 = vmatpush3.bf16.msra.mxu0 %v10289_v30  ;;  %v11167_v30 = vrot.slane %v2987_v1, 4 }
  0xb2   : > { %9544 = vmatprep.subr.bf16.mxu0 %v10290_v48 }
  0xb3   : > { %9591 = vmatpush3.bf16.msra.mxu1 %v10294_v58  ;;  %v10299_v58 = vld [vmem:[%s13369_s1 + $0x158] sm:$0xff]  }
  0xb4   : > { %9465 = vmatmul.mubr.bf16.gmra.mxu0 %v10791_v61  ;;  %9592 = vmatprep.subr.bf16.mxu1 %v10296_v26  ;;  %v10295_v61 = vld [vmem:[%s13369_s1 + $0x90] sm:$0xff]  }
  0xb5   : > { %9513 = vmatmul.mubr.bf16.gmra.mxu1 %v10867_v16  ;;  %9468 = vmatprep.mubr.bf16.mxu0 %v10867_v16  ;;  %v10300_v16 = vld [vmem:[%s13369_s1 + $0x150] sm:$0xff]  }
  0xb6   : > { %9516 = vmatprep.mubr.bf16.mxu1 %v10869_v19  ;;  %9545 = vmatpush3.bf16.msra.mxu0 %v10290_v48  ;;  %v10298_v48 = vld [vmem:[%s13369_s1 + $0x88] sm:$0xff]  }
  0xb7   : > { %9546 = vmatprep.subr.bf16.mxu0 %v10291_v24  ;;  %9593 = vmatpush3.bf16.msra.mxu1 %v10296_v26  ;;  %v10302_v26 = vld [vmem:[%s13369_s1 + $0x148] sm:$0xff]  }
  0xb8   : > { %9594 = vmatprep.subr.bf16.mxu1 %v10297_v2 }
  0xba   : > { %9547 = vmatpush3.bf16.msra.mxu0 %v10291_v24  ;;  %v11239_v24 = vld [vmem:[%s10510_s28 + $0x50] sm:$0x1] }
  0xbb   : > { %9548 = vmatprep.subr.bf16.mxu0 %v10292_v9  ;;  %9595 = vmatpush3.bf16.msra.mxu1 %v10297_v2  ;;  %v3004_v23 = vrot.slane %v11239_v24, 5  ;;  %v2876_v24 = vld [vmem:[%s10510_s28 + $0x60] sm:$0xe] }
  0xbc   : > { %9469 = vmatmul.mubr.bf16.gmra.mxu0 %v10869_v19  ;;  %9596 = vmatprep.subr.bf16.mxu1 %v10299_v58  ;;  %v10301_v19 = vld [vmem:[%s13369_s1 + $0x80] sm:$0xff]   ;;  %v8386_v3 = vrot.slane %v2876_v24, 9 }
  0xbd   : > { %9517 = vmatmul.mubr.bf16.gmra.mxu1 %v10924_v14  ;;  %9472 = vmatprep.mubr.bf16.mxu0 %v10924_v14  ;;  %v10303_v14 = vld [vmem:[%s13369_s1 + $0x140] sm:$0xff]  }
  0xbe   : > { %9520 = vmatprep.mubr.bf16.mxu1 %v10932_v12  ;;  %9549 = vmatpush3.bf16.msra.mxu0 %v10292_v9  ;;  %v11210_v9 = vld [vmem:[%s13369_s1 + $0x238] sm:$0xff]  }
  0xbf   : > { %9550 = vmatprep.subr.bf16.mxu0 %v10295_v61  ;;  %9597 = vmatpush3.bf16.msra.mxu1 %v10299_v58  ;;  %v11245_v58 = vld [vmem:[%s10510_s28 + $0x5c] sm:$0x1] }
  0xc0   : > { %9598 = vmatprep.subr.bf16.mxu1 %v10300_v16 }
  0xc2   : > { %9551 = vmatpush3.bf16.msra.mxu0 %v10295_v61  ;;  %v11248_v61 = vld [vmem:[%s10510_s28 + $0x64] sm:$0xf] }
  0xc3   : > { %9552 = vmatprep.subr.bf16.mxu0 %v10298_v48  ;;  %9599 = vmatpush3.bf16.msra.mxu1 %v10300_v16 }
  0xc4   : > { %9473 = vmatmul.mubr.bf16.gmra.mxu0 %v10932_v12  ;;  %9600 = vmatprep.subr.bf16.mxu1 %v10302_v26 }
  0xc5   : > { %9521 = vmatmul.mubr.bf16.gmra.mxu1 %v10969_v18  ;;  %9476 = vmatprep.mubr.bf16.mxu0 %v10969_v18  ;;  %v2165_v18 = vsel %vm10667_vm2, %v11058_v20, %v11027_v53  ;;  %v2960_v53 = vsel %vm11218_vm5, %v8378_v34, %v2959_v40  ;;  %v2515_v20 = vsel %vm10667_vm2, %v11069_v10, %v11033_v45  ;;  %v2996_v45 = vrot.slane %v2994_v31, 4 }
  0xc6   : > { %9524 = vmatprep.mubr.bf16.mxu1 %v10971_v0  ;;  %9553 = vmatpush3.bf16.msra.mxu0 %v10298_v48  ;;  %v3015_v10 = vrot.slane %v11248_v61, 5  ;;  %v3022_v34 = vrot.slane %v11274_v37, 5  ;;  %v13389_v48 = vrot.slane %v11120_v21, 9  ;;  %v2884_v61 = vld [vmem:[%s10510_s28 + $0x80] sm:$0x1] }
  0xc7   : > { %9554 = vmatprep.subr.bf16.mxu0 %v10301_v19  ;;  %9601 = vmatpush3.bf16.msra.mxu1 %v10302_v26 }
  0xc8   : > { %9602 = vmatprep.subr.bf16.mxu1 %v10303_v14  ;;  %v2988_v26 = vsel %vm11218_vm5, %v13389_v48, %v2987_v1  ;;  %v3024_v33 = vrot.slane %v3022_v34, 4  ;;  %v3029_v48 = vrot.slane %v2883_v59, 5 }
  0xca   : > { %9555 = vmatpush3.bf16.msra.mxu0 %v10301_v19  ;;  %v2991_v19 = vsel %vm11218_vm5, %v11167_v30, %v2990_v32  ;;  %v3031_v24 = vrot.slane %v3029_v48, 4 }
  0xcb   : > { %9603 = vmatpush3.bf16.msra.mxu1 %v10303_v14  ;;  %9636 = vmatprep.subr.bf16.mxu0 %v11210_v9  ;;  %v11361_v32 = vcombine.low %v2988_v26, %v2991_v19 }
  0xcc   : > { %9477 = vmatmul.mubr.bf16.gmra.mxu0 %v10971_v0  ;;  %v2175_v0 = vsel %vm10667_vm2, %v11060_v62, %v11062_v52  ;;  %v11291_v62 = vrot.slane %v3001_v8, 4 }
  0xcd   : > { %9525 = vmatmul.mubr.bf16.gmra.mxu1 %v10993_v5  ;;  %9480 = vmatprep.mubr.bf16.mxu0 %v10993_v5  ;;  %v2869_v5 = vld [vmem:[%s10510_s28 + $0x44] sm:$0x1]  ;;  %v8344_v2 = vcombine.low %v2165_v18, %v2175_v0 }
  0xce   : > { %9528 = vmatprep.mubr.bf16.mxu1 %v10996_v41  ;;  %v2997_v60 = vrot.slane %v2869_v5, 5 }
  0xd0   : > { %v2998_v21 = vsel %vm11218_vm5, %v2996_v45, %v2997_v60  ;;  %v3005_v45 = vsel %vm11218_vm5, %v11291_v62, %v3004_v23  ;;  %v2879_v60 = vld [vmem:[%s10510_s28 + $0x6c] sm:$0xe] }
  0xd4   : > { %9481 = vmatmul.mubr.bf16.gmra.mxu0 %v10996_v41  ;;  %v11236_v41 = vld [vmem:[%s10510_s28 + $0x48] sm:$0xe] }
  0xd5   : > { %9529 = vmatmul.mubr.bf16.gmra.mxu1 %v11012_v43  ;;  %9484 = vmatprep.mubr.bf16.mxu0 %v11012_v43  ;;  %v11242_v43 = vld [vmem:[%s10510_s28 + $0x54] sm:$0xe]  ;;  %v8384_v55 = vrot.slane %v11236_v41, 9 }
  0xd6   : > { %9532 = vmatprep.mubr.bf16.mxu1 %v11015_v63  ;;  %v8385_v52 = vrot.slane %v11242_v43, 9 }
  0xdc   : > { %9485 = vmatmul.mubr.bf16.gmra.mxu0 %v11015_v63  ;;  %v2525_v63 = vsel %vm10667_vm2, %v11074_v56, %v11064_v44  ;;  %v3011_v44 = vrot.slane %v11245_v58, 5  ;;  %v8411_v56 = vcombine.low %v2967_v35, %v2970_v25  ;;  %v3002_v25 = vsel %vm11218_vm5, %v8384_v55, %v3001_v8 }
  0xdd   : > { %9533 = vmatmul.mubr.bf16.gmra.mxu1 %v11031_v46  ;;  %9488 = vmatprep.mubr.bf16.mxu0 %v11031_v46  ;;  %v2963_v46 = vsel %vm11218_vm5, %v11103_v54, %v2962_v42  ;;  %v8369_v40 = vcombine.low %v2515_v20, %v2525_v63  ;;  %v13386_v54 = vrot.slane %v11089_v6, 5  ;;  %v2878_v20 = vld [vmem:[%s10510_s28 + $0x68] sm:$0x1]  ;;  %v10308_v63 = vld [vmem:[%s13369_s1 + $0x218] sm:$0xff]   ;;  %v11407_v62 = vcombine.low %v3002_v25, %v3005_v45  ;;  %v2889_v45 = vld [vmem:[%s10510_s28 + $0x94] sm:$0xf] }
  0xde   : > { %9536 = vmatprep.mubr.bf16.mxu1 %v8344_v2  ;;  %v8410_v42 = vcombine.low %v2960_v53, %v2963_v46  ;;  %v3012_v8 = vsel %vm11218_vm5, %v11297_v29, %v3011_v44  ;;  %v3017_v58 = vrot.slane %v3015_v10, 4  ;;  %v8387_v44 = vrot.slane %v2879_v60, 9  ;;  %v10311_v60 = vld [vmem:[%s13369_s1 + $0x200] sm:$0xff]  }
  0xdf   : > { %v2981_v16 = vsel %vm11218_vm5, %v13387_v47, %v13386_v54  ;;  %v10309_v54 = vld [vmem:[%s13369_s1 + $0x210] sm:$0xff]  }
  0xe0   : > { %v11329_v22 = vcombine.low %v2981_v16, %v2984_v4  ;;  %v3023_v19 = vsel %vm11218_vm5, %v8387_v44, %v3022_v34 }
  0xe4   : > { %9489 = vmatmul.mubr.bf16.gmra.mxu0 %v8344_v2 }
  0xe5   : > { %9537 = vmatmul.mubr.bf16.gmra.mxu1 %v8369_v40  ;;  %9556 = vmatprep.mubr.bf16.mxu0 %v8410_v42  ;;  %v2881_v40 = vld [vmem:[%s10510_s28 + $0x74] sm:$0x1] }
  0xe6   : > { %9604 = vmatprep.mubr.bf16.mxu1 %v8411_v56  ;;  %v3025_v57 = vrot.slane %v2881_v40, 5 }
  0xec   : > { %v9270_v6 = vpop.f32.mrf.mxu0  ;;  %9557 = vmatmul.mubr.bf16.vlgmr.msra.gmra.mxu0 %v8411_v56  ;;  %v3009_v56 = vsel %vm11218_vm5, %v8385_v52, %v3008_v39  ;;  %v3018_v52 = vrot.slane %v2878_v20, 5 }
  0xed   : > { %v9318_v15 = vpop.f32.mrf.mxu1  ;;  %9637 = vmatpush3.bf16.msra.mxu0 %v11210_v9  ;;  %9605 = vmatmul.mubr.bf16.vlgmr.msra.gmra.mxu1 %v11327_v27  ;;  %v13390_v9 = vrot.slane %v11132_v13, 9  ;;  %v11411_v39 = vcombine.low %v3009_v56, %v3012_v8  ;;  %v2892_v56 = vld [vmem:[%s10510_s28 + $0xa0] sm:$0xf] }
  0xee   : > { %v11336_v11 = vadd.f32 %v9318_v15, %v9270_v6  ;;  %v510_v51 = vpop.f32.mrf.mxu0  ;;  %9560 = vmatprep.mubr.bf16.mxu0 %v11327_v27  ;;  %9638 = vmatprep.subr.bf16.mxu0 %v10305_v36  ;;  %v3019_v15 = vsel %vm11218_vm5, %v3017_v58, %v3018_v52  ;;  %v2888_v58 = vld [vmem:[%s10510_s28 + $0x90] sm:$0xe]  ;;  %v3043_v52 = vrot.slane %v2889_v45, 5  ;;  %v3050_v59 = vrot.slane %v2892_v56, 5  ;;  %v2896_v56 = vld [vmem:[%s10510_s28 + $0xb0] sm:$0x1] }
  0xef   : > { %v774_v14 = vpop.f32.mrf.mxu1  ;;  %9608 = vmatprep.mubr.bf16.mxu1 %v11329_v22  ;;  %v2995_v50 = vsel %vm11218_vm5, %v13390_v9, %v2994_v31  ;;  %v3036_v9 = vrot.slane %v2886_v38, 5  ;;  %v2891_v38 = vld [vmem:[%s10510_s28 + $0x9c] sm:$0xe] }
  0xf0   : > { %v11359_v1 = vadd.f32 %v774_v14, %v510_v51  ;;  %v9271_v49 = vpop.f32.mrf.mxu0  ;;  %v11368_v31 = vcombine.low %v2995_v50, %v2998_v21  ;;  %v2882_v51 = vld [vmem:[%s10510_s28 + $0x78] sm:$0xe]  ;;  %v3026_v14 = vsel %vm11218_vm5, %v3024_v33, %v3025_v57  ;;  %v2890_v57 = vld [vmem:[%s10510_s28 + $0x98] sm:$0x1] }
  0xf1   : > { %v9319_v18 = vpop.f32.mrf.mxu1  ;;  %9639 = vmatpush3.bf16.msra.mxu0 %v10305_v36  ;;  %v8388_v34 = vrot.slane %v2882_v51, 9 }
  0xf2   : > { %v11366_v13 = vadd.f32 %v9319_v18, %v9271_v49  ;;  %v513_v30 = vpop.f32.mrf.mxu0  ;;  %9640 = vmatprep.subr.bf16.mxu0 %v10306_v7  ;;  %v2885_v49 = vld [vmem:[%s10510_s28 + $0x84] sm:$0xe]  ;;  %v2887_v18 = vld [vmem:[%s10510_s28 + $0x8c] sm:$0x1] }
  0xf3   : > { %v777_v0 = vpop.f32.mrf.mxu1  ;;  %v3039_v25 = vrot.slane %v2887_v18, 5 }
  0xf4   : > { %v11370_v5 = vadd.f32 %v777_v0, %v513_v30  ;;  %v9274_v2 = vpop.f32.mrf.mxu0  ;;  %9561 = vmatmul.mubr.bf16.gmra.mxu0 %v11329_v22 }
  0xf5   : > { %v9322_v53 = vpop.f32.mrf.mxu1  ;;  %9609 = vmatmul.mubr.bf16.gmra.mxu1 %v11361_v32  ;;  %9564 = vmatprep.mubr.bf16.mxu0 %v11361_v32 }
  0xf6   : > { %v11380_v35 = vadd.f32 %v9322_v53, %v9274_v2  ;;  %v526_v46 = vpop.f32.mrf.mxu0  ;;  %9612 = vmatprep.mubr.bf16.mxu1 %v11368_v31  ;;  %9641 = vmatpush3.bf16.msra.mxu0 %v10306_v7  ;;  %v3016_v7 = vsel %vm11218_vm5, %v8386_v3, %v3015_v10  ;;  %v10310_v10 = vld [vmem:[%s13369_s1 + $0x208] sm:$0xff]   ;;  %v11455_v2 = vcombine.low %v3023_v19, %v3026_v14  ;;  %v3032_v53 = vrot.slane %v2884_v61, 5 }
  0xf7   : > { %v790_v42 = vpop.f32.mrf.mxu1  ;;  %9642 = vmatprep.subr.bf16.mxu0 %v10307_v28  ;;  %v3030_v3 = vsel %vm11218_vm5, %v8388_v34, %v3029_v48  ;;  %v3045_v19 = vrot.slane %v3043_v52, 4  ;;  %v3046_v14 = vrot.slane %v2890_v57, 5  ;;  %v2898_v34 = vld [vmem:[%s10510_s28 + $0xb8] sm:$0xf] }
  0xf8   : > { %v11405_v17 = vadd.f32 %v790_v42, %v526_v46  ;;  %v9275_v41 = vpop.f32.mrf.mxu0  ;;  %v3038_v46 = vrot.slane %v3036_v9, 4 }
  0xf9   : > { %v9323_v55 = vpop.f32.mrf.mxu1 }
  0xfa   : > { %v11409_v23 = vadd.f32 %v9323_v55, %v9275_v41  ;;  %v529_v43 = vpop.f32.mrf.mxu0  ;;  %9643 = vmatpush3.bf16.msra.mxu0 %v10307_v28  ;;  %v11451_v28 = vcombine.low %v3016_v7, %v3019_v15  ;;  %v3040_v33 = vsel %vm11218_vm5, %v3038_v46, %v3039_v25  ;;  %v8390_v15 = vrot.slane %v2888_v58, 9  ;;  %v2894_v46 = vld [vmem:[%s10510_s28 + $0xa8] sm:$0xe]  ;;  %v2899_v58 = vld [vmem:[%s10510_s28 + $0xbc] sm:$0x1] }
  0xfb   : > { %v793_v29 = vpop.f32.mrf.mxu1  ;;  %9644 = vmatprep.subr.bf16.mxu0 %v10308_v63 }
  0xfc   : > { %v11421_v47 = vadd.f32 %v793_v29, %v529_v43  ;;  %v9278_v16 = vpop.f32.mrf.mxu0  ;;  %9565 = vmatmul.mubr.bf16.gmra.mxu0 %v11368_v31  ;;  %v3033_v43 = vsel %vm11218_vm5, %v3031_v24, %v3032_v53 }
  0xfd   : > { %v9326_v4 = vpop.f32.mrf.mxu1  ;;  %9613 = vmatmul.mubr.bf16.gmra.mxu1 %v11407_v62  ;;  %9568 = vmatprep.mubr.bf16.mxu0 %v11407_v62  ;;  %v11484_v7 = vcombine.low %v3030_v3, %v3033_v43  ;;  %v2897_v43 = vld [vmem:[%s10510_s28 + $0xb4] sm:$0xe] }
  0xfe   : > { %v11427_v36 = vadd.f32 %v9326_v4, %v9278_v16  ;;  %v542_v6 = vpop.f32.mrf.mxu0  ;;  %9616 = vmatprep.mubr.bf16.mxu1 %v11411_v39  ;;  %9645 = vmatpush3.bf16.msra.mxu0 %v10308_v63  ;;  %v8389_v63 = vrot.slane %v2885_v49, 9  ;;  %v2893_v4 = vld [vmem:[%s10510_s28 + $0xa4] sm:$0x1]  ;;  %v2895_v49 = vld [vmem:[%s10510_s28 + $0xac] sm:$0xf] }
  0xff   : > { %v806_v26 = vpop.f32.mrf.mxu1  ;;  %9646 = vmatprep.subr.bf16.mxu0 %v10309_v54  ;;  %v3057_v25 = vrot.slane %v2895_v49, 5 }
 0x100   : > { %v11447_v50 = vadd.f32 %v806_v26, %v542_v6  ;;  %v9279_v21 = vpop.f32.mrf.mxu0  ;;  %v3037_v44 = vsel %vm11218_vm5, %v8389_v63, %v3036_v9  ;;  %v8391_v9 = vrot.slane %v2891_v38, 9  ;;  %v3047_v63 = vsel %vm11218_vm5, %v3045_v19, %v3046_v14  ;;  %v2901_v19 = vld [vmem:[%s10510_s28 + $0xc4] sm:$0xf] }
 0x101   : > { %v9327_v37 = vpop.f32.mrf.mxu1  ;;  %v11488_v26 = vcombine.low %v3037_v44, %v3040_v33  ;;  %v8392_v44 = vrot.slane %v2894_v46, 9  ;;  %v3060_v38 = vrot.slane %v2896_v56, 5 }
 0x102   : > { %v11453_v30 = vadd.f32 %v9327_v37, %v9279_v21  ;;  %v545_v0 = vpop.f32.mrf.mxu0  ;;  %9647 = vmatpush3.bf16.msra.mxu0 %v10309_v54  ;;  %v3053_v21 = vrot.slane %v2893_v4, 5 }
 0x103   : > { %v809_v20 = vpop.f32.mrf.mxu1  ;;  %9648 = vmatprep.subr.bf16.mxu0 %v10310_v10 }
 0x104   : > { %v11461_v40 = vadd.f32 %v809_v20, %v545_v0  ;;  %v9282_v42 = vpop.f32.mrf.mxu0  ;;  %9569 = vmatmul.mubr.bf16.gmra.mxu0 %v11411_v39  ;;  %v3044_v20 = vsel %vm11218_vm5, %v8390_v15, %v3043_v52 }
 0x105   : > { %v9330_v8 = vpop.f32.mrf.mxu1  ;;  %9617 = vmatmul.mubr.bf16.gmra.mxu1 %v11451_v28  ;;  %9572 = vmatprep.mubr.bf16.mxu0 %v11451_v28 }
 0x106   : > { %v11467_v41 = vadd.f32 %v9330_v8, %v9282_v42  ;;  %v558_v55 = vpop.f32.mrf.mxu0  ;;  %9620 = vmatprep.mubr.bf16.mxu1 %v11455_v2  ;;  %9649 = vmatpush3.bf16.msra.mxu0 %v10310_v10  ;;  %v3052_v10 = vrot.slane %v3050_v59, 4  ;;  %v3064_v8 = vrot.slane %v2898_v34, 5  ;;  %v3460_v34 = vrot.slane %v2901_v19, 5 }
 0x107   : > { %v822_v29 = vpop.f32.mrf.mxu1  ;;  %9650 = vmatprep.subr.bf16.mxu0 %v10311_v60 }
 0x108   : > { %v11480_v54 = vadd.f32 %v822_v29, %v558_v55  ;;  %v9283_v16 = vpop.f32.mrf.mxu0  ;;  %v3054_v42 = vsel %vm11218_vm5, %v3052_v10, %v3053_v21  ;;  %v11514_v29 = vcombine.low %v3044_v20, %v3047_v63  ;;  %v3066_v15 = vrot.slane %v3064_v8, 4  ;;  %v2902_v63 = vld [vmem:[%s10510_s28 + $0xc8] sm:$0x1] }
 0x109   : > { %v9331_v6 = vpop.f32.mrf.mxu1  ;;  %v3058_v21 = vsel %vm11218_vm5, %v8392_v44, %v3057_v25 }
 0x10a   : > { %v11486_v51 = vadd.f32 %v9331_v6, %v9283_v16  ;;  %v561_v48 = vpop.f32.mrf.mxu0  ;;  %9651 = vmatpush3.bf16.msra.mxu0 %v10311_v60  ;;  %v3051_v60 = vsel %vm11218_vm5, %v8391_v9, %v3050_v59  ;;  %v3059_v16 = vrot.slane %v3057_v25, 4  ;;  %v8393_v6 = vrot.slane %v2897_v43, 9 }
 0x10b   : > { %v825_v61 = vpop.f32.mrf.mxu1  ;;  %v11520_v59 = vcombine.low %v3051_v60, %v3054_v42 }
 0x10c   : > { %v11491_v18 = vadd.f32 %v825_v61, %v561_v48  ;;  %v9286_v37 = vpop.f32.mrf.mxu0  ;;  %9573 = vmatmul.mubr.bf16.gmra.mxu0 %v11455_v2  ;;  %v3067_v48 = vrot.slane %v2899_v58, 5  ;;  %v3061_v49 = vsel %vm11218_vm5, %v3059_v16, %v3060_v38  ;;  %v3462_v58 = vrot.slane %v3460_v34, 4 }
 0x10d   : > { %v9334_v0 = vpop.f32.mrf.mxu1  ;;  %9621 = vmatmul.mubr.bf16.gmra.mxu1 %v11484_v7  ;;  %9576 = vmatprep.mubr.bf16.mxu0 %v11484_v7  ;;  %v11543_v42 = vcombine.low %v3058_v21, %v3061_v49 }
 0x10e   : > { %v11497_v24 = vadd.f32 %v9334_v0, %v9286_v37  ;;  %v574_v53 = vpop.f32.mrf.mxu0  ;;  %9624 = vmatprep.mubr.bf16.mxu1 %v11488_v26  ;;  %v2900_v37 = vld [vmem:[%s10510_s28 + $0xc0] sm:$0xe]  ;;  %v3068_v20 = vsel %vm11218_vm5, %v3066_v15, %v3067_v48 }
 0x10f   : > { %v838_v45 = vpop.f32.mrf.mxu1  ;;  %v8434_v25 = vrot.slane %v2900_v37, 9 }
 0x110   : > { %v11510_v55 = vadd.f32 %v838_v45, %v574_v53  ;;  %v9287_v3 = vpop.f32.mrf.mxu0  ;;  %v3065_v53 = vsel %vm11218_vm5, %v8393_v6, %v3064_v8 }
 0x111   : > { %v9335_v52 = vpop.f32.mrf.mxu1  ;;  %v11549_v43 = vcombine.low %v3065_v53, %v3068_v20  ;;  %v3461_v15 = vsel %vm11218_vm5, %v8434_v25, %v3460_v34 }
 0x112   : > { %v11516_v33 = vadd.f32 %v9335_v52, %v9287_v3  ;;  %v11518_v57 = vpop.f32.mrf.mxu0  ;;  %v3463_v52 = vrot.slane %v2902_v63, 5 }
 0x113   : > { %v11522_v4 = vpop.f32.mrf.mxu1 }
 0x114   : > { %v9290_v14 = vpop.f32.mrf.mxu0  ;;  %9577 = vmatmul.mubr.bf16.gmra.mxu0 %v11488_v26  ;;  %v3464_v48 = vsel %vm11218_vm5, %v3462_v58, %v3463_v52 }
 0x115   : > { %v9338_v61 = vpop.f32.mrf.mxu1  ;;  %9625 = vmatmul.mubr.bf16.gmra.mxu1 %v11514_v29  ;;  %9580 = vmatprep.mubr.bf16.mxu0 %v11514_v29  ;;  %v11565_v21 = vcombine.low %v3461_v15, %v3464_v48 }
 0x116   : > { %v11528_v9 = vadd.f32 %v9338_v61, %v9290_v14  ;;  %v590_v10 = vpop.f32.mrf.mxu0  ;;  %9628 = vmatprep.mubr.bf16.mxu1 %v11520_v59 }
 0x117   : > { %v854_v0 = vpop.f32.mrf.mxu1 }
 0x118   : > { %v11541_v46 = vadd.f32 %v854_v0, %v590_v10  ;;  %v9291_v45 = vpop.f32.mrf.mxu0 }
 0x119   : > { %v9339_v60 = vpop.f32.mrf.mxu1 }
 0x11a   : > { %v11545_v56 = vadd.f32 %v9339_v60, %v9291_v45  ;;  %v11547_v3 = vpop.f32.mrf.mxu0 }
 0x11b   : > { %v11551_v8 = vpop.f32.mrf.mxu1 }
 0x11c   : > { %v9294_v44 = vpop.f32.mrf.mxu0  ;;  %9581 = vmatmul.mubr.bf16.gmra.mxu0 %v11520_v59 }
 0x11d   : > { %v9342_v16 = vpop.f32.mrf.mxu1  ;;  %9629 = vmatmul.mubr.bf16.gmra.mxu1 %v11543_v42  ;;  %9584 = vmatprep.mubr.bf16.mxu0 %v11543_v42 }
 0x11e   : > { %v11556_v38 = vadd.f32 %v9342_v16, %v9294_v44  ;;  %v606_v6 = vpop.f32.mrf.mxu0  ;;  %9632 = vmatprep.mubr.bf16.mxu1 %v11549_v43 }
 0x11f   : > { %v870_v19 = vpop.f32.mrf.mxu1 }
 0x120   : > { %v11563_v14 = vadd.f32 %v870_v19, %v606_v6  ;;  %v9295_v61 = vpop.f32.mrf.mxu0 }
 0x121   : > { %v9343_v10 = vpop.f32.mrf.mxu1 }
 0x122   : > { %v11567_v49 = vadd.f32 %v9343_v10, %v9295_v61  ;;  %v11569_v37 = vpop.f32.mrf.mxu0 }
 0x123   : > { %v11571_v0 = vpop.f32.mrf.mxu1 }
 0x124   : > { %v9298_v53 = vpop.f32.mrf.mxu0  ;;  %9585 = vmatmul.mubr.bf16.gmra.mxu0 %v11549_v43 }
 0x125   : > { %v9346_v34 = vpop.f32.mrf.mxu1  ;;  %9633 = vmatmul.mubr.bf16.gmra.mxu1 %v11565_v21  ;;  %9652 = vmatprep.mubr.bf16.mxu0 %v11327_v27 }
 0x126   : > { %v11576_v20 = vadd.f32 %v9346_v34, %v9298_v53  ;;  %v622_v63 = vpop.f32.mrf.mxu0 }
 0x127   : > { %v886_v45 = vpop.f32.mrf.mxu1 }
 0x128   : > { %v11578_v60 = vadd.f32 %v886_v45, %v622_v63  ;;  %v9299_v25 = vpop.f32.mrf.mxu0 }
 0x129   : > { %v9347_v58 = vpop.f32.mrf.mxu1 }
 0x12a   : > { %v11580_v52 = vadd.f32 %v9347_v58, %v9299_v25  ;;  %v11582_v44 = vpop.f32.mrf.mxu0 }
 0x12b   : > { %v11584_v16 = vpop.f32.mrf.mxu1 }
 0x12c   : > { %v9366_v6 = vpop.f32.mrf.mxu0  ;;  %9653 = vmatmul.mubr.bf16.vlgmr.msra.gmra.mxu0 %v11329_v22 }
 0x12d   : > { %v1263_v15 = vadd.f32 %v9366_v6, %v11336_v11  ;;  %v9414_v27 = vpop.f32.mrf.mxu1  ;;  %9656 = vmatprep.mubr.bf16.mxu0 %v11361_v32 }
 0x12e   : > { %v1102_v48 = vpop.f32.mrf.mxu0 }
 0x12f   : > { %v1261_v19 = vadd.f32 %v1102_v48, %v11359_v1  ;;  %v11590_v61 = vadd.f32 %v9414_v27, %v1263_v15  ;;  %v1929_v10 = vpop.f32.mrf.mxu1 }
 0x130   : > { %v9367_v53 = vpop.f32.mrf.mxu0 }
 0x131   : > { %v1264_v34 = vadd.f32 %v9367_v53, %v11366_v13  ;;  %v11593_v63 = vadd.f32 %v1929_v10, %v1261_v19  ;;  %v9415_v45 = vpop.f32.mrf.mxu1 }
 0x132   : > { %v1105_v25 = vpop.f32.mrf.mxu0 }
 0x133   : > { %v11596_v22 = vadd.f32 %v1105_v25, %v11370_v5  ;;  %v11598_v11 = vadd.f32 %v9415_v45, %v1264_v34  ;;  %v11600_v58 = vpop.f32.mrf.mxu1 }
 0x134   : > { %v9370_v32 = vpop.f32.mrf.mxu0  ;;  %9657 = vmatmul.mubr.bf16.gmra.mxu0 %v11368_v31 }
 0x135   : > { %v1267_v1 = vadd.f32 %v9370_v32, %v11380_v35  ;;  %v9418_v6 = vpop.f32.mrf.mxu1  ;;  %9660 = vmatprep.mubr.bf16.mxu0 %v11407_v62 }
 0x136   : > { %v1118_v13 = vpop.f32.mrf.mxu0 }
 0x137   : > { %v1265_v15 = vadd.f32 %v1118_v13, %v11405_v17  ;;  %v11606_v27 = vadd.f32 %v9418_v6, %v1267_v1  ;;  %v1945_v48 = vpop.f32.mrf.mxu1 }
 0x138   : > { %v9371_v5 = vpop.f32.mrf.mxu0 }
 0x139   : > { %v1268_v19 = vadd.f32 %v9371_v5, %v11409_v23  ;;  %v11609_v10 = vadd.f32 %v1945_v48, %v1265_v15  ;;  %v9419_v53 = vpop.f32.mrf.mxu1 }
 0x13a   : > { %v1121_v34 = vpop.f32.mrf.mxu0 }
 0x13b   : > { %v11612_v31 = vadd.f32 %v1121_v34, %v11421_v47  ;;  %v11614_v35 = vadd.f32 %v9419_v53, %v1268_v19  ;;  %v11616_v45 = vpop.f32.mrf.mxu1 }
 0x13c   : > { %v9374_v62 = vpop.f32.mrf.mxu0  ;;  %9661 = vmatmul.mubr.bf16.gmra.mxu0 %v11411_v39 }
 0x13d   : > { %v1271_v17 = vadd.f32 %v9374_v62, %v11427_v36  ;;  %v9422_v25 = vpop.f32.mrf.mxu1  ;;  %9664 = vmatprep.mubr.bf16.mxu0 %v11451_v28 }
 0x13e   : > { %v1134_v23 = vpop.f32.mrf.mxu0 }
 0x13f   : > { %v1269_v32 = vadd.f32 %v1134_v23, %v11447_v50  ;;  %v11622_v1 = vadd.f32 %v9422_v25, %v1271_v17  ;;  %v1961_v6 = vpop.f32.mrf.mxu1  ;;  %v10312_v50 = vld [vmem:[%s13371_s3 + $0x38] sm:$0xff]  }
 0x140   : > { %v9375_v47 = vpop.f32.mrf.mxu0  ;;  %9684 = vmatprep.subr.bf16.mxu1 %v10312_v50 }
 0x141   : > { %v1272_v13 = vadd.f32 %v9375_v47, %v11453_v30  ;;  %v11625_v15 = vadd.f32 %v1961_v6, %v1269_v32  ;;  %v9423_v48 = vpop.f32.mrf.mxu1  ;;  %9685 = vmatpush3.bf16.msra.mxu1 %v10312_v50 }
 0x142   : > { %v1137_v5 = vpop.f32.mrf.mxu0 }
 0x143   : > { %v11628_v39 = vadd.f32 %v1137_v5, %v11461_v40  ;;  %v11630_v36 = vadd.f32 %v9423_v48, %v1272_v13  ;;  %v11632_v19 = vpop.f32.mrf.mxu1 }
 0x144   : > { %v9378_v28 = vpop.f32.mrf.mxu0  ;;  %9665 = vmatmul.mubr.bf16.gmra.mxu0 %v11455_v2 }
 0x145   : > { %v1275_v30 = vadd.f32 %v9378_v28, %v11467_v41  ;;  %v9426_v53 = vpop.f32.mrf.mxu1  ;;  %9668 = vmatprep.mubr.bf16.mxu0 %v11484_v7 }
 0x146   : > { %v1150_v34 = vpop.f32.mrf.mxu0 }
 0x147   : > { %v1273_v40 = vadd.f32 %v1150_v34, %v11480_v54  ;;  %v11641_v62 = vadd.f32 %v9426_v53, %v1275_v30  ;;  %v1977_v17 = vpop.f32.mrf.mxu1  ;;  %v10313_v54 = vld [vmem:[%s13371_s3 + $0x30] sm:$0xff]  }
 0x148   : > { %v9379_v25 = vpop.f32.mrf.mxu0  ;;  %9686 = vmatprep.subr.bf16.mxu1 %v10313_v54 }
 0x149   : > { %v1276_v23 = vadd.f32 %v9379_v25, %v11486_v51  ;;  %v11644_v32 = vadd.f32 %v1977_v17, %v1273_v40  ;;  %v9427_v6 = vpop.f32.mrf.mxu1  ;;  %9687 = vmatpush3.bf16.msra.mxu1 %v10313_v54  ;;  %v2904_v40 = vld [vmem:[%s10510_s28 + $0xd0] sm:$0xf] }
 0x14a   : > { %v1153_v2 = vpop.f32.mrf.mxu0 }
 0x14b   : > { %v11647_v41 = vadd.f32 %v1153_v2, %v11491_v18  ;;  %v11649_v47 = vadd.f32 %v9427_v6, %v1276_v23  ;;  %v11651_v7 = vpop.f32.mrf.mxu1  ;;  %v2903_v6 = vld [vmem:[%s10510_s28 + $0xcc] sm:$0xe]  ;;  %v3796_v2 = vrot.slane %v2904_v40, 5 }
 0x14c   : > { %v9382_v13 = vpop.f32.mrf.mxu0  ;;  %9669 = vmatmul.mubr.bf16.gmra.mxu0 %v11488_v26 }
 0x14d   : > { %v1279_v51 = vadd.f32 %v9382_v13, %v11497_v24  ;;  %v9430_v48 = vpop.f32.mrf.mxu1  ;;  %9672 = vmatprep.mubr.bf16.mxu0 %v11514_v29  ;;  %v2905_v13 = vld [vmem:[%s10510_s28 + $0xd4] sm:$0x1] }
 0x14e   : > { %v1166_v18 = vpop.f32.mrf.mxu0 }
 0x14f   : > { %v1277_v5 = vadd.f32 %v1166_v18, %v11510_v55  ;;  %v11660_v50 = vadd.f32 %v9430_v48, %v1279_v51  ;;  %v1993_v28 = vpop.f32.mrf.mxu1  ;;  %v10314_v55 = vld [vmem:[%s13371_s3 + $0x28] sm:$0xff]  }
 0x150   : > { %v9383_v30 = vpop.f32.mrf.mxu0  ;;  %9688 = vmatprep.subr.bf16.mxu1 %v10314_v55 }
 0x151   : > { %v1280_v53 = vadd.f32 %v9383_v30, %v11516_v33  ;;  %v11663_v34 = vadd.f32 %v1993_v28, %v1277_v5  ;;  %v9431_v26 = vpop.f32.mrf.mxu1  ;;  %9689 = vmatpush3.bf16.msra.mxu1 %v10314_v55  ;;  %v8460_v28 = vrot.slane %v2903_v6, 9 }
 0x152   : > { %v11665_v24 = vpop.f32.mrf.mxu0 }
 0x153   : > { %v11668_v29 = vadd.f32 %v9431_v26, %v1280_v53  ;;  %v11670_v17 = vpop.f32.mrf.mxu1  ;;  %v3798_v53 = vrot.slane %v3796_v2, 4 }
 0x154   : > { %13391 = vst [vmem:[#allocation5_spill] sm:$0xff] %v11670_v17  ;;  %v9386_v25 = vpop.f32.mrf.mxu0  ;;  %9673 = vmatmul.mubr.bf16.gmra.mxu0 %v11520_v59 }
 0x155   : > { %v1283_v33 = vadd.f32 %v9386_v25, %v11528_v9  ;;  %v9434_v23 = vpop.f32.mrf.mxu1  ;;  %9676 = vmatprep.mubr.bf16.mxu0 %v11543_v42  ;;  %v3799_v42 = vrot.slane %v2905_v13, 5 }
 0x156   : > { %v1182_v54 = vpop.f32.mrf.mxu0 }
 0x157   : > { %v1281_v51 = vadd.f32 %v1182_v54, %v11541_v46  ;;  %v11681_v48 = vadd.f32 %v9434_v23, %v1283_v33  ;;  %v2009_v18 = vpop.f32.mrf.mxu1  ;;  %v10315_v46 = vld [vmem:[%s13371_s3 + $0x20] sm:$0xff]   ;;  %v3797_v23 = vsel %vm11218_vm5, %v8460_v28, %v3796_v2  ;;  %v3800_v6 = vsel %vm11218_vm5, %v3798_v53, %v3799_v42  ;;  %v10317_v28 = vld [vmem:[%s13371_s3 + $0xf8] sm:$0xff]  }
 0x158   : > { %v9387_v5 = vpop.f32.mrf.mxu0  ;;  %9690 = vmatprep.subr.bf16.mxu1 %v10315_v46  ;;  %9732 = vmatprep.subr.bf16.mxu0 %v10317_v28 }
 0x159   : > { %v1284_v59 = vadd.f32 %v9387_v5, %v11545_v56  ;;  %v11684_v30 = vadd.f32 %v2009_v18, %v1281_v51  ;;  %v9435_v9 = vpop.f32.mrf.mxu1  ;;  %9691 = vmatpush3.bf16.msra.mxu1 %v10315_v46  ;;  %v8477_v5 = vcombine.low %v3797_v23, %v3800_v6  ;;  %9733 = vmatpush3.bf16.msra.mxu0 %v10317_v28  ;;  %v10318_v23 = vld [vmem:[%s13371_s3 + $0xf0] sm:$0xff]  }
 0x15a   : > { %v11686_v26 = vpop.f32.mrf.mxu0  ;;  %9734 = vmatprep.subr.bf16.mxu0 %v10318_v23 }
 0x15b   : > { %v11688_v40 = vadd.f32 %v9435_v9, %v1284_v59  ;;  %v11690_v25 = vpop.f32.mrf.mxu1 }
 0x15c   : > { %13392 = vst [vmem:[#allocation6_spill] sm:$0xff] %v11690_v25  ;;  %v9390_v55 = vpop.f32.mrf.mxu0  ;;  %9677 = vmatmul.mubr.bf16.gmra.mxu0 %v11549_v43 }
 0x15d   : > { %v1287_v56 = vadd.f32 %v9390_v55, %v11556_v38  ;;  %v9438_v33 = vpop.f32.mrf.mxu1  ;;  %9680 = vmatprep.mubr.bf16.mxu0 %v11565_v21  ;;  %9735 = vmatpush3.bf16.msra.mxu0 %v10318_v23 }
 0x15e   : > { %v1198_v54 = vpop.f32.mrf.mxu0 }
 0x15f   : > { %v1285_v13 = vadd.f32 %v1198_v54, %v11563_v14  ;;  %v11703_v51 = vadd.f32 %v9438_v33, %v1287_v56  ;;  %v2025_v18 = vpop.f32.mrf.mxu1  ;;  %v10316_v14 = vld [vmem:[%s13371_s3 + $0x18] sm:$0xff]  }
 0x160   : > { %v9391_v43 = vpop.f32.mrf.mxu0  ;;  %9692 = vmatprep.subr.bf16.mxu1 %v10316_v14 }
 0x161   : > { %v1288_v38 = vadd.f32 %v9391_v43, %v11567_v49  ;;  %v11706_v59 = vadd.f32 %v2025_v18, %v1285_v13  ;;  %v9439_v21 = vpop.f32.mrf.mxu1  ;;  %9693 = vmatpush3.bf16.msra.mxu1 %v10316_v14 }
 0x162   : > { %v11708_v9 = vpop.f32.mrf.mxu0 }
 0x163   : > { %13393 = vst [vmem:[#allocation7_spill] sm:$0xff] %v11708_v9  ;;  %v11710_v2 = vadd.f32 %v9439_v21, %v1288_v38  ;;  %v11712_v12 = vpop.f32.mrf.mxu1  ;;  %v10320_v38 = vld [vmem:[%s13371_s3 + $0xe8] sm:$0xff]  }
 0x164   : > { %13394 = vst [vmem:[#allocation8_spill] sm:$0xff] %v11712_v12  ;;  %v9394_v53 = vpop.f32.mrf.mxu0  ;;  %9681 = vmatmul.mubr.bf16.gmra.mxu0 %v8477_v5  ;;  %v10319_v5 = vld [vmem:[%s13371_s3 + $0x10] sm:$0xff]   ;;  %9736 = vmatprep.subr.bf16.mxu0 %v10320_v38 }
 0x165   : > { %v1291_v49 = vadd.f32 %v9394_v53, %v11576_v20  ;;  %v9442_v42 = vpop.f32.mrf.mxu1  ;;  %9694 = vmatprep.subr.bf16.mxu1 %v10319_v5  ;;  %9737 = vmatpush3.bf16.msra.mxu0 %v10320_v38 }
 0x166   : > { %v1214_v46 = vpop.f32.mrf.mxu0  ;;  %9695 = vmatpush3.bf16.msra.mxu1 %v10319_v5 }
 0x167   : > { %v1289_v55 = vadd.f32 %v1214_v46, %v11578_v60  ;;  %v11722_v56 = vadd.f32 %v9442_v42, %v1291_v49  ;;  %v2041_v33 = vpop.f32.mrf.mxu1  ;;  %v10321_v42 = vld [vmem:[%s13371_s3 + $0xe0] sm:$0xff]  }
 0x168   : > { %v9395_v6 = vpop.f32.mrf.mxu0  ;;  %9738 = vmatprep.subr.bf16.mxu0 %v10321_v42 }
 0x169   : > { %v1292_v54 = vadd.f32 %v9395_v6, %v11580_v52  ;;  %v11728_v13 = vadd.f32 %v2041_v33, %v1289_v55  ;;  %v9443_v20 = vpop.f32.mrf.mxu1  ;;  %9739 = vmatpush3.bf16.msra.mxu0 %v10321_v42 }
 0x16a   : > { %v11730_v18 = vpop.f32.mrf.mxu0 }
 0x16b   : > { %13395 = vst [vmem:[#allocation9_spill] sm:$0xff] %v11730_v18  ;;  %v11732_v43 = vadd.f32 %v9443_v20, %v1292_v54  ;;  %v11734_v60 = vpop.f32.mrf.mxu1  ;;  %v10425_v54 = vmov 0.0  }
 0x16c   : > { %13396 = vst [vmem:[#allocation10_spill] sm:$0xff] %v11734_v60  ;;  %v9462_v52 = vpop.f32.mrf.mxu0  ;;  %4230 = vst [vmem:[#allocation2] sm:$0xff] %v10425_v54 }
 0x16d   : > { %v11743_v21 = vadd.f32 %v9462_v52, %v11590_v61  ;;  %v11745_v14 = vpop.f32.mrf.mxu1  ;;  %4231 = vst [vmem:[#allocation2 + $0x8] sm:$0xff] %v10425_v54  ;;  %4232 = vst [vmem:[#allocation2 + $0x10] sm:$0xff] %v10425_v54 }
 0x16e   : > { %v2279_v28 = vpop.f32.mrf.mxu0  ;;  %4233 = vst [vmem:[#allocation2 + $0x18] sm:$0x1] %v10425_v54  ;;  %4235 = vst [vmem:[#allocation2 + $0x220] sm:$0xff] %v10425_v54 }
 0x16f   : > { %v11748_v53 = vadd.f32 %v2279_v28, %v11593_v63  ;;  %v11750_v49 = vpop.f32.mrf.mxu1  ;;  %v10323_v63 = vld [vmem:[%s13371_s3 + $0xd8] sm:$0xff]   ;;  %4236 = vst [vmem:[#allocation2 + $0x228] sm:$0xff] %v10425_v54  ;;  %4237 = vst [vmem:[#allocation2 + $0x230] sm:$0xff] %v10425_v54  ;;  %v10324_v28 = vld [vmem:[%s13371_s3 + $0xd0] sm:$0xff]  }
 0x170   : > { %v9463_v46 = vpop.f32.mrf.mxu0  ;;  %4238 = vst [vmem:[#allocation2 + $0x238] sm:$0x1] %v10425_v54  ;;  %4240 = vst [vmem:[#allocation2 + $0x27] sm:$0x1] %v10425_v54  ;;  %9740 = vmatprep.subr.bf16.mxu0 %v10323_v63 }
 0x171   : > { %v11756_v61 = vadd.f32 %v9463_v46, %v11598_v11  ;;  %v11758_v55 = vpop.f32.mrf.mxu1  ;;  %4241 = vst [vmem:[#allocation2 + $0x47] sm:$0x1] %v10425_v54  ;;  %4242 = vst [vmem:[#allocation2 + $0x67] sm:$0x1] %v10425_v54  ;;  %9741 = vmatpush3.bf16.msra.mxu0 %v10323_v63 }
 0x172   : > { %v11760_v33 = vpop.f32.mrf.mxu0  ;;  %4243 = vst [vmem:[#allocation2 + $0x87] sm:$0x1] %v10425_v54  ;;  %4244 = vst [vmem:[#allocation2 + $0xa7] sm:$0x1] %v10425_v54  ;;  %9742 = vmatprep.subr.bf16.mxu0 %v10324_v28 }
 0x173   : > { %v11762_v23 = vpop.f32.mrf.mxu1  ;;  %4245 = vst [vmem:[#allocation2 + $0xc7] sm:$0x1] %v10425_v54  ;;  %4246 = vst [vmem:[#allocation2 + $0xe7] sm:$0x1] %v10425_v54 }
 0x174   : > { %v9466_v6 = vpop.f32.mrf.mxu0  ;;  %4247 = vst [vmem:[#allocation2 + $0x107] sm:$0x1] %v10425_v54  ;;  %4248 = vst [vmem:[#allocation2 + $0x127] sm:$0x1] %v10425_v54  ;;  %v4305_v18 = vld [vmem:[#allocation2 + $0xf] sm:$0xff] }
 0x175   : > { %4249 = vst [vmem:[#allocation2 + $0x147] sm:$0x1] %v10425_v54  ;;  %4250 = vst [vmem:[#allocation2 + $0x167] sm:$0x1] %v10425_v54  ;;  %v11768_v11 = vadd.f32 %v9466_v6, %v11606_v27  ;;  %v11770_v20 = vpop.f32.mrf.mxu1  ;;  %v10322_v6 = vld [vmem:[%s13371_s3 + $0x8] sm:$0xff]   ;;  %9743 = vmatpush3.bf16.msra.mxu0 %v10324_v28  ;;  %v10325_v28 = vld [vmem:[%s13371_s3] sm:$0xff]  }
 0x176   : > { %4251 = vst [vmem:[#allocation2 + $0x187] sm:$0x1] %v10425_v54  ;;  %4252 = vst [vmem:[#allocation2 + $0x1a7] sm:$0x1] %v10425_v54  ;;  %v2295_v5 = vpop.f32.mrf.mxu0  ;;  %9696 = vmatprep.subr.bf16.mxu1 %v10322_v6 }
 0x177   : > { %4253 = vst [vmem:[#allocation2 + $0x1c7] sm:$0x1] %v10425_v54  ;;  %4254 = vst [vmem:[#allocation2 + $0x1e7] sm:$0x1] %v10425_v54  ;;  %v11773_v38 = vadd.f32 %v2295_v5, %v11609_v10  ;;  %v11775_v52 = vpop.f32.mrf.mxu1  ;;  %9697 = vmatpush3.bf16.msra.mxu1 %v10322_v6  ;;  %v10327_v6 = vld [vmem:[%s13371_s3 + $0xc0] sm:$0xff]  }
 0x178   : > { %4255 = vst [vmem:[#allocation2 + $0x207] sm:$0x1] %v10425_v54  ;;  %4256 = vst [vmem:[#allocation2 + $0x38] sm:$0x1] %v10425_v54  ;;  %v9467_v42 = vpop.f32.mrf.mxu0  ;;  %9698 = vmatprep.subr.bf16.mxu1 %v10325_v28 }
 0x179   : > { %4257 = vst [vmem:[#allocation2 + $0x58] sm:$0x1] %v10425_v54  ;;  %4258 = vst [vmem:[#allocation2 + $0x78] sm:$0x1] %v10425_v54  ;;  %v11781_v46 = vadd.f32 %v9467_v42, %v11614_v35  ;;  %v11783_v27 = vpop.f32.mrf.mxu1 }
 0x17a   : > { %4259 = vst [vmem:[#allocation2 + $0x98] sm:$0x1] %v10425_v54  ;;  %4260 = vst [vmem:[#allocation2 + $0xb8] sm:$0x1] %v10425_v54  ;;  %v11788_v63 = vpop.f32.mrf.mxu0 }
 0x17b   : > { %4261 = vst [vmem:[#allocation2 + $0xd8] sm:$0x1] %v10425_v54  ;;  %4262 = vst [vmem:[#allocation2 + $0xf8] sm:$0x1] %v10425_v54  ;;  %v11790_v10 = vpop.f32.mrf.mxu1  ;;  %9699 = vmatpush3.bf16.msra.mxu1 %v10325_v28 }
 0x17c   : > { %4263 = vst [vmem:[#allocation2 + $0x118] sm:$0x1] %v10425_v54  ;;  %4264 = vst [vmem:[#allocation2 + $0x138] sm:$0x1] %v10425_v54  ;;  %v9470_v5 = vpop.f32.mrf.mxu0 }
 0x17d   : > { %4265 = vst [vmem:[#allocation2 + $0x158] sm:$0x1] %v10425_v54  ;;  %4266 = vst [vmem:[#allocation2 + $0x178] sm:$0x1] %v10425_v54  ;;  %v11796_v35 = vadd.f32 %v9470_v5, %v11622_v1  ;;  %v11798_v42 = vpop.f32.mrf.mxu1  ;;  %v4304_v5 = vld [vmem:[#allocation2 + $0x7] sm:$0xff] }
 0x17e   : > { %4267 = vst [vmem:[#allocation2 + $0x198] sm:$0x1] %v10425_v54  ;;  %4268 = vst [vmem:[#allocation2 + $0x1b8] sm:$0x1] %v10425_v54  ;;  %v2311_v60 = vpop.f32.mrf.mxu0 }
 0x17f   : > { %4269 = vst [vmem:[#allocation2 + $0x1d8] sm:$0x1] %v10425_v54  ;;  %4270 = vst [vmem:[#allocation2 + $0x1f8] sm:$0x1] %v10425_v54  ;;  %v11804_v12 = vadd.f32 %v2311_v60, %v11625_v15  ;;  %v11806_v25 = vpop.f32.mrf.mxu1 }
 0x180   : > { %4271 = vst [vmem:[#allocation2 + $0x218] sm:$0x1] %v10425_v54  ;;  %v10326_v54 = vld [vmem:[%s13371_s3 + $0xc8] sm:$0xff]   ;;  %13397 = vst [vmem:[#allocation11_spill] sm:$0xff] %v11796_v35  ;;  %v9471_v1 = vpop.f32.mrf.mxu0 }
 0x181   : > { %13398 = vst [vmem:[#allocation12_spill] sm:$0xff] %v11798_v42  ;;  %9744 = vmatprep.subr.bf16.mxu0 %v10326_v54  ;;  %13399 = vst [vmem:[#allocation13_spill] sm:$0xff] %v11804_v12  ;;  %v11812_v17 = vadd.f32 %v9471_v1, %v11630_v36  ;;  %v11814_v9 = vpop.f32.mrf.mxu1 }
 0x182   : > { %9745 = vmatpush3.bf16.msra.mxu0 %v10326_v54  ;;  %13400 = vst [vmem:[#allocation14_spill] sm:$0xff] %v11806_v25  ;;  %v4340_v54 = vpack.c.bf16 %v4305_v18, %v4304_v5  ;;  %v11816_v15 = vpop.f32.mrf.mxu0  ;;  %v11838_v5 = vld [vmem:[%s13371_s3 + $0x1b8] sm:$0xff]  }
 0x183   : > { %9746 = vmatprep.subr.bf16.mxu0 %v10327_v6  ;;  %v11818_v60 = vpop.f32.mrf.mxu1  ;;  %13408 = vst [vmem:[#allocation22_spill] sm:$0xff] %v11838_v5  ;;  %9780 = vmatprep.subr.bf16.mxu1 %v11838_v5 }
 0x184   : > { %13401 = vst [vmem:[#allocation15_spill] sm:$0xff] %v11818_v60  ;;  %9700 = vmatprep.mubr.bf16.mxu1 %v4340_v54  ;;  %v9474_v25 = vpop.f32.mrf.mxu0 }
 0x185   : > { %v11821_v12 = vadd.f32 %v9474_v25, %v11641_v62  ;;  %v11823_v42 = vpop.f32.mrf.mxu1 }
 0x186   : > { %9747 = vmatpush3.bf16.msra.mxu0 %v10327_v6  ;;  %13403 = vst [vmem:[#allocation17_spill] sm:$0xff] %v11823_v42  ;;  %v2327_v35 = vpop.f32.mrf.mxu0 }
 0x187   : > { %13402 = vst [vmem:[#allocation16_spill] sm:$0xff] %v11821_v12  ;;  %v11826_v36 = vadd.f32 %v2327_v35, %v11644_v32  ;;  %v11828_v1 = vpop.f32.mrf.mxu1 }
 0x188   : > { %13405 = vst [vmem:[#allocation19_spill] sm:$0xff] %v11828_v1  ;;  %v9475_v28 = vpop.f32.mrf.mxu0 }
 0x189   : > { %13404 = vst [vmem:[#allocation18_spill] sm:$0xff] %v11826_v36  ;;  %v11831_v18 = vadd.f32 %v9475_v28, %v11649_v47  ;;  %v11833_v6 = vpop.f32.mrf.mxu1 }
 0x18a   : > { %13407 = vst [vmem:[#allocation21_spill] sm:$0xff] %v11833_v6  ;;  %v11840_v62 = vpop.f32.mrf.mxu0 }
 0x18b   : > { %13406 = vst [vmem:[#allocation20_spill] sm:$0xff] %v11831_v18  ;;  %13409 = vst [vmem:[#allocation23_spill] sm:$0xff] %v11840_v62  ;;  %v11842_v25 = vpop.f32.mrf.mxu1 }
 0x18c   : > { %13410 = vst [vmem:[#allocation24_spill] sm:$0xff] %v11842_v25  ;;  %v9478_v32 = vpop.f32.mrf.mxu0 }
 0x18d   : > { %v11846_v35 = vadd.f32 %v9478_v32, %v11660_v50  ;;  %v11848_v54 = vpop.f32.mrf.mxu1 }
 0x18e   : > { %13412 = vst [vmem:[#allocation26_spill] sm:$0xff] %v11848_v54  ;;  %v2343_v47 = vpop.f32.mrf.mxu0 }
 0x18f   : > { %13411 = vst [vmem:[#allocation25_spill] sm:$0xff] %v11846_v35  ;;  %v11851_v28 = vadd.f32 %v2343_v47, %v11663_v34  ;;  %v11853_v6 = vpop.f32.mrf.mxu1 }
 0x190   : > { %13414 = vst [vmem:[#allocation28_spill] sm:$0xff] %v11853_v6  ;;  %v9479_v18 = vpop.f32.mrf.mxu0 }
 0x191   : > { %13413 = vst [vmem:[#allocation27_spill] sm:$0xff] %v11851_v28  ;;  %v11856_v1 = vadd.f32 %v9479_v18, %v11668_v29  ;;  %v11858_v62 = vpop.f32.mrf.mxu1 }
 0x192   : > { %13416 = vst [vmem:[#allocation30_spill] sm:$0xff] %v11858_v62  ;;  %v11860_v25 = vpop.f32.mrf.mxu0 }
 0x193   : > { %13415 = vst [vmem:[#allocation29_spill] sm:$0xff] %v11856_v1  ;;  %13417 = vst [vmem:[#allocation31_spill] sm:$0xff] %v11860_v25  ;;  %v11862_v5 = vpop.f32.mrf.mxu1 }
 0x194   : > { %13418 = vst [vmem:[#allocation32_spill] sm:$0xff] %v11862_v5  ;;  %v9482_v50 = vpop.f32.mrf.mxu0 }
 0x195   : > { %v11865_v32 = vadd.f32 %v9482_v50, %v11681_v48  ;;  %v11867_v54 = vpop.f32.mrf.mxu1 }
 0x196   : > { %13420 = vst [vmem:[#allocation34_spill] sm:$0xff] %v11867_v54  ;;  %v2359_v34 = vpop.f32.mrf.mxu0 }
 0x197   : > { %13419 = vst [vmem:[#allocation33_spill] sm:$0xff] %v11865_v32  ;;  %v11870_v47 = vadd.f32 %v2359_v34, %v11684_v30  ;;  %v11872_v6 = vpop.f32.mrf.mxu1 }
 0x198   : > { %13422 = vst [vmem:[#allocation36_spill] sm:$0xff] %v11872_v6  ;;  %v9483_v29 = vpop.f32.mrf.mxu0 }
 0x199   : > { %13421 = vst [vmem:[#allocation35_spill] sm:$0xff] %v11870_v47  ;;  %v11875_v18 = vadd.f32 %v9483_v29, %v11688_v40  ;;  %v11877_v62 = vpop.f32.mrf.mxu1 }
 0x19a   : > { %13424 = vst [vmem:[#allocation38_spill] sm:$0xff] %v11877_v62  ;;  %v11879_v1 = vpop.f32.mrf.mxu0 }
 0x19b   : > { %13423 = vst [vmem:[#allocation37_spill] sm:$0xff] %v11875_v18  ;;  %13425 = vst [vmem:[#allocation39_spill] sm:$0xff] %v11879_v1  ;;  %v11881_v5 = vpop.f32.mrf.mxu1 }
 0x19c   : > { %13426 = vst [vmem:[#allocation40_spill] sm:$0xff] %v11881_v5  ;;  %v9486_v48 = vpop.f32.mrf.mxu0 }
 0x19d   : > { %v11884_v50 = vadd.f32 %v9486_v48, %v11703_v51  ;;  %v11886_v54 = vpop.f32.mrf.mxu1  ;;  %v11905_v51 = vld [vmem:[%s13371_s3 + $0x78] sm:$0xff]  }
 0x19e   : > { %13428 = vst [vmem:[#allocation42_spill] sm:$0xff] %v11886_v54  ;;  %v2375_v30 = vpop.f32.mrf.mxu0  ;;  %13435 = vst [vmem:[#allocation49_spill] sm:$0xff] %v11905_v51  ;;  %9828 = vmatprep.subr.bf16.mxu0 %v11905_v51 }
 0x19f   : > { %13427 = vst [vmem:[#allocation41_spill] sm:$0xff] %v11884_v50  ;;  %v11889_v34 = vadd.f32 %v2375_v30, %v11706_v59  ;;  %v11891_v6 = vpop.f32.mrf.mxu1 }
 0x1a0   : > { %13430 = vst [vmem:[#allocation44_spill] sm:$0xff] %v11891_v6  ;;  %v9487_v40 = vpop.f32.mrf.mxu0 }
 0x1a1   : > { %13429 = vst [vmem:[#allocation43_spill] sm:$0xff] %v11889_v34  ;;  %v11894_v29 = vadd.f32 %v9487_v40, %v11710_v2  ;;  %v11896_v62 = vpop.f32.mrf.mxu1 }
 0x1a2   : > { %13432 = vst [vmem:[#allocation46_spill] sm:$0xff] %v11896_v62  ;;  %v11898_v18 = vpop.f32.mrf.mxu0 }
 0x1a3   : > { %13431 = vst [vmem:[#allocation45_spill] sm:$0xff] %v11894_v29  ;;  %13433 = vst [vmem:[#allocation47_spill] sm:$0xff] %v11898_v18  ;;  %v11900_v5 = vpop.f32.mrf.mxu1 }
 0x1a4   : > { %13434 = vst [vmem:[#allocation48_spill] sm:$0xff] %v11900_v5  ;;  %v9490_v48 = vpop.f32.mrf.mxu0 }
 0x1a5   : > { %v11908_v59 = vadd.f32 %v9490_v48, %v11722_v56  ;;  %v11910_v30 = vpop.f32.mrf.mxu1 }
 0x1a6   : > { %13437 = vst [vmem:[#allocation51_spill] sm:$0xff] %v11910_v30  ;;  %v2391_v2 = vpop.f32.mrf.mxu0 }
 0x1a7   : > { %13436 = vst [vmem:[#allocation50_spill] sm:$0xff] %v11908_v59  ;;  %v11914_v40 = vadd.f32 %v2391_v2, %v11728_v13  ;;  %v11916_v62 = vpop.f32.mrf.mxu1 }
 0x1a8   : > { %13439 = vst [vmem:[#allocation53_spill] sm:$0xff] %v11916_v62  ;;  %v9491_v5 = vpop.f32.mrf.mxu0 }
 0x1a9   : > { %13438 = vst [vmem:[#allocation52_spill] sm:$0xff] %v11914_v40  ;;  %v11919_v29 = vadd.f32 %v9491_v5, %v11732_v43  ;;  %v11921_v6 = vpop.f32.mrf.mxu1 }
 0x1aa   : > { %13441 = vst [vmem:[#allocation55_spill] sm:$0xff] %v11921_v6  ;;  %v11923_v34 = vpop.f32.mrf.mxu0 }
 0x1ab   : > { %13440 = vst [vmem:[#allocation54_spill] sm:$0xff] %v11919_v29  ;;  %13442 = vst [vmem:[#allocation56_spill] sm:$0xff] %v11923_v34  ;;  %v11925_v56 = vpop.f32.mrf.mxu1 }
 0x1ac   : > { %13443 = vst [vmem:[#allocation57_spill] sm:$0xff] %v11925_v56  ;;  %v9558_v48 = vpop.f32.mrf.mxu0 }
 0x1ad   : > { %v9606_v30 = vpop.f32.mrf.mxu1 }
 0x1ae   : > { %v3232_v59 = vpop.f32.mrf.mxu0 }
 0x1af   : > { %v3568_v18 = vpop.f32.mrf.mxu1 }
 0x1b0   : > { %v9559_v54 = vpop.f32.mrf.mxu0 }
 0x1b1   : > { %v11927_v50 = vpop.f32.mrf.mxu1 }
 0x1b2   : > { %v3235_v13 = vpop.f32.mrf.mxu0 }
 0x1b3   : > { %v11931_v62 = vpop.f32.mrf.mxu1 }
 0x1b4   : > { %v11929_v2 = vpop.f32.mrf.mxu0 }
 0x1b5   : > { %v11937_v6 = vpop.f32.mrf.mxu1 }
 0x1b6   : > { %v11933_v43 = vpop.f32.mrf.mxu0 }
 0x1b7   : > { %v11943_v40 = vpop.f32.mrf.mxu1 }
 0x1b8   : > { %v11935_v5 = vpop.f32.mrf.mxu0 }
 0x1b9   : > { %v11949_v1 = vpop.f32.mrf.mxu1 }
 0x1ba   : > { %v11939_v29 = vpop.f32.mrf.mxu0 }
 0x1bb   : > { %v11955_v51 = vpop.f32.mrf.mxu1 }
 0x1bc   : > { %v11941_v56 = vpop.f32.mrf.mxu0  ;;  %13448 = vst [vmem:[#allocation62_spill] sm:$0xff] %v11955_v51 }
 0x1bd   : > { %v11961_v36 = vpop.f32.mrf.mxu1 }
 0x1be   : > { %v11945_v34 = vpop.f32.mrf.mxu0  ;;  %13451 = vst [vmem:[#allocation65_spill] sm:$0xff] %v11961_v36 }
 0x1bf   : > { %13444 = vst [vmem:[#allocation58_spill] sm:$0xff] %v11945_v34  ;;  %v11967_v60 = vpop.f32.mrf.mxu1 }
 0x1c0   : > { %v11947_v47 = vpop.f32.mrf.mxu0  ;;  %13454 = vst [vmem:[#allocation68_spill] sm:$0xff] %v11967_v60 }
 0x1c1   : > { %13445 = vst [vmem:[#allocation59_spill] sm:$0xff] %v11947_v47 }
 0x1c2   : > { %v11951_v32 = vpop.f32.mrf.mxu0 }
 0x1c3   : > { %13446 = vst [vmem:[#allocation60_spill] sm:$0xff] %v11951_v32  ;;  %v11973_v32 = vpop.f32.mrf.mxu1 }
 0x1c4   : > { %v11953_v28 = vpop.f32.mrf.mxu0  ;;  %13457 = vst [vmem:[#allocation71_spill] sm:$0xff] %v11973_v32 }
 0x1c5   : > { %13447 = vst [vmem:[#allocation61_spill] sm:$0xff] %v11953_v28 }
 0x1c6   : > { %v11957_v25 = vpop.f32.mrf.mxu0 }
 0x1c7   : > { %13449 = vst [vmem:[#allocation63_spill] sm:$0xff] %v11957_v25  ;;  %v11979_v25 = vpop.f32.mrf.mxu1 }
 0x1c8   : > { %v11959_v35 = vpop.f32.mrf.mxu0 }
 0x1c9   : > { %13450 = vst [vmem:[#allocation64_spill] sm:$0xff] %v11959_v35 }
 0x1ca   : > { %v11963_v42 = vpop.f32.mrf.mxu0 }
 0x1cb   : > { %13452 = vst [vmem:[#allocation66_spill] sm:$0xff] %v11963_v42  ;;  %v11985_v42 = vpop.f32.mrf.mxu1 }
 0x1cc   : > { %v11965_v12 = vpop.f32.mrf.mxu0  ;;  %13462 = vst [vmem:[#allocation76_spill] sm:$0xff] %v11985_v42 }
 0x1cd   : > { %13453 = vst [vmem:[#allocation67_spill] sm:$0xff] %v11965_v12 }
 0x1ce   : > { %v11969_v47 = vpop.f32.mrf.mxu0 }
 0x1cf   : > { %13455 = vst [vmem:[#allocation69_spill] sm:$0xff] %v11969_v47  ;;  %v11991_v47 = vpop.f32.mrf.mxu1 }
 0x1d0   : > { %v11971_v34 = vpop.f32.mrf.mxu0  ;;  %13465 = vst [vmem:[#allocation79_spill] sm:$0xff] %v11991_v47 }
 0x1d1   : > { %13456 = vst [vmem:[#allocation70_spill] sm:$0xff] %v11971_v34 }
 0x1d2   : > { %v11975_v28 = vpop.f32.mrf.mxu0 }
 0x1d3   : > { %13458 = vst [vmem:[#allocation72_spill] sm:$0xff] %v11975_v28  ;;  %v11997_v28 = vpop.f32.mrf.mxu1 }
 0x1d4   : > { %v11977_v51 = vpop.f32.mrf.mxu0  ;;  %13468 = vst [vmem:[#allocation82_spill] sm:$0xff] %v11997_v28 }
 0x1d5   : > { %13459 = vst [vmem:[#allocation73_spill] sm:$0xff] %v11977_v51  ;;  %v12007_v42 = vpop.f32.mrf.mxu1 }
 0x1d6   : > { %v11981_v35 = vpop.f32.mrf.mxu0 }
 0x1d7   : > { %13460 = vst [vmem:[#allocation74_spill] sm:$0xff] %v11981_v35  ;;  %v2089_v35 = vadd.f32 %v11600_v58, %v11596_v22  ;;  %v2791_v22 = vadd.f32 %v11758_v55, %v11756_v61 }
 0x1d8   : > { %v11983_v36 = vpop.f32.mrf.mxu0 }
 0x1d9   : > { %13461 = vst [vmem:[#allocation75_spill] sm:$0xff] %v11983_v36 }
 0x1da   : > { %v11987_v12 = vpop.f32.mrf.mxu0 }
 0x1db   : > { %13463 = vst [vmem:[#allocation77_spill] sm:$0xff] %v11987_v12  ;;  %v2790_v12 = vadd.f32 %v11745_v14, %v11743_v21 }
 0x1dc   : > { %v11989_v60 = vpop.f32.mrf.mxu0 }
 0x1dd   : > { %13464 = vst [vmem:[#allocation78_spill] sm:$0xff] %v11989_v60  ;;  %v2439_v60 = vadd.f32 %v11760_v33, %v2089_v35  ;;  %v3394_v33 = vadd.f32 %v9559_v54, %v2791_v22  ;;  %v2093_v35 = vadd.f32 %v11616_v45, %v11612_v31  ;;  %v954_v31 = vadd.f32 %v11551_v8, %v11547_v3 }
 0x1de   : > { %v11993_v34 = vpop.f32.mrf.mxu0  ;;  %v2792_v45 = vadd.f32 %v11775_v52, %v11773_v38 }
 0x1df   : > { %13466 = vst [vmem:[#allocation80_spill] sm:$0xff] %v11993_v34  ;;  %v3393_v34 = vadd.f32 %v9558_v48, %v2790_v12  ;;  %v2789_v21 = vadd.f32 %v11762_v23, %v2439_v60  ;;  %v12028_v12 = vld [vmem:[%s13370_s2] ss:$0 sm:$0xff]  ;;  %v950_v60 = vadd.f32 %v11522_v4, %v11518_v57  ;;  %v2443_v54 = vadd.f32 %v11788_v63, %v2093_v35 }
 0x1e0   : > { %v11995_v32 = vpop.f32.mrf.mxu0  ;;  %v962_v57 = vadd.f32 %v11584_v16, %v11582_v44  ;;  %v2795_v4 = vadd.f32 %v11783_v27, %v11781_v46  ;;  %v3395_v38 = vadd.f32 %v11933_v43, %v2792_v45  ;;  %v13477_v45 = vld [vmem:[#allocation62_spill] sm:$0xff] }
 0x1e1   : > { %13467 = vst [vmem:[#allocation81_spill] sm:$0xff] %v11995_v32  ;;  %v2788_v32 = vadd.f32 %v11750_v49, %v11748_v53  ;;  %v2794_v49 = vadd.f32 %v11770_v20, %v11768_v11  ;;  %v2793_v44 = vadd.f32 %v11790_v10, %v2443_v54  ;;  %v1278_v48 = vadd.f32 %v11665_v24, %v950_v60 }
 0x1e2   : > { %v11999_v51 = vpop.f32.mrf.mxu0  ;;  %v3398_v16 = vadd.f32 %v11935_v5, %v2795_v4  ;;  %v13479_v4 = vld [vmem:[#allocation5_spill] sm:$0xff] }
 0x1e3   : > { %13469 = vst [vmem:[#allocation83_spill] sm:$0xff] %v11999_v51  ;;  %v3391_v58 = vadd.f32 %v3232_v59, %v2788_v32  ;;  %v3729_v51 = vadd.f32 %v9606_v30, %v3393_v34  ;;  %v3730_v34 = vadd.f32 %v11927_v50, %v3394_v33  ;;  %v3397_v11 = vadd.f32 %v11929_v2, %v2794_v49 }
 0x1e4   : > { %v12003_v36 = vpop.f32.mrf.mxu0  ;;  %v3731_v2 = vadd.f32 %v11943_v40, %v3395_v38  ;;  %v3734_v33 = vadd.f32 %v11949_v1, %v3398_v16  ;;  %v13481_v38 = vld [vmem:[#allocation15_spill] sm:$0xff] }
 0x1e5   : > { %13470 = vst [vmem:[#allocation84_spill] sm:$0xff] %v12003_v36  ;;  %v12018_v36 = vpop.f32.mrf.mxu1  ;;  %v3727_v61 = vadd.f32 %v3568_v18, %v3391_v58  ;;  %v3733_v27 = vadd.f32 %v11937_v6, %v3397_v11  ;;  %v13474_v58 = vld [vmem:[#allocation13_spill] sm:$0xff] }
 0x1e6   : > { %v12010_v47 = vpop.f32.mrf.mxu0 }
 0x1e7   : > { %13471 = vst [vmem:[#allocation85_spill] sm:$0xff] %v12010_v47  ;;  %v3392_v47 = vadd.f32 %v3235_v13, %v2789_v21  ;;  %v12032_v55 = vpop.f32.mrf.mxu1  ;;  %v13473_v13 = vld [vmem:[#allocation12_spill] sm:$0xff]  ;;  %v13475_v21 = vld [vmem:[#allocation14_spill] sm:$0xff] }
 0x1e8   : > { %v12014_v28 = vpop.f32.mrf.mxu0  ;;  %v2796_v24 = vadd.f32 %v13475_v21, %v13474_v58 }
 0x1e9   : > { %v3728_v3 = vadd.f32 %v11931_v62, %v3392_v47  ;;  %v12052_v52 = vpop.f32.mrf.mxu1 }
 0x1ea   : > { %v12021_v14 = vpop.f32.mrf.mxu0 }
 0x1eb   : > { %v12071_v43 = vpop.f32.mrf.mxu1 }
 0x1ec   : > { %v9654_v53 = vpop.f32.mrf.mxu0 }
 0x1ed   : > { %v4065_v23 = vadd.f32 %v9654_v53, %v3729_v51  ;;  %v958_v51 = vadd.f32 %v11571_v0, %v11569_v37  ;;  %v2097_v37 = vadd.f32 %v11632_v19, %v11628_v39  ;;  %v12059_v0 = vadd.f32 %v11651_v7, %v11647_v41  ;;  %v13472_v19 = vld [vmem:[#allocation11_spill] sm:$0xff] }
 0x1ee   : > { %v3904_v32 = vpop.f32.mrf.mxu0  ;;  %v1282_v39 = vadd.f32 %v11686_v26, %v954_v31  ;;  %v2798_v41 = vadd.f32 %v13473_v13, %v13472_v19  ;;  %v3396_v7 = vadd.f32 %v11939_v29, %v2793_v44  ;;  %v2799_v31 = vadd.f32 %v11814_v9, %v11812_v17  ;;  %v13482_v9 = vld [vmem:[#allocation65_spill] sm:$0xff]  ;;  %v13488_v13 = vld [vmem:[#allocation60_spill] sm:$0xff] }
 0x1ef   : > { %v4168_v20 = vadd.f32 %v12028_v12, %v4065_v23  ;;  %v4063_v18 = vadd.f32 %v3904_v32, %v3727_v61  ;;  %v2447_v26 = vadd.f32 %v11816_v15, %v2097_v37  ;;  %v13476_v23 = vld [vmem:[#allocation7_spill] sm:$0xff]  ;;  %v13478_v15 = vld [vmem:[#allocation58_spill] sm:$0xff] }
 0x1f0   : > { %v9655_v8 = vpop.f32.mrf.mxu0  ;;  %v3401_v35 = vadd.f32 %v11941_v56, %v2798_v41  ;;  %v1286_v60 = vadd.f32 %v13476_v23, %v958_v51  ;;  %v3732_v54 = vadd.f32 %v13477_v45, %v3396_v7  ;;  %v3399_v32 = vadd.f32 %v13478_v15, %v2796_v24  ;;  %v13480_v51 = vld [vmem:[#allocation9_spill] sm:$0xff]  ;;  %v13491_v24 = vld [vmem:[#allocation18_spill] sm:$0xff]  ;;  %v13495_v23 = vld [vmem:[#allocation71_spill] sm:$0xff] }
 0x1f1   : > { %v4200_v63 = vmax.f32 %v4168_v20, 0.0  ;;  %v4166_v50 = vadd.f32 %v12028_v12, %v4063_v18  ;;  %v4066_v59 = vadd.f32 %v9655_v8, %v3730_v34  ;;  %v12087_v34 = vpop.f32.mrf.mxu1  ;;  %v1290_v8 = vadd.f32 %v13480_v51, %v962_v57  ;;  %v13487_v57 = vld [vmem:[#allocation17_spill] sm:$0xff] }
 0x1f2   : > { %v3907_v46 = vpop.f32.mrf.mxu0  ;;  %v2797_v17 = vadd.f32 %v13481_v38, %v2447_v26  ;;  %v13492_v26 = vld [vmem:[#allocation19_spill] sm:$0xff] }
 0x1f3   : > { %4274 = vst [vmem:[#allocation2 + $0x48] sm:$0xff] %v4200_v63  ;;  %v4198_v62 = vmax.f32 %v4166_v50, 0.0  ;;  %v4169_v47 = vadd.f32 %v12028_v12, %v4066_v59  ;;  %v4064_v30 = vadd.f32 %v3907_v46, %v3728_v3  ;;  %v2105_v3 = vadd.f32 %v13479_v4, %v1278_v48  ;;  %v13483_v59 = vld [vmem:[#allocation59_spill] sm:$0xff]  ;;  %v13486_v48 = vld [vmem:[#allocation16_spill] sm:$0xff] }
 0x1f4   : > { %v9658_v10 = vpop.f32.mrf.mxu0  ;;  %v3402_v37 = vadd.f32 %v13483_v59, %v2799_v31  ;;  %v2802_v19 = vadd.f32 %v13487_v57, %v13486_v48  ;;  %v3400_v41 = vadd.f32 %v13488_v13, %v2797_v17  ;;  %v13498_v4 = vld [vmem:[#allocation63_spill] sm:$0xff] }
 0x1f5   : > { %4272 = vst [vmem:[#allocation2 + $0x28] sm:$0xff] %v4198_v62  ;;  %v4201_v6 = vmax.f32 %v4169_v47, 0.0  ;;  %v4167_v5 = vadd.f32 %v12028_v12, %v4064_v30  ;;  %v4069_v22 = vadd.f32 %v9658_v10, %v3733_v27  ;;  %v13484_v27 = vld [vmem:[#allocation6_spill] sm:$0xff]  ;;  %v13489_v10 = vld [vmem:[#allocation68_spill] sm:$0xff] }
 0x1f6   : > { %v3920_v29 = vpop.f32.mrf.mxu0  ;;  %v12099_v47 = vadd.f32 %v13484_v27, %v1282_v39  ;;  %v13490_v39 = vld [vmem:[#allocation10_spill] sm:$0xff]  ;;  %v13500_v27 = vld [vmem:[#allocation76_spill] sm:$0xff] }
 0x1f7   : > { %4275 = vst [vmem:[#allocation2 + $0x50] sm:$0xff] %v4201_v6  ;;  %v4199_v53 = vmax.f32 %v4167_v5, 0.0  ;;  %v4172_v40 = vadd.f32 %v12028_v12, %v4069_v22  ;;  %v4067_v49 = vadd.f32 %v3920_v29, %v3731_v2  ;;  %v12080_v61 = vpack.c.bf16 %v4201_v6, %v4200_v63  ;;  %v12108_v6 = vpop.f32.mrf.mxu1 }
 0x1f8   : > { %v9659_v1 = vpop.f32.mrf.mxu0  ;;  %v3737_v63 = vadd.f32 %v13482_v9, %v3401_v35  ;;  %v3735_v2 = vadd.f32 %v13489_v10, %v3399_v32  ;;  %v12112_v21 = vadd.f32 %v13490_v39, %v1290_v8  ;;  %v13493_v35 = vld [vmem:[#allocation23_spill] sm:$0xff]  ;;  %v13496_v32 = vld [vmem:[#allocation20_spill] sm:$0xff] }
 0x1f9   : > { %4273 = vst [vmem:[#allocation2 + $0x30] sm:$0xff] %v4199_v53  ;;  %v4204_v56 = vmax.f32 %v4172_v40, 0.0  ;;  %v4170_v11 = vadd.f32 %v12028_v12, %v4067_v49  ;;  %v4070_v20 = vadd.f32 %v9659_v1, %v3734_v33  ;;  %v12090_v18 = vpack.c.bf16 %v4199_v53, %v4198_v62  ;;  %v13485_v62 = vld [vmem:[#allocation8_spill] sm:$0xff]  ;;  %v13494_v53 = vld [vmem:[#allocation61_spill] sm:$0xff]  ;;  %v12129_v9 = vpop.f32.mrf.mxu1 }
 0x1fa   : > { %v3923_v50 = vpop.f32.mrf.mxu0  ;;  %v12102_v30 = vadd.f32 %v13485_v62, %v1286_v60  ;;  %v2800_v33 = vadd.f32 %v13492_v26, %v13491_v24  ;;  %v2451_v29 = vadd.f32 %v13493_v35, %v12059_v0  ;;  %v3405_v40 = vadd.f32 %v13494_v53, %v2802_v19  ;;  %v13497_v1 = vld [vmem:[#allocation21_spill] sm:$0xff]  ;;  %v10334_v19 = vld [vmem:[%s13371_s3 + $0x70] sm:$0xff]  }
 0x1fb   : > { %4278 = vst [vmem:[#allocation2 + $0x88] sm:$0xff] %v4204_v56  ;;  %v4202_v44 = vmax.f32 %v4170_v11, 0.0  ;;  %v4173_v16 = vadd.f32 %v12028_v12, %v4070_v20  ;;  %v4068_v46 = vadd.f32 %v3923_v50, %v3732_v54  ;;  %v3738_v60 = vadd.f32 %v13495_v23, %v3402_v37  ;;  %v13504_v24 = vld [vmem:[#allocation31_spill] sm:$0xff] }
 0x1fc   : > { %v9662_v7 = vpop.f32.mrf.mxu0  ;;  %v2803_v11 = vadd.f32 %v13497_v1, %v13496_v32  ;;  %v3736_v20 = vadd.f32 %v11979_v25, %v3400_v41  ;;  %v3403_v51 = vadd.f32 %v13498_v4, %v2800_v33  ;;  %v4306_v8 = vld [vmem:[#allocation2 + $0x27] sm:$0xff]  ;;  %v3741_v62 = vadd.f32 %v13500_v27, %v3405_v40  ;;  %v13501_v41 = vld [vmem:[#allocation64_spill] sm:$0xff]  ;;  %v12157_v40 = vpop.f32.mrf.mxu1 }
 0x1fd   : > { %4276 = vst [vmem:[#allocation2 + $0x68] sm:$0xff] %v4202_v44  ;;  %v4205_v5 = vmax.f32 %v4173_v16, 0.0  ;;  %v4171_v22 = vadd.f32 %v12028_v12, %v4068_v46  ;;  %v4073_v58 = vadd.f32 %v9662_v7, %v3737_v63  ;;  %v4308_v16 = vld [vmem:[#allocation2 + $0x47] sm:$0xff]  ;;  %v13499_v46 = vld [vmem:[#allocation24_spill] sm:$0xff]  ;;  %v2455_v26 = vadd.f32 %v13504_v24, %v2105_v3  ;;  %v13509_v3 = vld [vmem:[#allocation27_spill] sm:$0xff] }
 0x1fe   : > { %v3936_v49 = vpop.f32.mrf.mxu0  ;;  %v4309_v15 = vld [vmem:[#allocation2 + $0x4f] sm:$0xff]  ;;  %v2801_v25 = vadd.f32 %v13499_v46, %v2451_v29  ;;  %v3406_v7 = vadd.f32 %v13501_v41, %v2803_v11  ;;  %v13511_v32 = vld [vmem:[#allocation29_spill] sm:$0xff] }
 0x1ff   : > { %4279 = vst [vmem:[#allocation2 + $0x90] sm:$0xff] %v4205_v5  ;;  %v4203_v31 = vmax.f32 %v4171_v22, 0.0  ;;  %v12121_v45 = vadd.f32 %v12028_v12, %v4073_v58  ;;  %v4071_v54 = vadd.f32 %v3936_v49, %v3735_v2  ;;  %v12127_v17 = vpack.c.bf16 %v4205_v5, %v4204_v56  ;;  %v10329_v56 = vld [vmem:[%s13371_s3 + $0x1b0] sm:$0xff]   ;;  %v13502_v22 = vld [vmem:[#allocation25_spill] sm:$0xff]  ;;  %v13503_v58 = vld [vmem:[#allocation26_spill] sm:$0xff] }
 0x200   : > { %v9663_v0 = vpop.f32.mrf.mxu0  ;;  %v4307_v38 = vld [vmem:[#allocation2 + $0x2f] sm:$0xff]  ;;  %v12137_v57 = vpack.c.bf16 %v4309_v15, %v4308_v16  ;;  %v2806_v39 = vadd.f32 %v13503_v58, %v13502_v22 }
 0x201   : > { %4277 = vst [vmem:[#allocation2 + $0x70] sm:$0xff] %v4203_v31  ;;  %v4208_v63 = vmax.f32 %v12121_v45, 0.0  ;;  %v12133_v50 = vadd.f32 %v12028_v12, %v4071_v54  ;;  %v4074_v59 = vadd.f32 %v9663_v0, %v3738_v60  ;;  %v4341_v37 = vpack.c.bf16 %v4307_v38, %v4306_v8  ;;  %v13505_v33 = vld [vmem:[#allocation66_spill] sm:$0xff]  ;;  %v13508_v45 = vld [vmem:[#allocation49_spill] sm:$0xff]  ;;  %v13510_v54 = vld [vmem:[#allocation28_spill] sm:$0xff] }
 0x202   : > { %v3939_v48 = vpop.f32.mrf.mxu0  ;;  %v12145_v13 = vpack.c.bf16 %v4203_v31, %v4202_v44  ;;  %v3404_v35 = vadd.f32 %v13505_v33, %v2801_v25  ;;  %v13506_v44 = vld [vmem:[#allocation79_spill] sm:$0xff]  ;;  %v13507_v31 = vld [vmem:[#allocation22_spill] sm:$0xff]  ;;  %v2804_v15 = vadd.f32 %v13510_v54, %v13509_v3  ;;  %v13515_v25 = vld [vmem:[#allocation32_spill] sm:$0xff] }
 0x203   : > { %4282 = vst [vmem:[#allocation2 + $0xc8] sm:$0xff] %v4208_v63  ;;  %v4206_v10 = vmax.f32 %v12133_v50, 0.0  ;;  %v4177_v2 = vadd.f32 %v12028_v12, %v4074_v59  ;;  %v4072_v5 = vadd.f32 %v3939_v48, %v3736_v20  ;;  %9701 = vmatmul.mubr.bf16.vlgmr.msra.gmra.mxu1 %v4341_v37  ;;  %9748 = vmatprep.mubr.bf16.mxu0 %v4341_v37  ;;  %v13512_v1 = vld [vmem:[#allocation30_spill] sm:$0xff]  ;;  %v13513_v20 = vld [vmem:[#allocation67_spill] sm:$0xff]  ;;  %v13516_v48 = vld [vmem:[#allocation69_spill] sm:$0xff] }
 0x204   : > { %v9666_v29 = vpop.f32.mrf.mxu0  ;;  %9704 = vmatprep.mubr.bf16.mxu1 %v12137_v57  ;;  %9749 = vmatmul.mubr.bf16.vlgmr.msra.gmra.mxu0 %v12137_v57  ;;  %v3739_v53 = vadd.f32 %v13506_v44, %v3403_v51  ;;  %v2807_v11 = vadd.f32 %v13512_v1, %v13511_v32  ;;  %v3409_v4 = vadd.f32 %v13513_v20, %v2806_v39  ;;  %v10330_v0 = vld [vmem:[%s13371_s3 + $0x1a8] sm:$0xff]   ;;  %v12182_v39 = vpop.f32.mrf.mxu1  ;;  %v13520_v54 = vld [vmem:[#allocation39_spill] sm:$0xff] }
 0x205   : > { %4280 = vst [vmem:[#allocation2 + $0xa8] sm:$0xff] %v4206_v10  ;;  %v4209_v49 = vmax.f32 %v4177_v2, 0.0  ;;  %v4175_v23 = vadd.f32 %v12028_v12, %v4072_v5  ;;  %v4077_v60 = vadd.f32 %v9666_v29, %v3741_v62  ;;  %9781 = vmatpush3.bf16.msra.mxu1 %v13507_v31  ;;  %9829 = vmatpush3.bf16.msra.mxu0 %v13508_v45  ;;  %v10336_v8 = vld [vmem:[%s13371_s3 + $0x68] sm:$0xff]   ;;  %v13518_v31 = vld [vmem:[#allocation33_spill] sm:$0xff] }
 0x206   : > { %v3952_v51 = vpop.f32.mrf.mxu0  ;;  %9782 = vmatprep.subr.bf16.mxu1 %v10329_v56  ;;  %9830 = vmatprep.subr.bf16.mxu0 %v10334_v19  ;;  %v13514_v38 = vld [vmem:[#allocation82_spill] sm:$0xff]  ;;  %v2805_v27 = vadd.f32 %v13515_v25, %v2455_v26  ;;  %v3740_v62 = vadd.f32 %v12007_v42, %v3404_v35  ;;  %v3407_v41 = vadd.f32 %v13516_v48, %v2804_v15  ;;  %v12214_v20 = vpop.f32.mrf.mxu1  ;;  %v13526_v25 = vld [vmem:[#allocation73_spill] sm:$0xff] }
 0x207   : > { %v3742_v50 = vadd.f32 %v13514_v38, %v3406_v7  ;;  %4283 = vst [vmem:[#allocation2 + $0xd0] sm:$0xff] %v4209_v49  ;;  %v4207_v59 = vmax.f32 %v4175_v23, 0.0  ;;  %v12175_v37 = vadd.f32 %v12028_v12, %v4077_v60  ;;  %v4075_v16 = vadd.f32 %v3952_v51, %v3739_v53  ;;  %v4313_v46 = vld [vmem:[#allocation2 + $0x8f] sm:$0xff]  ;;  %v4310_v5 = vld [vmem:[#allocation2 + $0x67] sm:$0xff] }
 0x208   : > { %v9667_v2 = vpop.f32.mrf.mxu0  ;;  %v4311_v22 = vld [vmem:[#allocation2 + $0x6f] sm:$0xff]  ;;  %v12180_v58 = vpack.c.bf16 %v4209_v49, %v4208_v63  ;;  %v4312_v26 = vld [vmem:[#allocation2 + $0x87] sm:$0xff]  ;;  %v3745_v42 = vadd.f32 %v12018_v36, %v3409_v4  ;;  %v2459_v15 = vadd.f32 %v13520_v54, %v12099_v47  ;;  %v13523_v47 = vld [vmem:[#allocation36_spill] sm:$0xff] }
 0x209   : > { %4281 = vst [vmem:[#allocation2 + $0xb0] sm:$0xff] %v4207_v59  ;;  %v4212_v7 = vmax.f32 %v12175_v37, 0.0  ;;  %v12186_v24 = vadd.f32 %v12028_v12, %v4075_v16  ;;  %v4078_v33 = vadd.f32 %v9667_v2, %v3742_v50  ;;  %v12188_v29 = vpack.c.bf16 %v4311_v22, %v4310_v5  ;;  %9783 = vmatpush3.bf16.msra.mxu1 %v10329_v56  ;;  %v10331_v63 = vld [vmem:[%s13371_s3 + $0x1a0] sm:$0xff]   ;;  %v13517_v23 = vld [vmem:[#allocation70_spill] sm:$0xff]  ;;  %v13522_v50 = vld [vmem:[#allocation35_spill] sm:$0xff] }
 0x20a   : > { %9831 = vmatpush3.bf16.msra.mxu0 %v10334_v19  ;;  %v3955_v35 = vpop.f32.mrf.mxu0  ;;  %v12191_v44 = vpack.c.bf16 %v4313_v46, %v4312_v26  ;;  %9784 = vmatprep.subr.bf16.mxu1 %v10330_v0  ;;  %v10337_v53 = vld [vmem:[%s13371_s3 + $0x60] sm:$0xff]   ;;  %v12199_v49 = vpack.c.bf16 %v4207_v59, %v4206_v10  ;;  %v3410_v56 = vadd.f32 %v13517_v23, %v2807_v11  ;;  %v13519_v45 = vld [vmem:[#allocation34_spill] sm:$0xff]  ;;  %v13521_v10 = vld [vmem:[#allocation72_spill] sm:$0xff] }
 0x20b   : > { %9832 = vmatprep.subr.bf16.mxu0 %v10336_v8  ;;  %4286 = vst [vmem:[#allocation2 + $0x108] sm:$0xff] %v4212_v7  ;;  %v4210_v36 = vmax.f32 %v12186_v24, 0.0  ;;  %v4181_v19 = vadd.f32 %v12028_v12, %v4078_v33  ;;  %v4076_v60 = vadd.f32 %v3955_v35, %v3740_v62  ;;  %9705 = vmatmul.mubr.bf16.gmra.mxu1 %v12188_v29  ;;  %v13524_v37 = vld [vmem:[#allocation37_spill] sm:$0xff]  ;;  %v13525_v16 = vld [vmem:[#allocation38_spill] sm:$0xff]  ;;  %v13527_v22 = vld [vmem:[#allocation40_spill] sm:$0xff] }
 0x20c   : > { %9752 = vmatprep.mubr.bf16.mxu0 %v12188_v29  ;;  %v2810_v3 = vadd.f32 %v13519_v45, %v13518_v31  ;;  %v3408_v32 = vadd.f32 %v13521_v10, %v2805_v27  ;;  %v9670_v1 = vpop.f32.mrf.mxu0  ;;  %9708 = vmatprep.mubr.bf16.mxu1 %v12191_v44  ;;  %v3743_v11 = vadd.f32 %v12032_v55, %v3407_v41  ;;  %v10332_v55 = vld [vmem:[%s13371_s3 + $0x198] sm:$0xff]   ;;  %v13528_v26 = vld [vmem:[#allocation74_spill] sm:$0xff]  ;;  %v12237_v31 = vpop.f32.mrf.mxu1 }
 0x20d   : > { %9753 = vmatmul.mubr.bf16.gmra.mxu0 %v12191_v44  ;;  %4284 = vst [vmem:[#allocation2 + $0xe8] sm:$0xff] %v4210_v36  ;;  %v4213_v4 = vmax.f32 %v4181_v19, 0.0  ;;  %v4179_v51 = vadd.f32 %v12028_v12, %v4076_v60  ;;  %v4081_v38 = vadd.f32 %v9670_v1, %v3745_v42  ;;  %9785 = vmatpush3.bf16.msra.mxu1 %v10330_v0  ;;  %v10339_v0 = vld [vmem:[%s13371_s3 + $0x58] sm:$0xff]   ;;  %v4314_v23 = vld [vmem:[#allocation2 + $0xa7] sm:$0xff] }
 0x20e   : > { %9833 = vmatpush3.bf16.msra.mxu0 %v10336_v8  ;;  %v2808_v59 = vadd.f32 %v13523_v47, %v13522_v50  ;;  %v2811_v46 = vadd.f32 %v13525_v16, %v13524_v37  ;;  %v3413_v27 = vadd.f32 %v13526_v25, %v2810_v3  ;;  %v3968_v62 = vpop.f32.mrf.mxu0  ;;  %9786 = vmatprep.subr.bf16.mxu1 %v10331_v63  ;;  %v4317_v5 = vld [vmem:[#allocation2 + $0xcf] sm:$0xff]  ;;  %v4316_v54 = vld [vmem:[#allocation2 + $0xc7] sm:$0xff]  ;;  %v12269_v25 = vpop.f32.mrf.mxu1 }
 0x20f   : > { %9834 = vmatprep.subr.bf16.mxu0 %v10337_v53  ;;  %v3746_v8 = vadd.f32 %v12052_v52, %v3410_v56  ;;  %4287 = vst [vmem:[#allocation2 + $0x110] sm:$0xff] %v4213_v4  ;;  %v4211_v48 = vmax.f32 %v4179_v51, 0.0  ;;  %v12230_v41 = vadd.f32 %v12028_v12, %v4081_v38  ;;  %v4079_v2 = vadd.f32 %v3968_v62, %v3743_v11  ;;  %v13529_v11 = vld [vmem:[#allocation75_spill] sm:$0xff]  ;;  %v13530_v51 = vld [vmem:[#allocation41_spill] sm:$0xff]  ;;  %v13531_v38 = vld [vmem:[#allocation42_spill] sm:$0xff] }
 0x210   : > { %v2809_v24 = vadd.f32 %v13527_v22, %v2459_v15  ;;  %v3744_v33 = vadd.f32 %v12071_v43, %v3408_v32  ;;  %v3411_v42 = vadd.f32 %v13528_v26, %v2808_v59  ;;  %v9671_v35 = vpop.f32.mrf.mxu0  ;;  %v4315_v19 = vld [vmem:[#allocation2 + $0xaf] sm:$0xff]  ;;  %v12235_v60 = vpack.c.bf16 %v4213_v4, %v4212_v7 }
 0x211   : > { %4285 = vst [vmem:[#allocation2 + $0xf0] sm:$0xff] %v4211_v48  ;;  %v4216_v52 = vmax.f32 %v12230_v41, 0.0  ;;  %v12241_v56 = vadd.f32 %v12028_v12, %v4079_v2  ;;  %v4082_v45 = vadd.f32 %v9671_v35, %v3746_v8  ;;  %v12243_v3 = vpack.c.bf16 %v4315_v19, %v4314_v23  ;;  %9787 = vmatpush3.bf16.msra.mxu1 %v10331_v63  ;;  %v10335_v7 = vld [vmem:[%s13371_s3 + $0x190] sm:$0xff]   ;;  %v13536_v2 = vld [vmem:[#allocation45_spill] sm:$0xff] }
 0x212   : > { %9835 = vmatpush3.bf16.msra.mxu0 %v10337_v53  ;;  %v3749_v43 = vadd.f32 %v12087_v34, %v3413_v27  ;;  %v3971_v15 = vpop.f32.mrf.mxu0  ;;  %v12246_v10 = vpack.c.bf16 %v4317_v5, %v4316_v54  ;;  %9788 = vmatprep.subr.bf16.mxu1 %v10332_v55  ;;  %v10340_v32 = vld [vmem:[%s13371_s3 + $0x50] sm:$0xff]   ;;  %v12254_v1 = vpack.c.bf16 %v4211_v48, %v4210_v36  ;;  %v13533_v36 = vld [vmem:[#allocation77_spill] sm:$0xff]  ;;  %v13537_v5 = vld [vmem:[#allocation46_spill] sm:$0xff] }
 0x213   : > { %9836 = vmatprep.subr.bf16.mxu0 %v10339_v0  ;;  %v3414_v63 = vadd.f32 %v13529_v11, %v2811_v46  ;;  %4290 = vst [vmem:[#allocation2 + $0x148] sm:$0xff] %v4216_v52  ;;  %v4214_v34 = vmax.f32 %v12241_v56, 0.0  ;;  %v4185_v53 = vadd.f32 %v12028_v12, %v4082_v45  ;;  %v4080_v4 = vadd.f32 %v3971_v15, %v3744_v33  ;;  %v13532_v47 = vld [vmem:[#allocation47_spill] sm:$0xff]  ;;  %v13539_v56 = vld [vmem:[#allocation48_spill] sm:$0xff] }
 0x214   : > { %9709 = vmatmul.mubr.bf16.gmra.mxu1 %v12243_v3  ;;  %9756 = vmatprep.mubr.bf16.mxu0 %v12243_v3  ;;  %v2814_v50 = vadd.f32 %v13531_v38, %v13530_v51  ;;  %v2463_v59 = vadd.f32 %v13532_v47, %v12102_v30  ;;  %v3412_v37 = vadd.f32 %v13533_v36, %v2809_v24  ;;  %v9674_v16 = vpop.f32.mrf.mxu0  ;;  %v13534_v48 = vld [vmem:[#allocation43_spill] sm:$0xff]  ;;  %v13535_v30 = vld [vmem:[#allocation44_spill] sm:$0xff]  ;;  %v13538_v24 = vld [vmem:[#allocation78_spill] sm:$0xff]  ;;  %v12292_v38 = vpop.f32.mrf.mxu1 }
 0x215   : > { %9712 = vmatprep.mubr.bf16.mxu1 %v12246_v10  ;;  %9757 = vmatmul.mubr.bf16.gmra.mxu0 %v12246_v10  ;;  %v3747_v46 = vadd.f32 %v12108_v6, %v3411_v42  ;;  %4288 = vst [vmem:[#allocation2 + $0x128] sm:$0xff] %v4214_v34  ;;  %v4217_v27 = vmax.f32 %v4185_v53, 0.0  ;;  %v4183_v62 = vadd.f32 %v12028_v12, %v4080_v4  ;;  %v10338_v6 = vld [vmem:[%s13371_s3 + $0x188] sm:$0xff]  }
 0x216   : > { %v4085_v8 = vadd.f32 %v9674_v16, %v3749_v43  ;;  %9789 = vmatpush3.bf16.msra.mxu1 %v10332_v55  ;;  %9837 = vmatpush3.bf16.msra.mxu0 %v10339_v0  ;;  %v2812_v41 = vadd.f32 %v13535_v30, %v13534_v48  ;;  %v2815_v22 = vadd.f32 %v13537_v5, %v13536_v2  ;;  %v3984_v26 = vpop.f32.mrf.mxu0  ;;  %v10342_v55 = vld [vmem:[%s13371_s3 + $0x48] sm:$0xff]   ;;  %v13540_v43 = vld [vmem:[#allocation80_spill] sm:$0xff]  ;;  %v10343_v16 = vld [vmem:[%s13371_s3 + $0x40] sm:$0xff]  }
 0x217   : > { %v3417_v33 = vadd.f32 %v13538_v24, %v2814_v50  ;;  %9790 = vmatprep.subr.bf16.mxu1 %v10335_v7  ;;  %9838 = vmatprep.subr.bf16.mxu0 %v10340_v32  ;;  %v3750_v0 = vadd.f32 %v12129_v9, %v3414_v63  ;;  %4291 = vst [vmem:[#allocation2 + $0x150] sm:$0xff] %v4217_v27  ;;  %v4215_v42 = vmax.f32 %v4183_v62, 0.0  ;;  %v4321_v19 = vld [vmem:[#allocation2 + $0x10f] sm:$0xff]  ;;  %v4318_v53 = vld [vmem:[#allocation2 + $0xe7] sm:$0xff] }
 0x218   : > { %v12285_v35 = vadd.f32 %v12028_v12, %v4085_v8  ;;  %v4083_v23 = vadd.f32 %v3984_v26, %v3747_v46  ;;  %v2813_v45 = vadd.f32 %v13539_v56, %v2463_v59  ;;  %v3748_v54 = vadd.f32 %v12157_v40, %v3412_v37  ;;  %v9675_v11 = vpop.f32.mrf.mxu0  ;;  %v4319_v4 = vld [vmem:[#allocation2 + $0xef] sm:$0xff]  ;;  %v4320_v59 = vld [vmem:[#allocation2 + $0x107] sm:$0xff] }
 0x219   : > { %v3415_v15 = vadd.f32 %v13540_v43, %v2812_v41  ;;  %v12290_v51 = vpack.c.bf16 %v4217_v27, %v4216_v52  ;;  %4289 = vst [vmem:[#allocation2 + $0x130] sm:$0xff] %v4215_v42  ;;  %v4086_v50 = vadd.f32 %v9675_v11, %v3750_v0  ;;  %v12298_v47 = vpack.c.bf16 %v4319_v4, %v4318_v53  ;;  %v10341_v52 = vld [vmem:[%s13371_s3 + $0x180] sm:$0xff]   ;;  %v13542_v8 = vld [vmem:[#allocation50_spill] sm:$0xff]  ;;  %v13543_v48 = vld [vmem:[#allocation51_spill] sm:$0xff] }
 0x21a   : > { %v4220_v9 = vmax.f32 %v12285_v35, 0.0  ;;  %v12296_v63 = vadd.f32 %v12028_v12, %v4083_v23  ;;  %9791 = vmatpush3.bf16.msra.mxu1 %v10335_v7  ;;  %9839 = vmatpush3.bf16.msra.mxu0 %v10340_v32  ;;  %v3753_v40 = vadd.f32 %v12182_v39, %v3417_v33  ;;  %v3987_v36 = vpop.f32.mrf.mxu0  ;;  %v12301_v37 = vpack.c.bf16 %v4321_v19, %v4320_v59  ;;  %v13541_v27 = vld [vmem:[#allocation81_spill] sm:$0xff]  ;;  %v13544_v41 = vld [vmem:[#allocation56_spill] sm:$0xff]  ;;  %v3680_v33 = vpop.f32.mrf.mxu1  ;;  %v13548_v19 = vld [vmem:[#allocation54_spill] sm:$0xff] }
 0x21b   : > { %9792 = vmatprep.subr.bf16.mxu1 %v10338_v6  ;;  %9840 = vmatprep.subr.bf16.mxu0 %v10342_v55  ;;  %v12309_v46 = vpack.c.bf16 %v4215_v42, %v4214_v34  ;;  %v3418_v7 = vadd.f32 %v13541_v27, %v2815_v22  ;;  %v4189_v32 = vadd.f32 %v12028_v12, %v4086_v50  ;;  %v13545_v34 = vld [vmem:[#allocation83_spill] sm:$0xff]  ;;  %v13546_v35 = vld [vmem:[#allocation52_spill] sm:$0xff]  ;;  %v13547_v23 = vld [vmem:[#allocation53_spill] sm:$0xff] }
 0x21c   : > { %4294 = vst [vmem:[#allocation2 + $0x188] sm:$0xff] %v4220_v9  ;;  %v4218_v39 = vmax.f32 %v12296_v63, 0.0  ;;  %v4084_v62 = vadd.f32 %v3987_v36, %v3748_v54  ;;  %9713 = vmatmul.mubr.bf16.gmra.mxu1 %v12298_v47  ;;  %9760 = vmatprep.mubr.bf16.mxu0 %v12298_v47  ;;  %v2818_v30 = vadd.f32 %v13543_v48, %v13542_v8  ;;  %v9678_v24 = vpop.f32.mrf.mxu0  ;;  %v13549_v56 = vld [vmem:[#allocation55_spill] sm:$0xff]  ;;  %v13550_v54 = vld [vmem:[#allocation84_spill] sm:$0xff]  ;;  %v13551_v50 = vld [vmem:[#allocation57_spill] sm:$0xff] }
 0x21d   : > { %v2467_v2 = vadd.f32 %v13544_v41, %v12112_v21  ;;  %v3416_v5 = vadd.f32 %v13545_v34, %v2813_v45  ;;  %9716 = vmatprep.mubr.bf16.mxu1 %v12301_v37  ;;  %9761 = vmatmul.mubr.bf16.gmra.mxu0 %v12301_v37  ;;  %v3751_v22 = vadd.f32 %v12214_v20, %v3415_v15  ;;  %v4221_v26 = vmax.f32 %v4189_v32, 0.0  ;;  %v12333_v20 = vld [vmem:[%s13371_s3 + $0x138] sm:$0xff]   ;;  %v13552_v36 = vld [vmem:[#allocation85_spill] sm:$0xff] }
 0x21e   : > { %4292 = vst [vmem:[#allocation2 + $0x168] sm:$0xff] %v4218_v39  ;;  %v4187_v0 = vadd.f32 %v12028_v12, %v4084_v62  ;;  %v4089_v42 = vadd.f32 %v9678_v24, %v3753_v40  ;;  %9793 = vmatpush3.bf16.msra.mxu1 %v10338_v6  ;;  %9841 = vmatpush3.bf16.msra.mxu0 %v10342_v55  ;;  %v4000_v11 = vpop.f32.mrf.mxu0  ;;  %v12338_v6 = vld [vmem:[%s13371_s3 + $0x1f8] sm:$0xff]   ;;  %v4325_v63 = vld [vmem:[#allocation2 + $0x14f] sm:$0xff]  ;;  %v4322_v62 = vld [vmem:[#allocation2 + $0x127] sm:$0xff] }
 0x21f   : > { %v2816_v21 = vadd.f32 %v13547_v23, %v13546_v35  ;;  %v2819_v45 = vadd.f32 %v13549_v56, %v13548_v19  ;;  %v3421_v43 = vadd.f32 %v13550_v54, %v2818_v30  ;;  %9794 = vmatprep.subr.bf16.mxu1 %v10341_v52  ;;  %9842 = vmatprep.subr.bf16.mxu0 %v10343_v16  ;;  %v9635_v30 = vpop.f32.mrf.mxu1  ;;  %v4324_v24 = vld [vmem:[#allocation2 + $0x147] sm:$0xff] }
 0x220   : > { %v3754_v55 = vadd.f32 %v12237_v31, %v3418_v7  ;;  %4295 = vst [vmem:[#allocation2 + $0x190] sm:$0xff] %v4221_v26  ;;  %v4219_v15 = vmax.f32 %v4187_v0, 0.0  ;;  %v4192_v53 = vadd.f32 %v12028_v12, %v4089_v42  ;;  %v4087_v4 = vadd.f32 %v4000_v11, %v3751_v22  ;;  %v9679_v32 = vpop.f32.mrf.mxu0  ;;  %v4323_v8 = vld [vmem:[#allocation2 + $0x12f] sm:$0xff] }
 0x221   : > { %v2817_v59 = vadd.f32 %v13551_v50, %v2467_v2  ;;  %v3752_v40 = vadd.f32 %v12269_v25, %v3416_v5  ;;  %v3419_v27 = vadd.f32 %v13552_v36, %v2816_v21  ;;  %v12345_v48 = vpack.c.bf16 %v4221_v26, %v4220_v9 }
 0x222   : > { %4293 = vst [vmem:[#allocation2 + $0x170] sm:$0xff] %v4219_v15  ;;  %v4224_v31 = vmax.f32 %v4192_v53, 0.0  ;;  %v4190_v7 = vadd.f32 %v12028_v12, %v4087_v4  ;;  %v4090_v41 = vadd.f32 %v9679_v32, %v3754_v55  ;;  %v12348_v34 = vpack.c.bf16 %v4323_v8, %v4322_v62  ;;  %9795 = vmatpush3.bf16.msra.mxu1 %v10341_v52  ;;  %v4003_v2 = vpop.f32.mrf.mxu0 }
 0x223   : > { %9843 = vmatpush3.bf16.msra.mxu0 %v10343_v16  ;;  %v3757_v25 = vadd.f32 %v12292_v38, %v3421_v43  ;;  %v12351_v5 = vpack.c.bf16 %v4325_v63, %v4324_v24  ;;  %9876 = vmatprep.subr.bf16.mxu1 %v12333_v20  ;;  %v12355_v9 = vpack.c.bf16 %v4219_v15, %v4218_v39  ;;  %v3683_v39 = vpop.f32.mrf.mxu1 }
 0x224   : > { %9924 = vmatprep.subr.bf16.mxu0 %v12338_v6  ;;  %v3422_v22 = vadd.f32 %v12014_v28, %v2819_v45  ;;  %4298 = vst [vmem:[#allocation2 + $0x1c8] sm:$0xff] %v4224_v31  ;;  %v4222_v26 = vmax.f32 %v4190_v7, 0.0  ;;  %v4193_v0 = vadd.f32 %v12028_v12, %v4090_v41  ;;  %v4088_v42 = vadd.f32 %v4003_v2, %v3752_v40  ;;  %v9682_v52 = vpop.f32.mrf.mxu0 }
 0x225   : > { %9717 = vmatmul.mubr.bf16.gmra.mxu1 %v12348_v34  ;;  %9764 = vmatprep.mubr.bf16.mxu0 %v12348_v34  ;;  %v3420_v38 = vadd.f32 %v12021_v14, %v2817_v59  ;;  %v3755_v16 = vadd.f32 %v3680_v33, %v3419_v27  ;;  %v4093_v23 = vadd.f32 %v9682_v52, %v3757_v25  ;;  %v4326_v55 = vld [vmem:[#allocation2 + $0x167] sm:$0xff] }
 0x226   : > { %9720 = vmatprep.mubr.bf16.mxu1 %v12351_v5  ;;  %9765 = vmatmul.mubr.bf16.gmra.mxu0 %v12351_v5  ;;  %4296 = vst [vmem:[#allocation2 + $0x1a8] sm:$0xff] %v4222_v26  ;;  %v4225_v28 = vmax.f32 %v4193_v0, 0.0  ;;  %v4191_v35 = vadd.f32 %v12028_v12, %v4088_v42  ;;  %v4016_v21 = vpop.f32.mrf.mxu0  ;;  %v3758_v19 = vadd.f32 %v9635_v30, %v3422_v22  ;;  %v4328_v59 = vld [vmem:[#allocation2 + $0x187] sm:$0xff] }
 0x227   : > { %v4196_v45 = vadd.f32 %v12028_v12, %v4093_v23  ;;  %v4091_v54 = vadd.f32 %v4016_v21, %v3755_v16  ;;  %v4329_v14 = vld [vmem:[#allocation2 + $0x18f] sm:$0xff]  ;;  %v3756_v43 = vadd.f32 %v3683_v39, %v3420_v38 }
 0x228   : > { %4299 = vst [vmem:[#allocation2 + $0x1d0] sm:$0xff] %v4225_v28  ;;  %v4223_v56 = vmax.f32 %v4191_v35, 0.0  ;;  %v9683_v11 = vpop.f32.mrf.mxu0  ;;  %v12366_v53 = vpack.c.bf16 %v4225_v28, %v4224_v31  ;;  %v12371_v36 = vpack.c.bf16 %v4329_v14, %v4328_v59  ;;  %v10416_v28 = vld [vmem:[#allocation2] sm:$0xff]  ;;  %v10345_v21 = vld [vmem:[%s13371_s3 + $0x130] sm:$0xff]   ;;  %v10360_v14 = vld [vmem:[%s13371_s3 + $0xb8] sm:$0xff]  }
 0x229   : > { %v4327_v15 = vld [vmem:[#allocation2 + $0x16f] sm:$0xff]  ;;  %v4228_v33 = vmax.f32 %v4196_v45, 0.0  ;;  %v4194_v4 = vadd.f32 %v12028_v12, %v4091_v54  ;;  %v4094_v63 = vadd.f32 %v9683_v11, %v3758_v19  ;;  %v12395_v35 = vpack.c.bf16 %v10416_v28, %v10416_v28  ;;  %v10359_v54 = vld [vmem:[%s13371_s3 + $0x1c0] sm:$0xff]  }
 0x22a   : > { %4297 = vst [vmem:[#allocation2 + $0x1b0] sm:$0xff] %v4223_v56  ;;  %v12369_v50 = vpack.c.bf16 %v4327_v15, %v4326_v55  ;;  %v4019_v40 = vpop.f32.mrf.mxu0  ;;  %v12373_v27 = vpack.c.bf16 %v4223_v56, %v4222_v26  ;;  %v10350_v19 = vld [vmem:[%s13371_s3 + $0x1f0] sm:$0xff]   ;;  %v10354_v45 = vld [vmem:[%s13371_s3 + $0x108] sm:$0xff]   ;;  %v10375_v59 = vld [vmem:[%s13371_s3 + $0x140] sm:$0xff]  }
 0x22b   : > { %4302 = vst [vmem:[#allocation2 + $0x208] sm:$0xff] %v4228_v33  ;;  %v4226_v32 = vmax.f32 %v4194_v4, 0.0  ;;  %v4197_v62 = vadd.f32 %v12028_v12, %v4094_v63  ;;  %v4092_v8 = vadd.f32 %v4019_v40, %v3756_v43  ;;  %v4332_v26 = vld [vmem:[#allocation2 + $0x1c7] sm:$0xff]  ;;  %v10356_v56 = vld [vmem:[%s13371_s3 + $0x1d0] sm:$0xff]   ;;  %v10364_v4 = vld [vmem:[%s13371_s3 + $0x98] sm:$0xff]  }
 0x22c   : > { %9768 = vmatprep.mubr.bf16.mxu0 %v12369_v50  ;;  %v4339_v43 = vld [vmem:[#allocation2 + $0x22f] sm:$0xff]  ;;  %v10376_v40 = vld [vmem:[%s13371_s3 + $0x238] sm:$0xff]  }
 0x22d   : > { %9721 = vmatmul.mubr.bf16.gmra.mxu1 %v12369_v50  ;;  %4300 = vst [vmem:[#allocation2 + $0x1e8] sm:$0xff] %v4226_v32  ;;  %v4229_v30 = vmax.f32 %v4197_v62, 0.0  ;;  %v4195_v31 = vadd.f32 %v12028_v12, %v4092_v8  ;;  %v4330_v25 = vld [vmem:[#allocation2 + $0x1a7] sm:$0xff]  ;;  %v10361_v55 = vld [vmem:[%s13371_s3 + $0xb0] sm:$0xff]  }
 0x22e   : > { %9724 = vmatprep.mubr.bf16.mxu1 %v12371_v36  ;;  %9769 = vmatmul.mubr.bf16.gmra.mxu0 %v12371_v36  ;;  %v10366_v15 = vld [vmem:[%s13371_s3 + $0x170] sm:$0xff]  }
 0x22f   : > { %4303 = vst [vmem:[#allocation2 + $0x210] sm:$0xff] %v4229_v30  ;;  %v4227_v7 = vmax.f32 %v4195_v31, 0.0  ;;  %v4333_v41 = vld [vmem:[#allocation2 + $0x1cf] sm:$0xff]  ;;  %v12381_v24 = vpack.c.bf16 %v4229_v30, %v4228_v33  ;;  %v10369_v33 = vld [vmem:[%s13371_s3 + $0x160] sm:$0xff]  }
 0x230   : > { %v12387_v42 = vpack.c.bf16 %v4333_v41, %v4332_v26  ;;  %v10372_v63 = vld [vmem:[%s13371_s3 + $0x150] sm:$0xff]  }
 0x231   : > { %v4331_v2 = vld [vmem:[#allocation2 + $0x1af] sm:$0xff]  ;;  %4301 = vst [vmem:[#allocation2 + $0x1f0] sm:$0xff] %v4227_v7  ;;  %v12385_v0 = vpack.c.bf16 %v4227_v7, %v4226_v32 }
 0x232   : > { %v12383_v22 = vpack.c.bf16 %v4331_v2, %v4330_v25  ;;  %v4336_v39 = vld [vmem:[#allocation2 + $0x207] sm:$0xff]  ;;  %v6286_v62 = vld [vmem:[#allocation2 + $0x71] sm:$0xff] }
 0x233   : > { %v6285_v32 = vld [vmem:[#allocation2 + $0x69] sm:$0xff] }
 0x234   : > { %9772 = vmatprep.mubr.bf16.mxu0 %v12383_v22  ;;  %v4334_v38 = vld [vmem:[#allocation2 + $0x1e7] sm:$0xff]  ;;  %v10377_v30 = vld [vmem:[%s13371_s3 + $0x230] sm:$0xff]   ;;  %v12565_v7 = vpack.c.bf16 %v6286_v62, %v6285_v32 }
 0x235   : > { %9725 = vmatmul.mubr.bf16.gmra.mxu1 %v12383_v22 }
 0x236   : > { %9728 = vmatprep.mubr.bf16.mxu1 %v12387_v42  ;;  %9773 = vmatmul.mubr.bf16.gmra.mxu0 %v12387_v42  ;;  %v4337_v12 = vld [vmem:[#allocation2 + $0x20f] sm:$0xff] }
 0x237   : > { %v12397_v23 = vpack.c.bf16 %v4337_v12, %v4336_v39  ;;  %v6288_v12 = vld [vmem:[#allocation2 + $0x91] sm:$0xff] }
 0x238   : > { %v4335_v52 = vld [vmem:[#allocation2 + $0x1ef] sm:$0xff] }
 0x239   : > { %v12393_v16 = vpack.c.bf16 %v4335_v52, %v4334_v38  ;;  %v6289_v52 = vld [vmem:[#allocation2 + $0xa9] sm:$0xff] }
 0x23b   : > { %9776 = vmatprep.mubr.bf16.mxu0 %v12393_v16 }
 0x23d   : > { %9729 = vmatmul.mubr.bf16.gmra.mxu1 %v12393_v16 }
 0x23e   : > { %9777 = vmatmul.mubr.bf16.gmra.mxu0 %v12397_v23  ;;  %9796 = vmatprep.mubr.bf16.mxu1 %v12137_v57  ;;  %v10346_v57 = vld [vmem:[%s13371_s3 + $0x128] sm:$0xff]  }
 0x23f   : > { %9844 = vmatprep.mubr.bf16.mxu0 %v12395_v35 }
 0x245   : > { %9797 = vmatmul.mubr.bf16.vlgmr.msra.gmra.mxu1 %v12188_v29  ;;  %v10352_v29 = vld [vmem:[%s13371_s3 + $0x1e8] sm:$0xff]  }
 0x246   : > { %9800 = vmatprep.mubr.bf16.mxu1 %v12191_v44  ;;  %9845 = vmatmul.mubr.bf16.vlgmr.msra.gmra.mxu0 %v12090_v18  ;;  %v10347_v44 = vld [vmem:[%s13371_s3 + $0x120] sm:$0xff]  }
 0x247   : > { %9877 = vmatpush3.bf16.msra.mxu1 %v12333_v20  ;;  %9848 = vmatprep.mubr.bf16.mxu0 %v12080_v61  ;;  %v10353_v20 = vld [vmem:[%s13371_s3 + $0x1e0] sm:$0xff]  }
 0x248   : > { %9878 = vmatprep.subr.bf16.mxu1 %v10345_v21  ;;  %9925 = vmatpush3.bf16.msra.mxu0 %v12338_v6  ;;  %v10348_v6 = vld [vmem:[%s13371_s3 + $0x118] sm:$0xff]  }
 0x249   : > { %9926 = vmatprep.subr.bf16.mxu0 %v10350_v19 }
 0x24b   : > { %9879 = vmatpush3.bf16.msra.mxu1 %v10345_v21  ;;  %v10379_v21 = vld [vmem:[%s13371_s3 + $0x220] sm:$0xff]  }
 0x24c   : > { %9880 = vmatprep.subr.bf16.mxu1 %v10346_v57  ;;  %9927 = vmatpush3.bf16.msra.mxu0 %v10350_v19 }
 0x24d   : > { %9801 = vmatmul.mubr.bf16.gmra.mxu1 %v12243_v3  ;;  %9928 = vmatprep.subr.bf16.mxu0 %v10352_v29  ;;  %v10355_v3 = vld [vmem:[%s13371_s3 + $0x1d8] sm:$0xff]  }
 0x24e   : > { %9804 = vmatprep.mubr.bf16.mxu1 %v12246_v10  ;;  %9849 = vmatmul.mubr.bf16.gmra.mxu0 %v12145_v13  ;;  %v10351_v10 = vld [vmem:[%s13371_s3 + $0x110] sm:$0xff]  }
 0x24f   : > { %9852 = vmatprep.mubr.bf16.mxu0 %v12127_v17  ;;  %9881 = vmatpush3.bf16.msra.mxu1 %v10346_v57 }
 0x250   : > { %9882 = vmatprep.subr.bf16.mxu1 %v10347_v44  ;;  %9929 = vmatpush3.bf16.msra.mxu0 %v10352_v29 }
 0x251   : > { %9930 = vmatprep.subr.bf16.mxu0 %v10353_v20 }
 0x253   : > { %9883 = vmatpush3.bf16.msra.mxu1 %v10347_v44 }
 0x254   : > { %9884 = vmatprep.subr.bf16.mxu1 %v10348_v6  ;;  %9931 = vmatpush3.bf16.msra.mxu0 %v10353_v20 }
 0x255   : > { %9805 = vmatmul.mubr.bf16.gmra.mxu1 %v12298_v47  ;;  %9932 = vmatprep.subr.bf16.mxu0 %v10355_v3  ;;  %v10358_v47 = vld [vmem:[%s13371_s3 + $0x1c8] sm:$0xff]  }
 0x256   : > { %9808 = vmatprep.mubr.bf16.mxu1 %v12301_v37  ;;  %9853 = vmatmul.mubr.bf16.gmra.mxu0 %v12199_v49  ;;  %v10357_v37 = vld [vmem:[%s13371_s3 + $0x100] sm:$0xff]  }
 0x257   : > { %9856 = vmatprep.mubr.bf16.mxu0 %v12180_v58  ;;  %9885 = vmatpush3.bf16.msra.mxu1 %v10348_v6 }
 0x258   : > { %9886 = vmatprep.subr.bf16.mxu1 %v10351_v10  ;;  %9933 = vmatpush3.bf16.msra.mxu0 %v10355_v3 }
 0x259   : > { %9934 = vmatprep.subr.bf16.mxu0 %v10356_v56 }
 0x25b   : > { %9887 = vmatpush3.bf16.msra.mxu1 %v10351_v10  ;;  %v10380_v10 = vld [vmem:[%s13371_s3 + $0x218] sm:$0xff]  }
 0x25c   : > { %9888 = vmatprep.subr.bf16.mxu1 %v10354_v45  ;;  %9935 = vmatpush3.bf16.msra.mxu0 %v10356_v56 }
 0x25d   : > { %9809 = vmatmul.mubr.bf16.gmra.mxu1 %v12348_v34  ;;  %9936 = vmatprep.subr.bf16.mxu0 %v10358_v47  ;;  %v10365_v34 = vld [vmem:[%s13371_s3 + $0x178] sm:$0xff]  }
 0x25e   : > { %9812 = vmatprep.mubr.bf16.mxu1 %v12351_v5  ;;  %9857 = vmatmul.mubr.bf16.gmra.mxu0 %v12254_v1  ;;  %v4338_v5 = vld [vmem:[#allocation2 + $0x227] sm:$0xff] }
 0x25f   : > { %9860 = vmatprep.mubr.bf16.mxu0 %v12235_v60  ;;  %9889 = vmatpush3.bf16.msra.mxu1 %v10354_v45  ;;  %v4936_v11 = vpack.c.bf16 %v4339_v43, %v4338_v5 }
 0x260   : > { %9890 = vmatprep.subr.bf16.mxu1 %v10357_v37  ;;  %9937 = vmatpush3.bf16.msra.mxu0 %v10358_v47  ;;  %v6291_v47 = vld [vmem:[#allocation2 + $0xc9] sm:$0xff] }
 0x261   : > { %9938 = vmatprep.subr.bf16.mxu0 %v10359_v54 }
 0x263   : > { %9891 = vmatpush3.bf16.msra.mxu1 %v10357_v37  ;;  %v6292_v37 = vld [vmem:[#allocation2 + $0xd1] sm:$0xff] }
 0x264   : > { %9939 = vmatpush3.bf16.msra.mxu0 %v10359_v54  ;;  %9972 = vmatprep.subr.bf16.mxu1 %v10360_v14 }
 0x265   : > { %9813 = vmatmul.mubr.bf16.gmra.mxu1 %v12369_v50  ;;  %10020 = vmatprep.subr.bf16.mxu0 %v10365_v34  ;;  %v10370_v50 = vld [vmem:[%s13371_s3 + $0x88] sm:$0xff]  }
 0x266   : > { %9816 = vmatprep.mubr.bf16.mxu1 %v12371_v36  ;;  %9861 = vmatmul.mubr.bf16.gmra.mxu0 %v12309_v46 }
 0x267   : > { %9864 = vmatprep.mubr.bf16.mxu0 %v12290_v51 }
 0x26d   : > { %9817 = vmatmul.mubr.bf16.gmra.mxu1 %v12383_v22  ;;  %v10378_v22 = vld [vmem:[%s13371_s3 + $0x228] sm:$0xff]  }
 0x26e   : > { %9820 = vmatprep.mubr.bf16.mxu1 %v12387_v42  ;;  %9865 = vmatmul.mubr.bf16.gmra.mxu0 %v12355_v9  ;;  %v6287_v42 = vld [vmem:[#allocation2 + $0x89] sm:$0xff] }
 0x26f   : > { %9868 = vmatprep.mubr.bf16.mxu0 %v12345_v48 }
 0x275   : > { %9821 = vmatmul.mubr.bf16.gmra.mxu1 %v12393_v16  ;;  %v6290_v16 = vld [vmem:[#allocation2 + $0xb1] sm:$0xff] }
 0x276   : > { %9824 = vmatprep.mubr.bf16.mxu1 %v12397_v23  ;;  %9869 = vmatmul.mubr.bf16.gmra.mxu0 %v12373_v27  ;;  %v12579_v23 = vpack.c.bf16 %v6288_v12, %v6287_v42  ;;  %v12587_v29 = vpack.c.bf16 %v6290_v16, %v6289_v52  ;;  %v6300_v42 = vld [vmem:[#allocation2 + $0x151] sm:$0xff] }
 0x277   : > { %9872 = vmatprep.mubr.bf16.mxu0 %v12366_v53  ;;  %v6302_v52 = vld [vmem:[#allocation2 + $0x171] sm:$0xff] }
 0x27d   : > { %9825 = vmatmul.mubr.bf16.gmra.mxu1 %v4936_v11 }
 0x27e   : > { %9873 = vmatmul.mubr.bf16.gmra.mxu0 %v12385_v0  ;;  %9892 = vmatprep.mubr.bf16.mxu1 %v12090_v18  ;;  %v10362_v18 = vld [vmem:[%s13371_s3 + $0xa8] sm:$0xff]  }
 0x27f   : > { %9940 = vmatprep.mubr.bf16.mxu0 %v12080_v61 }
 0x285   : > { %9893 = vmatmul.mubr.bf16.vlgmr.msra.gmra.mxu1 %v12080_v61  ;;  %v10368_v61 = vld [vmem:[%s13371_s3 + $0x168] sm:$0xff]  }
 0x286   : > { %9896 = vmatprep.mubr.bf16.mxu1 %v12145_v13  ;;  %9941 = vmatmul.mubr.bf16.vlgmr.msra.gmra.mxu0 %v12145_v13  ;;  %v10363_v13 = vld [vmem:[%s13371_s3 + $0xa0] sm:$0xff]  }
 0x287   : > { %9973 = vmatpush3.bf16.msra.mxu1 %v10360_v14  ;;  %9944 = vmatprep.mubr.bf16.mxu0 %v12127_v17  ;;  %v6293_v14 = vld [vmem:[#allocation2 + $0xe9] sm:$0xff] }
 0x288   : > { %9974 = vmatprep.subr.bf16.mxu1 %v10361_v55  ;;  %10021 = vmatpush3.bf16.msra.mxu0 %v10365_v34  ;;  %v6294_v34 = vld [vmem:[#allocation2 + $0xf1] sm:$0xff] }
 0x289   : > { %10022 = vmatprep.subr.bf16.mxu0 %v10366_v15 }
 0x28b   : > { %9975 = vmatpush3.bf16.msra.mxu1 %v10361_v55  ;;  %v12601_v55 = vpack.c.bf16 %v6292_v37, %v6291_v47 }
 0x28c   : > { %9976 = vmatprep.subr.bf16.mxu1 %v10362_v18  ;;  %10023 = vmatpush3.bf16.msra.mxu0 %v10366_v15  ;;  %v10381_v15 = vld [vmem:[%s13371_s3 + $0x210] sm:$0xff]  }
 0x28d   : > { %9897 = vmatmul.mubr.bf16.gmra.mxu1 %v12127_v17  ;;  %10024 = vmatprep.subr.bf16.mxu0 %v10368_v61  ;;  %v10371_v17 = vld [vmem:[%s13371_s3 + $0x158] sm:$0xff]  }
 0x28e   : > { %9900 = vmatprep.mubr.bf16.mxu1 %v12199_v49  ;;  %9945 = vmatmul.mubr.bf16.gmra.mxu0 %v12199_v49  ;;  %v10367_v49 = vld [vmem:[%s13371_s3 + $0x90] sm:$0xff]  }
 0x28f   : > { %9948 = vmatprep.mubr.bf16.mxu0 %v12180_v58  ;;  %9977 = vmatpush3.bf16.msra.mxu1 %v10362_v18 }
 0x290   : > { %9978 = vmatprep.subr.bf16.mxu1 %v10363_v13  ;;  %10025 = vmatpush3.bf16.msra.mxu0 %v10368_v61 }
 0x291   : > { %10026 = vmatprep.subr.bf16.mxu0 %v10369_v33 }
 0x293   : > { %9979 = vmatpush3.bf16.msra.mxu1 %v10363_v13  ;;  %v12609_v13 = vpack.c.bf16 %v6294_v34, %v6293_v14  ;;  %v6303_v14 = vld [vmem:[#allocation2 + $0x189] sm:$0xff]  ;;  %v6304_v34 = vld [vmem:[#allocation2 + $0x191] sm:$0xff] }
 0x294   : > { %9980 = vmatprep.subr.bf16.mxu1 %v10364_v4  ;;  %10027 = vmatpush3.bf16.msra.mxu0 %v10369_v33 }
 0x295   : > { %9901 = vmatmul.mubr.bf16.gmra.mxu1 %v12180_v58  ;;  %10028 = vmatprep.subr.bf16.mxu0 %v10371_v17  ;;  %v10374_v58 = vld [vmem:[%s13371_s3 + $0x148] sm:$0xff]  }
 0x296   : > { %9904 = vmatprep.mubr.bf16.mxu1 %v12254_v1  ;;  %9949 = vmatmul.mubr.bf16.gmra.mxu0 %v12254_v1  ;;  %v10373_v1 = vld [vmem:[%s13371_s3 + $0x80] sm:$0xff]  }
 0x297   : > { %9952 = vmatprep.mubr.bf16.mxu0 %v12235_v60  ;;  %9981 = vmatpush3.bf16.msra.mxu1 %v10364_v4 }
 0x298   : > { %9982 = vmatprep.subr.bf16.mxu1 %v10367_v49  ;;  %10029 = vmatpush3.bf16.msra.mxu0 %v10371_v17 }
 0x299   : > { %10030 = vmatprep.subr.bf16.mxu0 %v10372_v63 }
 0x29b   : > { %9983 = vmatpush3.bf16.msra.mxu1 %v10367_v49 }
 0x29c   : > { %9984 = vmatprep.subr.bf16.mxu1 %v10370_v50  ;;  %10031 = vmatpush3.bf16.msra.mxu0 %v10372_v63  ;;  %v10382_v63 = vld [vmem:[%s13371_s3 + $0x208] sm:$0xff]  }
 0x29d   : > { %9905 = vmatmul.mubr.bf16.gmra.mxu1 %v12235_v60  ;;  %10032 = vmatprep.subr.bf16.mxu0 %v10374_v58  ;;  %v6279_v60 = vld [vmem:[#allocation2 + $0x9] sm:$0xff] }
 0x29e   : > { %9908 = vmatprep.mubr.bf16.mxu1 %v12309_v46  ;;  %9953 = vmatmul.mubr.bf16.gmra.mxu0 %v12309_v46  ;;  %v6281_v46 = vld [vmem:[#allocation2 + $0x29] sm:$0xff] }
 0x29f   : > { %9956 = vmatprep.mubr.bf16.mxu0 %v12290_v51  ;;  %9985 = vmatpush3.bf16.msra.mxu1 %v10370_v50 }
 0x2a0   : > { %9986 = vmatprep.subr.bf16.mxu1 %v10373_v1  ;;  %10033 = vmatpush3.bf16.msra.mxu0 %v10374_v58 }
 0x2a1   : > { %10034 = vmatprep.subr.bf16.mxu0 %v10375_v59 }
 0x2a3   : > { %9987 = vmatpush3.bf16.msra.mxu1 %v10373_v1  ;;  %v6295_v1 = vld [vmem:[#allocation2 + $0x109] sm:$0xff] }
 0x2a4   : > { %10035 = vmatpush3.bf16.msra.mxu0 %v10375_v59  ;;  %10068 = vmatprep.subr.bf16.mxu1 %v10376_v40  ;;  %v6296_v59 = vld [vmem:[#allocation2 + $0x111] sm:$0xff] }
 0x2a5   : > { %9909 = vmatmul.mubr.bf16.gmra.mxu1 %v12290_v51  ;;  %v6280_v51 = vld [vmem:[#allocation2 + $0x11] sm:$0xff] }
 0x2a6   : > { %9912 = vmatprep.mubr.bf16.mxu1 %v12355_v9  ;;  %9957 = vmatmul.mubr.bf16.gmra.mxu0 %v12355_v9  ;;  %v6282_v9 = vld [vmem:[#allocation2 + $0x31] sm:$0xff]  ;;  %v6315_v36 = vpack.c.bf16 %v6280_v51, %v6279_v60  ;;  %v6297_v60 = vld [vmem:[#allocation2 + $0x129] sm:$0xff] }
 0x2a7   : > { %9960 = vmatprep.mubr.bf16.mxu0 %v12345_v48  ;;  %v6298_v51 = vld [vmem:[#allocation2 + $0x131] sm:$0xff] }
 0x2a8   : > { %v12631_v62 = vpack.c.bf16 %v6298_v51, %v6297_v60 }
 0x2ad   : > { %9913 = vmatmul.mubr.bf16.gmra.mxu1 %v12345_v48  ;;  %v6316_v48 = vpack.c.bf16 %v6282_v9, %v6281_v46 }
 0x2ae   : > { %9916 = vmatprep.mubr.bf16.mxu1 %v12373_v27  ;;  %9961 = vmatmul.mubr.bf16.gmra.mxu0 %v12373_v27  ;;  %v6283_v27 = vld [vmem:[#allocation2 + $0x49] sm:$0xff] }
 0x2af   : > { %9964 = vmatprep.mubr.bf16.mxu0 %v12366_v53 }
 0x2b5   : > { %9917 = vmatmul.mubr.bf16.gmra.mxu1 %v12366_v53  ;;  %v6284_v53 = vld [vmem:[#allocation2 + $0x51] sm:$0xff] }
 0x2b6   : > { %9920 = vmatprep.mubr.bf16.mxu1 %v12385_v0  ;;  %9965 = vmatmul.mubr.bf16.gmra.mxu0 %v12385_v0  ;;  %v12560_v8 = vpack.c.bf16 %v6284_v53, %v6283_v27  ;;  %v10383_v27 = vld [vmem:[%s13371_s3 + $0x200] sm:$0xff]  }
 0x2b7   : > { %9968 = vmatprep.mubr.bf16.mxu0 %v12381_v24 }
 0x2bd   : > { %9921 = vmatmul.mubr.bf16.gmra.mxu1 %v12381_v24 }
 0x2be   : > { %9969 = vmatmul.mubr.bf16.gmra.mxu0 %v12395_v35  ;;  %9988 = vmatprep.mubr.bf16.mxu1 %v6315_v36 }
 0x2bf   : > { %10036 = vmatprep.mubr.bf16.mxu0 %v6316_v48 }
 0x2c3   : > { %v9702_v31 = vpop.f32.mrf.mxu1 }
 0x2c4   : > { %v9750_v41 = vpop.f32.mrf.mxu0 }
 0x2c5   : > { %9989 = vmatmul.mubr.bf16.vlgmr.msra.gmra.mxu1 %v6316_v48  ;;  %v12569_v24 = vadd.f32 %v9750_v41, %v9702_v31  ;;  %v4454_v25 = vpop.f32.mrf.mxu1  ;;  %v12623_v48 = vpack.c.bf16 %v6296_v59, %v6295_v1 }
 0x2c6   : > { %9992 = vmatprep.mubr.bf16.mxu1 %v12560_v8  ;;  %10037 = vmatmul.mubr.bf16.vlgmr.msra.gmra.mxu0 %v12560_v8  ;;  %v4713_v2 = vpop.f32.mrf.mxu0 }
 0x2c7   : > { %10069 = vmatpush3.bf16.msra.mxu1 %v10376_v40  ;;  %10040 = vmatprep.mubr.bf16.mxu0 %v12565_v7  ;;  %v12575_v26 = vadd.f32 %v4713_v2, %v4454_v25  ;;  %v9703_v0 = vpop.f32.mrf.mxu1 }
 0x2c8   : > { %10070 = vmatprep.subr.bf16.mxu1 %v10377_v30  ;;  %v9751_v38 = vpop.f32.mrf.mxu0 }
 0x2c9   : > { %v12577_v39 = vadd.f32 %v9751_v38, %v9703_v0  ;;  %v4457_v28 = vpop.f32.mrf.mxu1  ;;  %v6299_v0 = vld [vmem:[#allocation2 + $0x149] sm:$0xff] }
 0x2ca   : > { %v4716_v35 = vpop.f32.mrf.mxu0  ;;  %v6301_v38 = vld [vmem:[#allocation2 + $0x169] sm:$0xff] }
 0x2cb   : > { %10071 = vmatpush3.bf16.msra.mxu1 %v10377_v30  ;;  %v12584_v19 = vadd.f32 %v4716_v35, %v4457_v28  ;;  %v9706_v57 = vpop.f32.mrf.mxu1 }
 0x2cc   : > { %10072 = vmatprep.subr.bf16.mxu1 %v10378_v22 }
 0x2cd   : > { %9993 = vmatmul.mubr.bf16.gmra.mxu1 %v12565_v7  ;;  %v9754_v44 = vpop.f32.mrf.mxu0  ;;  %v4470_v6 = vpop.f32.mrf.mxu1 }
 0x2ce   : > { %9996 = vmatprep.mubr.bf16.mxu1 %v12579_v23  ;;  %10041 = vmatmul.mubr.bf16.gmra.mxu0 %v12579_v23  ;;  %v12591_v20 = vadd.f32 %v9754_v44, %v9706_v57 }
 0x2cf   : > { %10044 = vmatprep.mubr.bf16.mxu0 %v12587_v29  ;;  %10073 = vmatpush3.bf16.msra.mxu1 %v10378_v22  ;;  %v4729_v3 = vpop.f32.mrf.mxu0  ;;  %v9707_v45 = vpop.f32.mrf.mxu1 }
 0x2d0   : > { %10074 = vmatprep.subr.bf16.mxu1 %v10379_v21  ;;  %v12597_v56 = vadd.f32 %v4729_v3, %v4470_v6  ;;  %v12647_v6 = vpack.c.bf16 %v6302_v52, %v6301_v38 }
 0x2d1   : > { %v9755_v54 = vpop.f32.mrf.mxu0  ;;  %v4473_v43 = vpop.f32.mrf.mxu1 }
 0x2d2   : > { %v12599_v5 = vadd.f32 %v9755_v54, %v9707_v45 }
 0x2d3   : > { %10075 = vmatpush3.bf16.msra.mxu1 %v10379_v21  ;;  %v4732_v11 = vpop.f32.mrf.mxu0  ;;  %v12642_v21 = vpack.c.bf16 %v6300_v42, %v6299_v0 }
 0x2d4   : > { %10076 = vmatprep.subr.bf16.mxu1 %v10380_v10  ;;  %v12606_v18 = vadd.f32 %v4732_v11, %v4473_v43  ;;  %v9710_v61 = vpop.f32.mrf.mxu1  ;;  %v6305_v11 = vld [vmem:[#allocation2 + $0x1a9] sm:$0xff] }
 0x2d5   : > { %9997 = vmatmul.mubr.bf16.gmra.mxu1 %v12587_v29  ;;  %v9758_v33 = vpop.f32.mrf.mxu0 }
 0x2d6   : > { %10000 = vmatprep.mubr.bf16.mxu1 %v12601_v55  ;;  %10045 = vmatmul.mubr.bf16.gmra.mxu0 %v12601_v55  ;;  %v12613_v4 = vadd.f32 %v9758_v33, %v9710_v61  ;;  %v4486_v17 = vpop.f32.mrf.mxu1 }
 0x2d7   : > { %10048 = vmatprep.mubr.bf16.mxu0 %v12609_v13  ;;  %10077 = vmatpush3.bf16.msra.mxu1 %v10380_v10  ;;  %v4745_v49 = vpop.f32.mrf.mxu0 }
 0x2d8   : > { %10078 = vmatprep.subr.bf16.mxu1 %v10381_v15  ;;  %v12619_v50 = vadd.f32 %v4745_v49, %v4486_v17  ;;  %v9711_v58 = vpop.f32.mrf.mxu1  ;;  %v12662_v49 = vpack.c.bf16 %v6304_v34, %v6303_v14 }
 0x2d9   : > { %v9759_v40 = vpop.f32.mrf.mxu0 }
 0x2da   : > { %v12621_v46 = vadd.f32 %v9759_v40, %v9711_v58  ;;  %v4489_v9 = vpop.f32.mrf.mxu1 }
 0x2db   : > { %10079 = vmatpush3.bf16.msra.mxu1 %v10381_v15  ;;  %v4748_v36 = vpop.f32.mrf.mxu0  ;;  %v6306_v15 = vld [vmem:[#allocation2 + $0x1b1] sm:$0xff] }
 0x2dc   : > { %10080 = vmatprep.subr.bf16.mxu1 %v10382_v63  ;;  %v12628_v53 = vadd.f32 %v4748_v36, %v4489_v9  ;;  %v9714_v32 = vpop.f32.mrf.mxu1  ;;  %v12665_v58 = vpack.c.bf16 %v6306_v15, %v6305_v11  ;;  %v6307_v36 = vld [vmem:[#allocation2 + $0x1c9] sm:$0xff] }
 0x2dd   : > { %10001 = vmatmul.mubr.bf16.gmra.mxu1 %v12609_v13  ;;  %v9762_v30 = vpop.f32.mrf.mxu0 }
 0x2de   : > { %10004 = vmatprep.mubr.bf16.mxu1 %v12623_v48  ;;  %10049 = vmatmul.mubr.bf16.gmra.mxu0 %v12623_v48  ;;  %v12635_v31 = vadd.f32 %v9762_v30, %v9714_v32  ;;  %v4502_v41 = vpop.f32.mrf.mxu1  ;;  %v6309_v30 = vld [vmem:[#allocation2 + $0x1e9] sm:$0xff] }
 0x2df   : > { %10052 = vmatprep.mubr.bf16.mxu0 %v12631_v62  ;;  %10081 = vmatpush3.bf16.msra.mxu1 %v10382_v63  ;;  %v4761_v25 = vpop.f32.mrf.mxu0 }
 0x2e0   : > { %10082 = vmatprep.subr.bf16.mxu1 %v10383_v27  ;;  %v12638_v2 = vadd.f32 %v4761_v25, %v4502_v41  ;;  %v9715_v22 = vpop.f32.mrf.mxu1  ;;  %v6310_v41 = vld [vmem:[#allocation2 + $0x1f1] sm:$0xff] }
 0x2e1   : > { %v9763_v12 = vpop.f32.mrf.mxu0  ;;  %v12683_v38 = vpack.c.bf16 %v6310_v41, %v6309_v30 }
 0x2e2   : > { %v12640_v16 = vadd.f32 %v9763_v12, %v9715_v22  ;;  %v4505_v28 = vpop.f32.mrf.mxu1 }
 0x2e3   : > { %10083 = vmatpush3.bf16.msra.mxu1 %v10383_v27  ;;  %v4764_v35 = vpop.f32.mrf.mxu0  ;;  %v6308_v27 = vld [vmem:[#allocation2 + $0x1d1] sm:$0xff] }
 0x2e4   : > { %v12644_v57 = vadd.f32 %v4764_v35, %v4505_v28  ;;  %v12680_v42 = vpack.c.bf16 %v6308_v27, %v6307_v36 }
 0x2e5   : > { %v9718_v44 = vpop.f32.mrf.mxu1  ;;  %10005 = vmatmul.mubr.bf16.gmra.mxu1 %v12631_v62 }
 0x2e6   : > { %v9766_v3 = vpop.f32.mrf.mxu0  ;;  %10008 = vmatprep.mubr.bf16.mxu1 %v12642_v21  ;;  %10053 = vmatmul.mubr.bf16.gmra.mxu0 %v12642_v21 }
 0x2e7   : > { %v12651_v10 = vadd.f32 %v9766_v3, %v9718_v44  ;;  %v4518_v45 = vpop.f32.mrf.mxu1  ;;  %10056 = vmatprep.mubr.bf16.mxu0 %v12647_v6 }
 0x2e8   : > { %v4777_v47 = vpop.f32.mrf.mxu0 }
 0x2e9   : > { %v12654_v37 = vadd.f32 %v4777_v47, %v4518_v45  ;;  %v9719_v54 = vpop.f32.mrf.mxu1  ;;  %v6311_v47 = vld [vmem:[#allocation2 + $0x209] sm:$0xff] }
 0x2ea   : > { %v9767_v43 = vpop.f32.mrf.mxu0 }
 0x2eb   : > { %v12656_v61 = vadd.f32 %v9767_v43, %v9719_v54  ;;  %v12658_v33 = vpop.f32.mrf.mxu1  ;;  %v6312_v54 = vld [vmem:[#allocation2 + $0x211] sm:$0xff] }
 0x2ec   : > { %v12660_v17 = vpop.f32.mrf.mxu0  ;;  %v12698_v15 = vpack.c.bf16 %v6312_v54, %v6311_v47 }
 0x2ed   : > { %v9722_v63 = vpop.f32.mrf.mxu1  ;;  %10009 = vmatmul.mubr.bf16.gmra.mxu1 %v12647_v6 }
 0x2ee   : > { %v9770_v1 = vpop.f32.mrf.mxu0  ;;  %10012 = vmatprep.mubr.bf16.mxu1 %v12662_v49  ;;  %10057 = vmatmul.mubr.bf16.gmra.mxu0 %v12662_v49 }
 0x2ef   : > { %v12669_v59 = vadd.f32 %v9770_v1, %v9722_v63  ;;  %v4534_v40 = vpop.f32.mrf.mxu1  ;;  %10060 = vmatprep.mubr.bf16.mxu0 %v12665_v58 }
 0x2f0   : > { %v4793_v60 = vpop.f32.mrf.mxu0 }
 0x2f1   : > { %v12672_v51 = vadd.f32 %v4793_v60, %v4534_v40  ;;  %v9723_v9 = vpop.f32.mrf.mxu1 }
 0x2f2   : > { %v9771_v32 = vpop.f32.mrf.mxu0 }
 0x2f3   : > { %v12674_v25 = vadd.f32 %v9771_v32, %v9723_v9  ;;  %v12676_v22 = vpop.f32.mrf.mxu1 }
 0x2f4   : > { %v12678_v0 = vpop.f32.mrf.mxu0 }
 0x2f5   : > { %v9726_v12 = vpop.f32.mrf.mxu1  ;;  %10013 = vmatmul.mubr.bf16.gmra.mxu1 %v12665_v58 }
 0x2f6   : > { %v9774_v52 = vpop.f32.mrf.mxu0  ;;  %10016 = vmatprep.mubr.bf16.mxu1 %v12680_v42  ;;  %10061 = vmatmul.mubr.bf16.gmra.mxu0 %v12680_v42 }
 0x2f7   : > { %v12687_v28 = vadd.f32 %v9774_v52, %v9726_v12  ;;  %v4550_v35 = vpop.f32.mrf.mxu1  ;;  %10064 = vmatprep.mubr.bf16.mxu0 %v12683_v38 }
 0x2f8   : > { %v4809_v44 = vpop.f32.mrf.mxu0 }
 0x2f9   : > { %v12690_v3 = vadd.f32 %v4809_v44, %v4550_v35  ;;  %v9727_v45 = vpop.f32.mrf.mxu1 }
 0x2fa   : > { %v9775_v14 = vpop.f32.mrf.mxu0 }
 0x2fb   : > { %v12692_v34 = vadd.f32 %v9775_v14, %v9727_v45  ;;  %v12694_v43 = vpop.f32.mrf.mxu1 }
 0x2fc   : > { %v12696_v11 = vpop.f32.mrf.mxu0 }
 0x2fd   : > { %v9730_v63 = vpop.f32.mrf.mxu1  ;;  %10017 = vmatmul.mubr.bf16.gmra.mxu1 %v12683_v38 }
 0x2fe   : > { %v9778_v1 = vpop.f32.mrf.mxu0  ;;  %10065 = vmatmul.mubr.bf16.gmra.mxu0 %v12698_v15  ;;  %10084 = vmatprep.mubr.bf16.mxu1 %v12560_v8 }
 0x2ff   : > { %v12703_v40 = vadd.f32 %v9778_v1, %v9730_v63  ;;  %v4566_v60 = vpop.f32.mrf.mxu1 }
 0x300   : > { %v4825_v9 = vpop.f32.mrf.mxu0 }
 0x301   : > { %v12705_v36 = vadd.f32 %v4825_v9, %v4566_v60  ;;  %v9731_v27 = vpop.f32.mrf.mxu1 }
 0x302   : > { %v9779_v32 = vpop.f32.mrf.mxu0 }
 0x303   : > { %v12707_v30 = vadd.f32 %v9779_v32, %v9731_v27  ;;  %v12709_v41 = vpop.f32.mrf.mxu1 }
 0x304   : > { %v12711_v12 = vpop.f32.mrf.mxu0 }
 0x305   : > { %v9798_v52 = vpop.f32.mrf.mxu1  ;;  %10085 = vmatmul.mubr.bf16.vlgmr.msra.gmra.mxu1 %v12565_v7 }
 0x306   : > { %v5197_v35 = vadd.f32 %v9798_v52, %v12569_v24  ;;  %v9846_v8 = vpop.f32.mrf.mxu0  ;;  %10088 = vmatprep.mubr.bf16.mxu1 %v12579_v23 }
 0x307   : > { %v5036_v44 = vpop.f32.mrf.mxu1 }
 0x308   : > { %v12716_v45 = vadd.f32 %v9846_v8, %v5197_v35  ;;  %v5195_v47 = vadd.f32 %v5036_v44, %v12575_v26  ;;  %v5410_v54 = vpop.f32.mrf.mxu0 }
 0x309   : > { %v9799_v14 = vpop.f32.mrf.mxu1 }
 0x30a   : > { %v12719_v63 = vadd.f32 %v5410_v54, %v5195_v47  ;;  %v5198_v1 = vadd.f32 %v9799_v14, %v12577_v39  ;;  %v9847_v60 = vpop.f32.mrf.mxu0 }
 0x30b   : > { %v5039_v9 = vpop.f32.mrf.mxu1 }
 0x30c   : > { %v12722_v27 = vadd.f32 %v9847_v60, %v5198_v1  ;;  %v5196_v7 = vadd.f32 %v5039_v9, %v12584_v19  ;;  %v5413_v24 = vpop.f32.mrf.mxu0 }
 0x30d   : > { %v9802_v32 = vpop.f32.mrf.mxu1  ;;  %10089 = vmatmul.mubr.bf16.gmra.mxu1 %v12587_v29 }
 0x30e   : > { %v12726_v23 = vadd.f32 %v5413_v24, %v5196_v7  ;;  %v5201_v26 = vadd.f32 %v9802_v32, %v12591_v20  ;;  %v9850_v52 = vpop.f32.mrf.mxu0  ;;  %10092 = vmatprep.mubr.bf16.mxu1 %v12601_v55 }
 0x30f   : > { %v5052_v35 = vpop.f32.mrf.mxu1 }
 0x310   : > { %v12730_v8 = vadd.f32 %v9850_v52, %v5201_v26  ;;  %v5199_v39 = vadd.f32 %v5052_v35, %v12597_v56  ;;  %v5426_v44 = vpop.f32.mrf.mxu0 }
 0x311   : > { %v9803_v47 = vpop.f32.mrf.mxu1 }
 0x312   : > { %v12733_v54 = vadd.f32 %v5426_v44, %v5199_v39  ;;  %v5202_v19 = vadd.f32 %v9803_v47, %v12599_v5  ;;  %v9851_v14 = vpop.f32.mrf.mxu0 }
 0x313   : > { %v5055_v29 = vpop.f32.mrf.mxu1 }
 0x314   : > { %v12736_v1 = vadd.f32 %v9851_v14, %v5202_v19  ;;  %v5200_v20 = vadd.f32 %v5055_v29, %v12606_v18  ;;  %v5429_v60 = vpop.f32.mrf.mxu0 }
 0x315   : > { %v9806_v9 = vpop.f32.mrf.mxu1  ;;  %10093 = vmatmul.mubr.bf16.gmra.mxu1 %v12609_v13 }
 0x316   : > { %v12740_v55 = vadd.f32 %v5429_v60, %v5200_v20  ;;  %v5205_v56 = vadd.f32 %v9806_v9, %v12613_v4  ;;  %v9854_v7 = vpop.f32.mrf.mxu0  ;;  %10096 = vmatprep.mubr.bf16.mxu1 %v12623_v48 }
 0x317   : > { %v5068_v24 = vpop.f32.mrf.mxu1 }
 0x318   : > { %v12744_v32 = vadd.f32 %v9854_v7, %v5205_v56  ;;  %v5203_v5 = vadd.f32 %v5068_v24, %v12619_v50  ;;  %v5442_v26 = vpop.f32.mrf.mxu0 }
 0x319   : > { %v9807_v52 = vpop.f32.mrf.mxu1 }
 0x31a   : > { %v12747_v35 = vadd.f32 %v5442_v26, %v5203_v5  ;;  %v5206_v18 = vadd.f32 %v9807_v52, %v12621_v46  ;;  %v9855_v39 = vpop.f32.mrf.mxu0 }
 0x31b   : > { %v5071_v13 = vpop.f32.mrf.mxu1 }
 0x31c   : > { %v12750_v44 = vadd.f32 %v9855_v39, %v5206_v18  ;;  %v5204_v4 = vadd.f32 %v5071_v13, %v12628_v53  ;;  %v5445_v47 = vpop.f32.mrf.mxu0 }
 0x31d   : > { %v9810_v19 = vpop.f32.mrf.mxu1  ;;  %10097 = vmatmul.mubr.bf16.gmra.mxu1 %v12631_v62 }
 0x31e   : > { %v12754_v48 = vadd.f32 %v5445_v47, %v5204_v4  ;;  %v5209_v50 = vadd.f32 %v9810_v19, %v12635_v31  ;;  %v9858_v14 = vpop.f32.mrf.mxu0  ;;  %10100 = vmatprep.mubr.bf16.mxu1 %v12642_v21 }
 0x31f   : > { %v5084_v29 = vpop.f32.mrf.mxu1 }
 0x320   : > { %v12758_v20 = vadd.f32 %v9858_v14, %v5209_v50  ;;  %v5207_v46 = vadd.f32 %v5084_v29, %v12638_v2  ;;  %v5458_v60 = vpop.f32.mrf.mxu0 }
 0x321   : > { %v9811_v9 = vpop.f32.mrf.mxu1 }
 0x322   : > { %v12761_v56 = vadd.f32 %v5458_v60, %v5207_v46  ;;  %v5210_v53 = vadd.f32 %v9811_v9, %v12640_v16  ;;  %v9859_v7 = vpop.f32.mrf.mxu0 }
 0x323   : > { %v5087_v62 = vpop.f32.mrf.mxu1 }
 0x324   : > { %v12764_v24 = vadd.f32 %v9859_v7, %v5210_v53  ;;  %v5208_v31 = vadd.f32 %v5087_v62, %v12644_v57  ;;  %v5461_v5 = vpop.f32.mrf.mxu0  ;;  %v4889_v57 = vadd.f32 %v12660_v17, %v12658_v33  ;;  %v4893_v7 = vadd.f32 %v12678_v0, %v12676_v22  ;;  %v6313_v22 = vld [vmem:[#allocation2 + $0x229] sm:$0xff]  ;;  %v6314_v0 = vld [vmem:[#allocation2 + $0x231] sm:$0xff] }
 0x325   : > { %v9814_v26 = vpop.f32.mrf.mxu1  ;;  %10101 = vmatmul.mubr.bf16.gmra.mxu1 %v12647_v6 }
 0x326   : > { %v12768_v21 = vadd.f32 %v5461_v5, %v5208_v31  ;;  %v5213_v2 = vadd.f32 %v9814_v26, %v12651_v10  ;;  %v9862_v52 = vpop.f32.mrf.mxu0  ;;  %10104 = vmatprep.mubr.bf16.mxu1 %v12662_v49 }
 0x327   : > { %v5100_v18 = vpop.f32.mrf.mxu1 }
 0x328   : > { %v12772_v39 = vadd.f32 %v9862_v52, %v5213_v2  ;;  %v5211_v16 = vadd.f32 %v5100_v18, %v12654_v37  ;;  %v5474_v13 = vpop.f32.mrf.mxu0 }
 0x329   : > { %v9815_v4 = vpop.f32.mrf.mxu1 }
 0x32a   : > { %v12777_v47 = vadd.f32 %v5474_v13, %v5211_v16  ;;  %v5214_v6 = vadd.f32 %v9815_v4, %v12656_v61  ;;  %v9863_v19 = vpop.f32.mrf.mxu0 }
 0x32b   : > { %v5103_v50 = vpop.f32.mrf.mxu1 }
 0x32c   : > { %v12780_v10 = vadd.f32 %v9863_v19, %v5214_v6  ;;  %v5212_v14 = vadd.f32 %v5103_v50, %v4889_v57  ;;  %v5477_v49 = vpop.f32.mrf.mxu0  ;;  %v6976_v6 = vpack.c.bf16 %v6314_v0, %v6313_v22 }
 0x32d   : > { %v9818_v29 = vpop.f32.mrf.mxu1  ;;  %10105 = vmatmul.mubr.bf16.gmra.mxu1 %v12665_v58 }
 0x32e   : > { %v12783_v46 = vadd.f32 %v5477_v49, %v5212_v14  ;;  %v5217_v37 = vadd.f32 %v9818_v29, %v12669_v59  ;;  %v9866_v60 = vpop.f32.mrf.mxu0  ;;  %10108 = vmatprep.mubr.bf16.mxu1 %v12680_v42 }
 0x32f   : > { %v5116_v33 = vpop.f32.mrf.mxu1 }
 0x330   : > { %v12787_v17 = vadd.f32 %v9866_v60, %v5217_v37  ;;  %v5215_v61 = vadd.f32 %v5116_v33, %v12672_v51  ;;  %v5490_v9 = vpop.f32.mrf.mxu0 }
 0x331   : > { %v9819_v53 = vpop.f32.mrf.mxu1 }
 0x332   : > { %v12792_v62 = vadd.f32 %v5490_v9, %v5215_v61  ;;  %v5218_v58 = vadd.f32 %v9819_v53, %v12674_v25  ;;  %v9867_v31 = vpop.f32.mrf.mxu0  ;;  %v10385_v53 = vld [vmem:[%s13373_s5 + $0xb8] sm:$0xff]  }
 0x333   : > { %v5119_v5 = vpop.f32.mrf.mxu1  ;;  %10140 = vmatprep.subr.bf16.mxu1 %v10385_v53 }
 0x334   : > { %v12795_v59 = vadd.f32 %v9867_v31, %v5218_v58  ;;  %v5216_v26 = vadd.f32 %v5119_v5, %v4893_v7  ;;  %v5493_v42 = vpop.f32.mrf.mxu0  ;;  %10141 = vmatpush3.bf16.msra.mxu1 %v10385_v53 }
 0x335   : > { %v9822_v2 = vpop.f32.mrf.mxu1  ;;  %10109 = vmatmul.mubr.bf16.gmra.mxu1 %v12683_v38  ;;  %v4897_v38 = vadd.f32 %v12696_v11, %v12694_v43  ;;  %v10384_v43 = vld [vmem:[%s13373_s5 + $0x38] sm:$0xff]  }
 0x336   : > { %v12798_v52 = vadd.f32 %v5493_v42, %v5216_v26  ;;  %v5221_v51 = vadd.f32 %v9822_v2, %v12687_v28  ;;  %v9870_v18 = vpop.f32.mrf.mxu0  ;;  %10112 = vmatprep.mubr.bf16.mxu1 %v12698_v15  ;;  %10116 = vmatprep.subr.bf16.mxu0 %v10384_v43 }
 0x337   : > { %v5132_v16 = vpop.f32.mrf.mxu1  ;;  %10117 = vmatpush3.bf16.msra.mxu0 %v10384_v43 }
 0x338   : > { %v12802_v25 = vadd.f32 %v9870_v18, %v5221_v51  ;;  %v5219_v13 = vadd.f32 %v5132_v16, %v12690_v3  ;;  %v5506_v4 = vpop.f32.mrf.mxu0 }
 0x339   : > { %v9823_v57 = vpop.f32.mrf.mxu1 }
 0x33a   : > { %v12807_v19 = vadd.f32 %v5506_v4, %v5219_v13  ;;  %v5222_v28 = vadd.f32 %v9823_v57, %v12692_v34  ;;  %v9871_v50 = vpop.f32.mrf.mxu0 }
 0x33b   : > { %v5135_v14 = vpop.f32.mrf.mxu1 }
 0x33c   : > { %v12810_v15 = vadd.f32 %v9871_v50, %v5222_v28  ;;  %v5220_v49 = vadd.f32 %v5135_v14, %v4897_v38  ;;  %v5509_v29 = vpop.f32.mrf.mxu0  ;;  %v10386_v38 = vld [vmem:[%s13373_s5 + $0x30] sm:$0xff]  }
 0x33d   : > { %v9826_v37 = vpop.f32.mrf.mxu1  ;;  %10113 = vmatmul.mubr.bf16.gmra.mxu1 %v6976_v6  ;;  %10118 = vmatprep.subr.bf16.mxu0 %v10386_v38 }
 0x33e   : > { %v12812_v60 = vadd.f32 %v5509_v29, %v5220_v49  ;;  %v5225_v3 = vadd.f32 %v9826_v37, %v12703_v40  ;;  %v9874_v33 = vpop.f32.mrf.mxu0  ;;  %v4901_v40 = vadd.f32 %v12711_v12, %v12709_v41  ;;  %10119 = vmatpush3.bf16.msra.mxu0 %v10386_v38 }
 0x33f   : > { %v5148_v11 = vpop.f32.mrf.mxu1 }
 0x340   : > { %v12818_v61 = vadd.f32 %v9874_v33, %v5225_v3  ;;  %v5223_v34 = vadd.f32 %v5148_v11, %v12705_v36  ;;  %v5522_v9 = vpop.f32.mrf.mxu0 }
 0x341   : > { %v9827_v7 = vpop.f32.mrf.mxu1 }
 0x342   : > { %v12826_v58 = vadd.f32 %v5522_v9, %v5223_v34  ;;  %v5226_v31 = vadd.f32 %v9827_v7, %v12707_v30  ;;  %v9875_v5 = vpop.f32.mrf.mxu0 }
 0x343   : > { %v5151_v26 = vpop.f32.mrf.mxu1 }
 0x344   : > { %v12829_v36 = vadd.f32 %v9875_v5, %v5226_v31  ;;  %v5224_v42 = vadd.f32 %v5151_v26, %v4901_v40  ;;  %v5525_v2 = vpop.f32.mrf.mxu0 }
 0x345   : > { %v9894_v51 = vpop.f32.mrf.mxu1 }
 0x346   : > { %v12831_v18 = vadd.f32 %v5525_v2, %v5224_v42  ;;  %v12834_v22 = vadd.f32 %v9894_v51, %v12716_v45  ;;  %v12836_v0 = vpop.f32.mrf.mxu0  ;;  %v10391_v51 = vld [vmem:[%s13373_s5 + $0xa0] sm:$0xff]  }
 0x347   : > { %v5733_v41 = vpop.f32.mrf.mxu1 }
 0x348   : > { %v12839_v12 = vadd.f32 %v5733_v41, %v12719_v63  ;;  %v12841_v30 = vpop.f32.mrf.mxu0 }
 0x349   : > { %v9895_v16 = vpop.f32.mrf.mxu1 }
 0x34a   : > { %v12844_v13 = vadd.f32 %v9895_v16, %v12722_v27  ;;  %v12846_v4 = vpop.f32.mrf.mxu0  ;;  %v10387_v27 = vld [vmem:[%s13373_s5 + $0xb0] sm:$0xff]  }
 0x34b   : > { %v5736_v57 = vpop.f32.mrf.mxu1  ;;  %10142 = vmatprep.subr.bf16.mxu1 %v10387_v27 }
 0x34c   : > { %v12849_v6 = vadd.f32 %v5736_v57, %v12726_v23  ;;  %v12851_v45 = vpop.f32.mrf.mxu0  ;;  %10143 = vmatpush3.bf16.msra.mxu1 %v10387_v27 }
 0x34d   : > { %v9898_v63 = vpop.f32.mrf.mxu1 }
 0x34e   : > { %v12857_v28 = vadd.f32 %v9898_v63, %v12730_v8  ;;  %v12859_v50 = vpop.f32.mrf.mxu0  ;;  %v10393_v63 = vld [vmem:[%s13373_s5 + $0x98] sm:$0xff]  }
 0x34f   : > { %v5749_v14 = vpop.f32.mrf.mxu1 }
 0x350   : > { %v12865_v23 = vadd.f32 %v5749_v14, %v12733_v54  ;;  %v12867_v49 = vpop.f32.mrf.mxu0  ;;  %v10388_v54 = vld [vmem:[%s13373_s5 + $0x28] sm:$0xff]  }
 0x351   : > { %v9899_v29 = vpop.f32.mrf.mxu1  ;;  %10120 = vmatprep.subr.bf16.mxu0 %v10388_v54 }
 0x352   : > { %v12870_v8 = vadd.f32 %v9899_v29, %v12736_v1  ;;  %v12872_v37 = vpop.f32.mrf.mxu0  ;;  %v10389_v1 = vld [vmem:[%s13373_s5 + $0xa8] sm:$0xff]   ;;  %10121 = vmatpush3.bf16.msra.mxu0 %v10388_v54  ;;  %v10392_v29 = vld [vmem:[%s13373_s5 + $0x18] sm:$0xff]  }
 0x353   : > { %v5752_v3 = vpop.f32.mrf.mxu1  ;;  %10144 = vmatprep.subr.bf16.mxu1 %v10389_v1 }
 0x354   : > { %v12875_v33 = vadd.f32 %v5752_v3, %v12740_v55  ;;  %v12877_v43 = vpop.f32.mrf.mxu0  ;;  %10145 = vmatpush3.bf16.msra.mxu1 %v10389_v1 }
 0x355   : > { %v9902_v11 = vpop.f32.mrf.mxu1  ;;  %10146 = vmatprep.subr.bf16.mxu1 %v10391_v51 }
 0x356   : > { %v12883_v34 = vadd.f32 %v9902_v11, %v12744_v32  ;;  %v12885_v9 = vpop.f32.mrf.mxu0 }
 0x357   : > { %v5765_v53 = vpop.f32.mrf.mxu1 }
 0x358   : > { %v12891_v55 = vadd.f32 %v5765_v53, %v12747_v35  ;;  %v12893_v7 = vpop.f32.mrf.mxu0  ;;  %v10390_v35 = vld [vmem:[%s13373_s5 + $0x20] sm:$0xff]   ;;  %10147 = vmatpush3.bf16.msra.mxu1 %v10391_v51 }
 0x359   : > { %v9903_v40 = vpop.f32.mrf.mxu1  ;;  %10122 = vmatprep.subr.bf16.mxu0 %v10390_v35  ;;  %10148 = vmatprep.subr.bf16.mxu1 %v10393_v63 }
 0x35a   : > { %v12896_v32 = vadd.f32 %v9903_v40, %v12750_v44  ;;  %v12898_v31 = vpop.f32.mrf.mxu0  ;;  %10123 = vmatpush3.bf16.msra.mxu0 %v10390_v35 }
 0x35b   : > { %v5768_v5 = vpop.f32.mrf.mxu1  ;;  %10124 = vmatprep.subr.bf16.mxu0 %v10392_v29 }
 0x35c   : > { %v12901_v26 = vadd.f32 %v5768_v5, %v12754_v48  ;;  %v12903_v42 = vpop.f32.mrf.mxu0  ;;  %10149 = vmatpush3.bf16.msra.mxu1 %v10393_v63 }
 0x35d   : > { %v9906_v2 = vpop.f32.mrf.mxu1 }
 0x35e   : > { %v12912_v44 = vadd.f32 %v9906_v2, %v12758_v20  ;;  %v12914_v41 = vpop.f32.mrf.mxu0  ;;  %10125 = vmatpush3.bf16.msra.mxu0 %v10392_v29 }
 0x35f   : > { %v5781_v16 = vpop.f32.mrf.mxu1 }
 0x360   : > { %v12917_v48 = vadd.f32 %v5781_v16, %v12761_v56  ;;  %v12919_v57 = vpop.f32.mrf.mxu0 }
 0x361   : > { %v9907_v38 = vpop.f32.mrf.mxu1 }
 0x362   : > { %v12925_v20 = vadd.f32 %v9907_v38, %v12764_v24  ;;  %v12927_v27 = vpop.f32.mrf.mxu0  ;;  %v10395_v24 = vld [vmem:[%s13373_s5 + $0x90] sm:$0xff]  }
 0x363   : > { %13553 = vst [vmem:[#allocation11_spill] sm:$0xff] %v12927_v27  ;;  %v5784_v14 = vpop.f32.mrf.mxu1  ;;  %10150 = vmatprep.subr.bf16.mxu1 %v10395_v24 }
 0x364   : > { %v12933_v56 = vadd.f32 %v5784_v14, %v12768_v21  ;;  %v12935_v3 = vpop.f32.mrf.mxu0  ;;  %v10394_v21 = vld [vmem:[%s13373_s5 + $0x10] sm:$0xff]   ;;  %10151 = vmatpush3.bf16.msra.mxu1 %v10395_v24 }
 0x365   : > { %13555 = vst [vmem:[#allocation13_spill] sm:$0xff] %v12935_v3  ;;  %v9910_v54 = vpop.f32.mrf.mxu1  ;;  %10126 = vmatprep.subr.bf16.mxu0 %v10394_v21 }
 0x366   : > { %13554 = vst [vmem:[#allocation12_spill] sm:$0xff] %v12933_v56  ;;  %v12941_v11 = vadd.f32 %v9910_v54, %v12772_v39  ;;  %v12943_v1 = vpop.f32.mrf.mxu0  ;;  %v10396_v39 = vld [vmem:[%s13373_s5 + $0x88] sm:$0xff]   ;;  %10127 = vmatpush3.bf16.msra.mxu0 %v10394_v21 }
 0x367   : > { %13557 = vst [vmem:[#allocation7_spill] sm:$0xff] %v12943_v1  ;;  %v5797_v53 = vpop.f32.mrf.mxu1  ;;  %10152 = vmatprep.subr.bf16.mxu1 %v10396_v39 }
 0x368   : > { %13556 = vst [vmem:[#allocation14_spill] sm:$0xff] %v12941_v11  ;;  %v12949_v40 = vadd.f32 %v5797_v53, %v12777_v47  ;;  %v12951_v5 = vpop.f32.mrf.mxu0  ;;  %v10397_v47 = vld [vmem:[%s13373_s5 + $0x8] sm:$0xff]   ;;  %10153 = vmatpush3.bf16.msra.mxu1 %v10396_v39 }
 0x369   : > { %13559 = vst [vmem:[#allocation58_spill] sm:$0xff] %v12951_v5  ;;  %v9911_v35 = vpop.f32.mrf.mxu1  ;;  %10128 = vmatprep.subr.bf16.mxu0 %v10397_v47 }
 0x36a   : > { %13558 = vst [vmem:[#allocation62_spill] sm:$0xff] %v12949_v40  ;;  %v12957_v2 = vadd.f32 %v9911_v35, %v12780_v10  ;;  %v12959_v51 = vpop.f32.mrf.mxu0  ;;  %v10398_v10 = vld [vmem:[%s13373_s5 + $0x80] sm:$0xff]   ;;  %10129 = vmatpush3.bf16.msra.mxu0 %v10397_v47 }
 0x36b   : > { %13561 = vst [vmem:[#allocation9_spill] sm:$0xff] %v12959_v51  ;;  %v5800_v16 = vpop.f32.mrf.mxu1  ;;  %10154 = vmatprep.subr.bf16.mxu1 %v10398_v10 }
 0x36c   : > { %13560 = vst [vmem:[#allocation5_spill] sm:$0xff] %v12957_v2  ;;  %v12965_v38 = vadd.f32 %v5800_v16, %v12783_v46  ;;  %v12967_v63 = vpop.f32.mrf.mxu0  ;;  %v10399_v46 = vld [vmem:[%s13373_s5] sm:$0xff]   ;;  %10155 = vmatpush3.bf16.msra.mxu1 %v10398_v10 }
 0x36d   : > { %13563 = vst [vmem:[#allocation65_spill] sm:$0xff] %v12967_v63  ;;  %v9914_v14 = vpop.f32.mrf.mxu1  ;;  %10130 = vmatprep.subr.bf16.mxu0 %v10399_v46 }
 0x36e   : > { %13562 = vst [vmem:[#allocation15_spill] sm:$0xff] %v12965_v38  ;;  %v12973_v29 = vadd.f32 %v9914_v14, %v12787_v17  ;;  %v12975_v54 = vpop.f32.mrf.mxu0  ;;  %10131 = vmatpush3.bf16.msra.mxu0 %v10399_v46 }
 0x36f   : > { %13565 = vst [vmem:[#allocation6_spill] sm:$0xff] %v12975_v54  ;;  %v5813_v24 = vpop.f32.mrf.mxu1 }
 0x370   : > { %13564 = vst [vmem:[#allocation59_spill] sm:$0xff] %v12973_v29  ;;  %v12981_v53 = vadd.f32 %v5813_v24, %v12792_v62  ;;  %v12983_v21 = vpop.f32.mrf.mxu0 }
 0x371   : > { %13567 = vst [vmem:[#allocation16_spill] sm:$0xff] %v12983_v21  ;;  %v9915_v35 = vpop.f32.mrf.mxu1 }
 0x372   : > { %13566 = vst [vmem:[#allocation8_spill] sm:$0xff] %v12981_v53  ;;  %v12986_v17 = vadd.f32 %v9915_v35, %v12795_v59  ;;  %v12988_v39 = vpop.f32.mrf.mxu0 }
 0x373   : > { %13569 = vst [vmem:[#allocation60_spill] sm:$0xff] %v12988_v39  ;;  %v5816_v16 = vpop.f32.mrf.mxu1 }
 0x374   : > { %13568 = vst [vmem:[#allocation17_spill] sm:$0xff] %v12986_v17  ;;  %v12991_v47 = vadd.f32 %v5816_v16, %v12798_v52  ;;  %v12993_v14 = vpop.f32.mrf.mxu0  ;;  %v13008_v52 = vld [vmem:[%s13373_s5 + $0xf8] sm:$0xff]  }
 0x375   : > { %13571 = vst [vmem:[#allocation10_spill] sm:$0xff] %v12993_v14  ;;  %v9918_v54 = vpop.f32.mrf.mxu1  ;;  %13576 = vst [vmem:[#allocation71_spill] sm:$0xff] %v13008_v52  ;;  %10188 = vmatprep.subr.bf16.mxu1 %v13008_v52 }
 0x376   : > { %13570 = vst [vmem:[#allocation68_spill] sm:$0xff] %v12991_v47  ;;  %v12996_v62 = vadd.f32 %v9918_v54, %v12802_v25  ;;  %v12998_v24 = vpop.f32.mrf.mxu0 }
 0x377   : > { %13573 = vst [vmem:[#allocation19_spill] sm:$0xff] %v12998_v24  ;;  %v5829_v10 = vpop.f32.mrf.mxu1 }
 0x378   : > { %13572 = vst [vmem:[#allocation18_spill] sm:$0xff] %v12996_v62  ;;  %v13001_v21 = vadd.f32 %v5829_v10, %v12807_v19  ;;  %v13003_v59 = vpop.f32.mrf.mxu0  ;;  %v13019_v19 = vld [vmem:[%s13373_s5 + $0x78] sm:$0xff]  }
 0x379   : > { %13575 = vst [vmem:[#allocation61_spill] sm:$0xff] %v13003_v59  ;;  %v9919_v35 = vpop.f32.mrf.mxu1  ;;  %13579 = vst [vmem:[#allocation63_spill] sm:$0xff] %v13019_v19  ;;  %10164 = vmatprep.subr.bf16.mxu0 %v13019_v19 }
 0x37a   : > { %13574 = vst [vmem:[#allocation23_spill] sm:$0xff] %v13001_v21  ;;  %v13011_v46 = vadd.f32 %v9919_v35, %v12810_v15  ;;  %v13013_v16 = vpop.f32.mrf.mxu0 }
 0x37b   : > { %13578 = vst [vmem:[#allocation21_spill] sm:$0xff] %v13013_v16  ;;  %v5832_v25 = vpop.f32.mrf.mxu1 }
 0x37c   : > { %13577 = vst [vmem:[#allocation20_spill] sm:$0xff] %v13011_v46  ;;  %v13022_v54 = vadd.f32 %v5832_v25, %v12812_v60  ;;  %v13024_v10 = vpop.f32.mrf.mxu0 }
 0x37d   : > { %13581 = vst [vmem:[#allocation76_spill] sm:$0xff] %v13024_v10  ;;  %v9922_v59 = vpop.f32.mrf.mxu1 }
 0x37e   : > { %13580 = vst [vmem:[#allocation24_spill] sm:$0xff] %v13022_v54  ;;  %v13028_v15 = vadd.f32 %v9922_v59, %v12818_v61  ;;  %v13030_v35 = vpop.f32.mrf.mxu0 }
 0x37f   : > { %13583 = vst [vmem:[#allocation25_spill] sm:$0xff] %v13030_v35  ;;  %v5845_v16 = vpop.f32.mrf.mxu1 }
 0x380   : > { %13582 = vst [vmem:[#allocation64_spill] sm:$0xff] %v13028_v15  ;;  %v13033_v52 = vadd.f32 %v5845_v16, %v12826_v58  ;;  %v13035_v46 = vpop.f32.mrf.mxu0 }
 0x381   : > { %13585 = vst [vmem:[#allocation31_spill] sm:$0xff] %v13035_v46  ;;  %v9923_v21 = vpop.f32.mrf.mxu1 }
 0x382   : > { %13584 = vst [vmem:[#allocation26_spill] sm:$0xff] %v13033_v52  ;;  %v13038_v60 = vadd.f32 %v9923_v21, %v12829_v36  ;;  %v13040_v25 = vpop.f32.mrf.mxu0 }
 0x383   : > { %13587 = vst [vmem:[#allocation79_spill] sm:$0xff] %v13040_v25  ;;  %v5848_v10 = vpop.f32.mrf.mxu1 }
 0x384   : > { %13586 = vst [vmem:[#allocation66_spill] sm:$0xff] %v13038_v60  ;;  %v13043_v19 = vadd.f32 %v5848_v10, %v12831_v18  ;;  %v13045_v61 = vpop.f32.mrf.mxu0 }
 0x385   : > { %13589 = vst [vmem:[#allocation49_spill] sm:$0xff] %v13045_v61  ;;  %v9990_v59 = vpop.f32.mrf.mxu1 }
 0x386   : > { %13588 = vst [vmem:[#allocation22_spill] sm:$0xff] %v13043_v19  ;;  %v10038_v35 = vpop.f32.mrf.mxu0 }
 0x387   : > { %v6430_v15 = vpop.f32.mrf.mxu1 }
 0x388   : > { %v6753_v54 = vpop.f32.mrf.mxu0 }
 0x389   : > { %v9991_v58 = vpop.f32.mrf.mxu1 }
 0x38a   : > { %v10039_v16 = vpop.f32.mrf.mxu0 }
 0x38b   : > { %v6433_v52 = vpop.f32.mrf.mxu1 }
 0x38c   : > { %v13047_v24 = vpop.f32.mrf.mxu0 }
 0x38d   : > { %v9994_v46 = vpop.f32.mrf.mxu1 }
 0x38e   : > { %v13053_v25 = vpop.f32.mrf.mxu0 }
 0x38f   : > { %v13049_v36 = vpop.f32.mrf.mxu1 }
 0x390   : > { %v13059_v61 = vpop.f32.mrf.mxu0 }
 0x391   : > { %v13051_v21 = vpop.f32.mrf.mxu1 }
 0x392   : > { %v13065_v62 = vpop.f32.mrf.mxu0 }
 0x393   : > { %v13055_v18 = vpop.f32.mrf.mxu1 }
 0x394   : > { %v13071_v39 = vpop.f32.mrf.mxu0 }
 0x395   : > { %v13057_v10 = vpop.f32.mrf.mxu1 }
 0x396   : > { %v13077_v29 = vpop.f32.mrf.mxu0 }
 0x397   : > { %v13061_v19 = vpop.f32.mrf.mxu1 }
 0x398   : > { %v13083_v51 = vpop.f32.mrf.mxu0 }
 0x399   : > { %v13063_v60 = vpop.f32.mrf.mxu1 }
 0x39a   : > { %v13089_v40 = vpop.f32.mrf.mxu0 }
 0x39b   : > { %v13067_v14 = vpop.f32.mrf.mxu1 }
 0x39c   : > { %v13095_v3 = vpop.f32.mrf.mxu0 }
 0x39d   : > { %v13069_v47 = vpop.f32.mrf.mxu1  ;;  %13598 = vst [vmem:[#allocation70_spill] sm:$0xff] %v13095_v3 }
 0x39f   : > { %v13073_v17 = vpop.f32.mrf.mxu1 }
 0x3a0   : > { %13590 = vst [vmem:[#allocation27_spill] sm:$0xff] %v13073_v17 }
 0x3a1   : > { %v13075_v53 = vpop.f32.mrf.mxu1 }
 0x3a2   : > { %13591 = vst [vmem:[#allocation28_spill] sm:$0xff] %v13075_v53 }
 0x3a3   : > { %v13079_v63 = vpop.f32.mrf.mxu1 }
 0x3a4   : > { %13592 = vst [vmem:[#allocation29_spill] sm:$0xff] %v13079_v63  ;;  %v13101_v63 = vpop.f32.mrf.mxu0 }
 0x3a5   : > { %v13081_v38 = vpop.f32.mrf.mxu1  ;;  %13601 = vst [vmem:[#allocation39_spill] sm:$0xff] %v13101_v63 }
 0x3a6   : > { %13593 = vst [vmem:[#allocation30_spill] sm:$0xff] %v13081_v38 }
 0x3a7   : > { %v13085_v2 = vpop.f32.mrf.mxu1 }
 0x3a8   : > { %13594 = vst [vmem:[#allocation67_spill] sm:$0xff] %v13085_v2  ;;  %v13107_v2 = vpop.f32.mrf.mxu0 }
 0x3a9   : > { %v13087_v5 = vpop.f32.mrf.mxu1  ;;  %13604 = vst [vmem:[#allocation36_spill] sm:$0xff] %v13107_v2 }
 0x3aa   : > { %13595 = vst [vmem:[#allocation82_spill] sm:$0xff] %v13087_v5 }
 0x3ab   : > { %v13091_v1 = vpop.f32.mrf.mxu1 }
 0x3ac   : > { %13596 = vst [vmem:[#allocation32_spill] sm:$0xff] %v13091_v1  ;;  %v13113_v1 = vpop.f32.mrf.mxu0 }
 0x3ad   : > { %v13093_v11 = vpop.f32.mrf.mxu1  ;;  %13607 = vst [vmem:[#allocation73_spill] sm:$0xff] %v13113_v1 }
 0x3ae   : > { %13597 = vst [vmem:[#allocation69_spill] sm:$0xff] %v13093_v11 }
 0x3af   : > { %v13097_v53 = vpop.f32.mrf.mxu1 }
 0x3b0   : > { %13599 = vst [vmem:[#allocation33_spill] sm:$0xff] %v13097_v53  ;;  %v13121_v53 = vpop.f32.mrf.mxu0 }
 0x3b1   : > { %v13099_v56 = vpop.f32.mrf.mxu1  ;;  %13610 = vst [vmem:[#allocation75_spill] sm:$0xff] %v13121_v53 }
 0x3b2   : > { %13600 = vst [vmem:[#allocation34_spill] sm:$0xff] %v13099_v56  ;;  %v6217_v56 = vadd.f32 %v12836_v0, %v12834_v22 }
 0x3b3   : > { %v13103_v38 = vpop.f32.mrf.mxu1 }
 0x3b4   : > { %13602 = vst [vmem:[#allocation72_spill] sm:$0xff] %v13103_v38  ;;  %v6591_v2 = vadd.f32 %v9990_v59, %v6217_v56 }
 0x3b5   : > { %v13105_v17 = vpop.f32.mrf.mxu1 }
 0x3b6   : > { %13603 = vst [vmem:[#allocation35_spill] sm:$0xff] %v13105_v17  ;;  %v6215_v17 = vadd.f32 %v12841_v30, %v12839_v12  ;;  %v6914_v0 = vadd.f32 %v10038_v35, %v6591_v2  ;;  %v13140_v12 = vld [vmem:[%s13372_s4] ss:$0 sm:$0xff]  ;;  %v6221_v30 = vadd.f32 %v12859_v50, %v12857_v28 }
 0x3b7   : > { %v13109_v5 = vpop.f32.mrf.mxu1 }
 0x3b8   : > { %13605 = vst [vmem:[#allocation37_spill] sm:$0xff] %v13109_v5  ;;  %v6589_v1 = vadd.f32 %v6430_v15, %v6215_v17 }
 0x3b9   : > { %v13111_v27 = vpop.f32.mrf.mxu1 }
 0x3ba   : > { %13606 = vst [vmem:[#allocation38_spill] sm:$0xff] %v13111_v27  ;;  %v6218_v27 = vadd.f32 %v12846_v4, %v12844_v13  ;;  %v6912_v13 = vadd.f32 %v6753_v54, %v6589_v1 }
 0x3bb   : > { %v13115_v11 = vpop.f32.mrf.mxu1 }
 0x3bc   : > { %13608 = vst [vmem:[#allocation40_spill] sm:$0xff] %v13115_v11  ;;  %v13131_v11 = vpop.f32.mrf.mxu0  ;;  %v6592_v53 = vadd.f32 %v9991_v58, %v6218_v27  ;;  %v6595_v27 = vadd.f32 %v9994_v46, %v6221_v30 }
 0x3bd   : > { %v13117_v3 = vpop.f32.mrf.mxu1 }
 0x3be   : > { %13609 = vst [vmem:[#allocation74_spill] sm:$0xff] %v13117_v3  ;;  %v6216_v3 = vadd.f32 %v12851_v45, %v12849_v6  ;;  %v13144_v4 = vpop.f32.mrf.mxu0  ;;  %v6219_v6 = vadd.f32 %v12867_v49, %v12865_v23  ;;  %v6915_v2 = vadd.f32 %v10039_v16, %v6592_v53  ;;  %v6220_v49 = vadd.f32 %v12877_v43, %v12875_v33 }
 0x3bf   : > { %v13123_v38 = vpop.f32.mrf.mxu1  ;;  %v6918_v54 = vadd.f32 %v13053_v25, %v6595_v27 }
 0x3c0   : > { %13611 = vst [vmem:[#allocation41_spill] sm:$0xff] %v13123_v38  ;;  %v6590_v38 = vadd.f32 %v6433_v52, %v6216_v3  ;;  %v6222_v52 = vadd.f32 %v12872_v37, %v12870_v8  ;;  %v6593_v28 = vadd.f32 %v13049_v36, %v6219_v6  ;;  %v13153_v50 = vpop.f32.mrf.mxu0  ;;  %v6594_v59 = vadd.f32 %v13055_v18, %v6220_v49 }
 0x3c1   : > { %v13127_v5 = vpop.f32.mrf.mxu1 }
 0x3c2   : > { %v6913_v15 = vadd.f32 %v13047_v24, %v6590_v38  ;;  %v6596_v53 = vadd.f32 %v13051_v21, %v6222_v52  ;;  %v6225_v24 = vadd.f32 %v12885_v9, %v12883_v34  ;;  %v6916_v16 = vadd.f32 %v13059_v61, %v6593_v28  ;;  %v13165_v36 = vpop.f32.mrf.mxu0 }
 0x3c3   : > { %v13135_v22 = vpop.f32.mrf.mxu1  ;;  %v6223_v21 = vadd.f32 %v12893_v7, %v12891_v55 }
 0x3c4   : > { %v6599_v34 = vadd.f32 %v13057_v10, %v6225_v24  ;;  %v6224_v10 = vadd.f32 %v12903_v42, %v12901_v26  ;;  %v13616_v24 = vld [vmem:[#allocation13_spill] sm:$0xff] }
 0x3c5   : > { %v10086_v63 = vpop.f32.mrf.mxu1 }
 0x3c6   : > { %v7237_v56 = vadd.f32 %v10086_v63, %v6914_v0  ;;  %v6919_v0 = vadd.f32 %v13065_v62, %v6596_v53  ;;  %v6598_v52 = vadd.f32 %v13067_v14, %v6224_v10  ;;  %v13613_v53 = vld [vmem:[#allocation70_spill] sm:$0xff] }
 0x3c7   : > { %v7076_v45 = vpop.f32.mrf.mxu1  ;;  %v13623_v10 = vld [vmem:[#allocation62_spill] sm:$0xff] }
 0x3c8   : > { %v7340_v3 = vadd.f32 %v13140_v12, %v7237_v56  ;;  %v7235_v17 = vadd.f32 %v7076_v45, %v6912_v13  ;;  %v6226_v13 = vadd.f32 %v12898_v31, %v12896_v32  ;;  %v6917_v56 = vadd.f32 %v13071_v39, %v6594_v59 }
 0x3c9   : > { %v10087_v35 = vpop.f32.mrf.mxu1  ;;  %v6597_v45 = vadd.f32 %v13061_v19, %v6223_v21  ;;  %v6922_v32 = vadd.f32 %v13077_v29, %v6599_v34  ;;  %v13620_v34 = vld [vmem:[#allocation7_spill] sm:$0xff] }
 0x3ca   : > { %v7372_v1 = vmax.f32 %v7340_v3, 0.0  ;;  %v7338_v63 = vadd.f32 %v13140_v12, %v7235_v17  ;;  %v7238_v23 = vadd.f32 %v10087_v35, %v6915_v2  ;;  %v13177_v2 = vpop.f32.mrf.mxu0  ;;  %v6600_v27 = vadd.f32 %v13063_v60, %v6226_v13 }
 0x3cb   : > { %v7079_v46 = vpop.f32.mrf.mxu1  ;;  %v6229_v17 = vadd.f32 %v12914_v41, %v12912_v44  ;;  %v6920_v35 = vadd.f32 %v13083_v51, %v6597_v45  ;;  %v6227_v60 = vadd.f32 %v12919_v57, %v12917_v48 }
 0x3cc   : > { %7404 = vst [vmem:[#allocation3 + $0x10] sm:$0xff] %v7372_v1  ;;  %v7370_v8 = vmax.f32 %v7338_v63, 0.0  ;;  %v7341_v37 = vadd.f32 %v13140_v12, %v7238_v23  ;;  %v7236_v38 = vadd.f32 %v7079_v46, %v6913_v15  ;;  %v13189_v28 = vpop.f32.mrf.mxu0  ;;  %v6923_v1 = vadd.f32 %v13089_v40, %v6600_v27  ;;  %v13612_v23 = vld [vmem:[#allocation11_spill] sm:$0xff]  ;;  %v13624_v27 = vld [vmem:[#allocation58_spill] sm:$0xff] }
 0x3cd   : > { %v10090_v58 = vpop.f32.mrf.mxu1  ;;  %v6603_v44 = vadd.f32 %v13069_v47, %v6229_v17  ;;  %v6230_v49 = vadd.f32 %v13612_v23, %v12925_v20  ;;  %v6921_v46 = vadd.f32 %v13613_v53, %v6598_v52  ;;  %v13615_v47 = vld [vmem:[#allocation12_spill] sm:$0xff] }
 0x3ce   : > { %7402 = vst [vmem:[#allocation3] sm:$0xff] %v7370_v8  ;;  %v7373_v33 = vmax.f32 %v7341_v37, 0.0  ;;  %v7339_v43 = vadd.f32 %v13140_v12, %v7236_v38  ;;  %v7241_v25 = vadd.f32 %v10090_v58, %v6918_v54  ;;  %v13614_v8 = vld [vmem:[#allocation27_spill] sm:$0xff]  ;;  %v13201_v38 = vpop.f32.mrf.mxu0  ;;  %v6228_v59 = vadd.f32 %v13616_v24, %v13615_v47  ;;  %v13617_v58 = vld [vmem:[#allocation28_spill] sm:$0xff]  ;;  %v13633_v24 = vld [vmem:[#allocation82_spill] sm:$0xff] }
 0x3cf   : > { %v7092_v30 = vpop.f32.mrf.mxu1  ;;  %v6601_v37 = vadd.f32 %v13614_v8, %v6227_v60  ;;  %v13627_v60 = vld [vmem:[#allocation5_spill] sm:$0xff] }
 0x3d0   : > { %7405 = vst [vmem:[#allocation3 + $0x18] sm:$0xff] %v7373_v33  ;;  %v7371_v9 = vmax.f32 %v7339_v43, 0.0  ;;  %v7344_v18 = vadd.f32 %v13140_v12, %v7241_v25  ;;  %v7239_v61 = vadd.f32 %v7092_v30, %v6916_v16  ;;  %v6604_v16 = vadd.f32 %v13617_v58, %v6230_v49  ;;  %v13618_v43 = vld [vmem:[#allocation39_spill] sm:$0xff]  ;;  %v13619_v30 = vld [vmem:[#allocation14_spill] sm:$0xff]  ;;  %v13213_v45 = vpop.f32.mrf.mxu0 }
 0x3d1   : > { %v10091_v6 = vpop.f32.mrf.mxu1  ;;  %v6926_v20 = vadd.f32 %v13618_v43, %v6603_v44  ;;  %v13629_v44 = vld [vmem:[#allocation75_spill] sm:$0xff] }
 0x3d2   : > { %7403 = vst [vmem:[#allocation3 + $0x8] sm:$0xff] %v7371_v9  ;;  %v7376_v55 = vmax.f32 %v7344_v18, 0.0  ;;  %v7342_v7 = vadd.f32 %v13140_v12, %v7239_v61  ;;  %v7242_v62 = vadd.f32 %v10091_v6, %v6919_v0  ;;  %v6233_v9 = vadd.f32 %v13620_v34, %v13619_v30  ;;  %v13621_v18 = vld [vmem:[#allocation29_spill] sm:$0xff]  ;;  %v13636_v30 = vld [vmem:[#allocation32_spill] sm:$0xff] }
 0x3d3   : > { %v7095_v3 = vpop.f32.mrf.mxu1  ;;  %v6602_v61 = vadd.f32 %v13621_v18, %v6228_v59 }
 0x3d4   : > { %7408 = vst [vmem:[#allocation3 + $0x30] sm:$0xff] %v7376_v55  ;;  %v7374_v31 = vmax.f32 %v7342_v7, 0.0  ;;  %v7345_v39 = vadd.f32 %v13140_v12, %v7242_v62  ;;  %v7240_v19 = vadd.f32 %v7095_v3, %v6917_v56  ;;  %v13622_v56 = vld [vmem:[#allocation36_spill] sm:$0xff]  ;;  %v6231_v3 = vadd.f32 %v13624_v27, %v13623_v10  ;;  %v13639_v27 = vld [vmem:[#allocation69_spill] sm:$0xff] }
 0x3d5   : > { %v10094_v15 = vpop.f32.mrf.mxu1  ;;  %v6924_v6 = vadd.f32 %v13622_v56, %v6601_v37 }
 0x3d6   : > { %7406 = vst [vmem:[#allocation3 + $0x20] sm:$0xff] %v7374_v31  ;;  %v7377_v26 = vmax.f32 %v7345_v39, 0.0  ;;  %v7343_v42 = vadd.f32 %v13140_v12, %v7240_v19  ;;  %v7245_v29 = vadd.f32 %v10094_v15, %v6922_v32  ;;  %v13625_v32 = vld [vmem:[#allocation73_spill] sm:$0xff]  ;;  %v13626_v39 = vld [vmem:[#allocation30_spill] sm:$0xff] }
 0x3d7   : > { %v7108_v63 = vpop.f32.mrf.mxu1  ;;  %v6927_v31 = vadd.f32 %v13625_v32, %v6604_v16  ;;  %v6607_v19 = vadd.f32 %v13626_v39, %v6233_v9  ;;  %v7436_v52 = vld [vmem:[#allocation3 + $0x10] ss:$2 sm:$0xff]  ;;  %v13640_v39 = vld [vmem:[#allocation17_spill] sm:$0xff] }
 0x3d8   : > { %7409 = vst [vmem:[#allocation3 + $0x38] sm:$0xff] %v7377_v26  ;;  %v7375_v41 = vmax.f32 %v7343_v42, 0.0  ;;  %v7348_v14 = vadd.f32 %v13140_v12, %v7245_v29  ;;  %v7243_v51 = vadd.f32 %v7108_v63, %v6920_v35 }
 0x3d9   : > { %v10095_v54 = vpop.f32.mrf.mxu1  ;;  %v7434_v49 = vld [vmem:[#allocation3] ss:$2 sm:$0xff]  ;;  %v6930_v16 = vadd.f32 %v13131_v11, %v6607_v19  ;;  %v13641_v19 = vld [vmem:[#allocation60_spill] sm:$0xff] }
 0x3da   : > { %7407 = vst [vmem:[#allocation3 + $0x28] sm:$0xff] %v7375_v41  ;;  %v7380_v48 = vmax.f32 %v7348_v14, 0.0  ;;  %v7346_v57 = vadd.f32 %v13140_v12, %v7243_v51  ;;  %v7246_v40 = vadd.f32 %v10095_v54, %v6923_v1  ;;  %v13628_v1 = vld [vmem:[#allocation9_spill] sm:$0xff]  ;;  %v6925_v41 = vadd.f32 %v13629_v44, %v6602_v61  ;;  %v13630_v14 = vld [vmem:[#allocation67_spill] sm:$0xff] }
 0x3db   : > { %v7111_v33 = vpop.f32.mrf.mxu1  ;;  %v6234_v63 = vadd.f32 %v13628_v1, %v13627_v60  ;;  %v6605_v51 = vadd.f32 %v13630_v14, %v6231_v3  ;;  %v13643_v1 = vld [vmem:[#allocation68_spill] sm:$0xff] }
 0x3dc   : > { %7412 = vst [vmem:[#allocation3 + $0x50] sm:$0xff] %v7380_v48  ;;  %v7378_v25 = vmax.f32 %v7346_v57, 0.0  ;;  %v7349_v21 = vadd.f32 %v13140_v12, %v7246_v40  ;;  %v7244_v0 = vadd.f32 %v7111_v33, %v6921_v46  ;;  %v13225_v46 = vpop.f32.mrf.mxu0  ;;  %v13631_v57 = vld [vmem:[#allocation15_spill] sm:$0xff]  ;;  %v13632_v40 = vld [vmem:[#allocation65_spill] sm:$0xff] }
 0x3dd   : > { %v10098_v13 = vpop.f32.mrf.mxu1  ;;  %v6232_v47 = vadd.f32 %v13632_v40, %v13631_v57  ;;  %v6608_v59 = vadd.f32 %v13633_v24, %v6234_v63  ;;  %v6928_v18 = vadd.f32 %v13144_v4, %v6605_v51  ;;  %v13644_v63 = vld [vmem:[#allocation10_spill] sm:$0xff] }
 0x3de   : > { %7410 = vst [vmem:[#allocation3 + $0x40] sm:$0xff] %v7378_v25  ;;  %v7381_v55 = vmax.f32 %v7349_v21, 0.0  ;;  %v7347_v7 = vadd.f32 %v13140_v12, %v7244_v0  ;;  %v7249_v62 = vadd.f32 %v10098_v13, %v6926_v20  ;;  %v13634_v25 = vld [vmem:[#allocation59_spill] sm:$0xff]  ;;  %v13635_v21 = vld [vmem:[#allocation6_spill] sm:$0xff]  ;;  %v13237_v61 = vpop.f32.mrf.mxu0  ;;  %v6236_v44 = vadd.f32 %v13644_v63, %v13643_v1 }
 0x3df   : > { %v7124_v17 = vpop.f32.mrf.mxu1  ;;  %v7440_v15 = vld [vmem:[#allocation3 + $0x30] ss:$2 sm:$0xff]  ;;  %v6237_v0 = vadd.f32 %v13635_v21, %v13634_v25  ;;  %v6606_v34 = vadd.f32 %v13636_v30, %v6232_v47 }
 0x3e0   : > { %7413 = vst [vmem:[#allocation3 + $0x58] sm:$0xff] %v7381_v55  ;;  %v7379_v35 = vmax.f32 %v7347_v7, 0.0  ;;  %v7352_v26 = vadd.f32 %v13140_v12, %v7249_v62  ;;  %v7247_v42 = vadd.f32 %v7124_v17, %v6924_v6  ;;  %v7606_v29 = vpack.c.bf16 %v7440_v15, %v7436_v52  ;;  %v13637_v6 = vld [vmem:[#allocation8_spill] sm:$0xff]  ;;  %v13651_v25 = vld [vmem:[#allocation35_spill] sm:$0xff] }
 0x3e1   : > { %v10099_v23 = vpop.f32.mrf.mxu1  ;;  %v7438_v53 = vld [vmem:[#allocation3 + $0x20] ss:$2 sm:$0xff]  ;;  %v13638_v55 = vld [vmem:[#allocation16_spill] sm:$0xff]  ;;  %v6931_v62 = vadd.f32 %v13153_v50, %v6608_v59  ;;  %v6611_v3 = vadd.f32 %v13639_v27, %v6237_v0  ;;  %v6238_v17 = vadd.f32 %v13641_v19, %v13640_v39  ;;  %v6929_v52 = vadd.f32 %v13165_v36, %v6606_v34 }
 0x3e2   : > { %7411 = vst [vmem:[#allocation3 + $0x48] sm:$0xff] %v7379_v35  ;;  %v7384_v54 = vmax.f32 %v7352_v26, 0.0  ;;  %v7350_v8 = vadd.f32 %v13140_v12, %v7247_v42  ;;  %v7250_v37 = vadd.f32 %v10099_v23, %v6927_v31  ;;  %10156 = vmatprep.mubr.bf16.mxu1 %v7606_v29  ;;  %v7465_v48 = vpack.c.bf16 %v7438_v53, %v7434_v49  ;;  %v13642_v35 = vld [vmem:[#allocation33_spill] sm:$0xff]  ;;  %v13249_v42 = vpop.f32.mrf.mxu0 }
 0x3e3   : > { %v7127_v58 = vpop.f32.mrf.mxu1  ;;  %v6235_v7 = vadd.f32 %v13638_v55, %v13637_v6  ;;  %v6934_v23 = vadd.f32 %v13177_v2, %v6611_v3  ;;  %v13653_v6 = vld [vmem:[#allocation21_spill] sm:$0xff] }
 0x3e4   : > { %7416 = vst [vmem:[#allocation3 + $0x70] sm:$0xff] %v7384_v54  ;;  %v7382_v33 = vmax.f32 %v7350_v8, 0.0  ;;  %v7353_v43 = vadd.f32 %v13140_v12, %v7250_v37  ;;  %v7248_v20 = vadd.f32 %v7127_v58, %v6925_v41  ;;  %10132 = vmatprep.mubr.bf16.mxu0 %v7465_v48  ;;  %v13645_v41 = vld [vmem:[#allocation34_spill] sm:$0xff]  ;;  %v13647_v8 = vld [vmem:[#allocation19_spill] sm:$0xff]  ;;  %v13648_v48 = vld [vmem:[#allocation72_spill] sm:$0xff]  ;;  %v13261_v24 = vpop.f32.mrf.mxu0 }
 0x3e5   : > { %v10102_v9 = vpop.f32.mrf.mxu1  ;;  %v6609_v26 = vadd.f32 %v13642_v35, %v6235_v7  ;;  %v6612_v14 = vadd.f32 %v13645_v41, %v6238_v17  ;;  %v13646_v54 = vld [vmem:[#allocation18_spill] sm:$0xff]  ;;  %v6610_v57 = vadd.f32 %v13648_v48, %v6236_v44  ;;  %v13654_v7 = vld [vmem:[#allocation37_spill] sm:$0xff]  ;;  %v10403_v17 = vld [vmem:[%s13373_s5 + $0x70] sm:$0xff]  }
 0x3e6   : > { %7414 = vst [vmem:[#allocation3 + $0x60] sm:$0xff] %v7382_v33  ;;  %v7385_v13 = vmax.f32 %v7353_v43, 0.0  ;;  %v7351_v11 = vadd.f32 %v13140_v12, %v7248_v20  ;;  %v7253_v56 = vadd.f32 %v10102_v9, %v6930_v16  ;;  %v6241_v37 = vadd.f32 %v13647_v8, %v13646_v54  ;;  %v13649_v16 = vld [vmem:[#allocation23_spill] sm:$0xff]  ;;  %v13650_v33 = vld [vmem:[#allocation61_spill] sm:$0xff]  ;;  %v13657_v35 = vld [vmem:[#allocation38_spill] sm:$0xff] }
 0x3e7   : > { %v7140_v10 = vpop.f32.mrf.mxu1  ;;  %v6932_v47 = vadd.f32 %v13189_v28, %v6609_v26  ;;  %v6239_v43 = vadd.f32 %v13650_v33, %v13649_v16  ;;  %v6935_v20 = vadd.f32 %v13201_v38, %v6612_v14  ;;  %v7444_v30 = vld [vmem:[#allocation3 + $0x50] ss:$2 sm:$0xff]  ;;  %v6933_v38 = vadd.f32 %v13213_v45, %v6610_v57  ;;  %v10404_v41 = vld [vmem:[%s13373_s5 + $0xe8] sm:$0xff]  }
 0x3e8   : > { %7417 = vst [vmem:[#allocation3 + $0x78] sm:$0xff] %v7385_v13  ;;  %v7383_v32 = vmax.f32 %v7351_v11, 0.0  ;;  %v7356_v31 = vadd.f32 %v13140_v12, %v7253_v56  ;;  %v7251_v4 = vadd.f32 %v7140_v10, %v6928_v18  ;;  %v6615_v21 = vadd.f32 %v13651_v25, %v6241_v37  ;;  %v10402_v11 = vld [vmem:[%s13373_s5 + $0xf0] sm:$0xff]   ;;  %v13652_v56 = vld [vmem:[#allocation20_spill] sm:$0xff]  ;;  %v13665_v33 = vld [vmem:[#allocation74_spill] sm:$0xff] }
 0x3e9   : > { %v10103_v15 = vpop.f32.mrf.mxu1  ;;  %v6242_v55 = vadd.f32 %v13653_v6, %v13652_v56  ;;  %v7442_v27 = vld [vmem:[#allocation3 + $0x40] ss:$2 sm:$0xff]  ;;  %v13659_v14 = vld [vmem:[#allocation64_spill] sm:$0xff]  ;;  %v13662_v54 = vld [vmem:[#allocation63_spill] sm:$0xff] }
 0x3ea   : > { %7415 = vst [vmem:[#allocation3 + $0x68] sm:$0xff] %v7383_v32  ;;  %v7388_v50 = vmax.f32 %v7356_v31, 0.0  ;;  %v7354_v29 = vadd.f32 %v13140_v12, %v7251_v4  ;;  %v7254_v60 = vadd.f32 %v10103_v15, %v6931_v62  ;;  %v6613_v62 = vadd.f32 %v13654_v7, %v6239_v43  ;;  %v10066_v32 = vpop.f32.mrf.mxu0  ;;  %v13656_v15 = vld [vmem:[#allocation76_spill] sm:$0xff]  ;;  %v13670_v7 = vld [vmem:[#allocation49_spill] sm:$0xff] }
 0x3eb   : > { %v7143_v51 = vpop.f32.mrf.mxu1  ;;  %v6616_v26 = vadd.f32 %v13657_v35, %v6242_v55  ;;  %v10407_v55 = vld [vmem:[%s13373_s5 + $0x60] sm:$0xff]   ;;  %v10409_v35 = vld [vmem:[%s13373_s5 + $0x58] sm:$0xff]  }
 0x3ec   : > { %7420 = vst [vmem:[#allocation3 + $0x90] sm:$0xff] %v7388_v50  ;;  %v7386_v36 = vmax.f32 %v7354_v29, 0.0  ;;  %v7357_v49 = vadd.f32 %v13140_v12, %v7254_v60  ;;  %v7252_v53 = vadd.f32 %v7143_v51, %v6929_v52  ;;  %v13655_v52 = vld [vmem:[#allocation24_spill] sm:$0xff]  ;;  %v13658_v29 = vld [vmem:[#allocation71_spill] sm:$0xff]  ;;  %v6938_v60 = vadd.f32 %v13225_v46, %v6615_v21  ;;  %v13660_v51 = vld [vmem:[#allocation25_spill] sm:$0xff]  ;;  %v6865_v8 = vpop.f32.mrf.mxu0 }
 0x3ed   : > { %v10106_v40 = vpop.f32.mrf.mxu1  ;;  %v6240_v45 = vadd.f32 %v13656_v15, %v13655_v52  ;;  %v6936_v46 = vadd.f32 %v13237_v61, %v6613_v62  ;;  %v10406_v21 = vld [vmem:[%s13373_s5 + $0xe0] sm:$0xff]  }
 0x3ee   : > { %7418 = vst [vmem:[#allocation3 + $0x80] sm:$0xff] %v7386_v36  ;;  %v7389_v59 = vmax.f32 %v7357_v49, 0.0  ;;  %v7355_v58 = vadd.f32 %v13140_v12, %v7252_v53  ;;  %v7257_v2 = vadd.f32 %v10106_v40, %v6934_v23  ;;  %v6245_v23 = vadd.f32 %v13660_v51, %v13659_v14  ;;  %v13661_v36 = vld [vmem:[#allocation40_spill] sm:$0xff]  ;;  %v10405_v40 = vld [vmem:[%s13373_s5 + $0x68] sm:$0xff]  }
 0x3ef   : > { %v7156_v0 = vpop.f32.mrf.mxu1  ;;  %v7448_v34 = vld [vmem:[#allocation3 + $0x70] ss:$2 sm:$0xff]  ;;  %v6614_v49 = vadd.f32 %v13661_v36, %v6240_v45 }
 0x3f0   : > { %7421 = vst [vmem:[#allocation3 + $0x98] sm:$0xff] %v7389_v59  ;;  %v7387_v9 = vmax.f32 %v7355_v58, 0.0  ;;  %v7360_v28 = vadd.f32 %v13140_v12, %v7257_v2  ;;  %v7255_v18 = vadd.f32 %v7156_v0, %v6932_v47  ;;  %v7607_v13 = vpack.c.bf16 %v7448_v34, %v7444_v30  ;;  %v13663_v47 = vld [vmem:[#allocation26_spill] sm:$0xff]  ;;  %v13664_v59 = vld [vmem:[#allocation31_spill] sm:$0xff] }
 0x3f1   : > { %v10107_v10 = vpop.f32.mrf.mxu1  ;;  %v7446_v3 = vld [vmem:[#allocation3 + $0x60] ss:$2 sm:$0xff]  ;;  %v6243_v58 = vadd.f32 %v13664_v59, %v13663_v47  ;;  %v6939_v2 = vadd.f32 %v13249_v42, %v6616_v26  ;;  %v6619_v61 = vadd.f32 %v13665_v33, %v6245_v23  ;;  %v13667_v30 = vld [vmem:[#allocation79_spill] sm:$0xff] }
 0x3f2   : > { %7419 = vst [vmem:[#allocation3 + $0x88] sm:$0xff] %v7387_v9  ;;  %v7392_v31 = vmax.f32 %v7360_v28, 0.0  ;;  %v7358_v4 = vadd.f32 %v13140_v12, %v7255_v18  ;;  %v7258_v39 = vadd.f32 %v10107_v10, %v6935_v20  ;;  %10157 = vmatmul.mubr.bf16.vlgmr.msra.gmra.mxu1 %v7607_v13  ;;  %v7466_v19 = vpack.c.bf16 %v7446_v3, %v7442_v27  ;;  %v13666_v0 = vld [vmem:[#allocation66_spill] sm:$0xff]  ;;  %v13668_v28 = vld [vmem:[#allocation41_spill] sm:$0xff]  ;;  %v10067_v13 = vpop.f32.mrf.mxu0 }
 0x3f3   : > { %v7159_v50 = vpop.f32.mrf.mxu1  ;;  %10189 = vmatpush3.bf16.msra.mxu1 %v13658_v29  ;;  %v6246_v34 = vadd.f32 %v13667_v30, %v13666_v0  ;;  %v6937_v9 = vadd.f32 %v13261_v24, %v6614_v49  ;;  %v6617_v18 = vadd.f32 %v13668_v28, %v6243_v58  ;;  %v6942_v27 = vadd.f32 %v10066_v32, %v6619_v61  ;;  %v10412_v47 = vld [vmem:[%s13373_s5 + $0xc8] sm:$0xff]   ;;  %v10414_v33 = vld [vmem:[%s13373_s5 + $0xc0] sm:$0xff]   ;;  %v7771_v61 = vld [vmem:[#allocation3 + $0x31] ss:$2 sm:$0xff] }
 0x3f4   : > { %7424 = vst [vmem:[#allocation3 + $0xb0] sm:$0xff] %v7392_v31  ;;  %v7390_v1 = vmax.f32 %v7358_v4, 0.0  ;;  %v7361_v63 = vadd.f32 %v13140_v12, %v7258_v39  ;;  %v7256_v44 = vadd.f32 %v7159_v50, %v6933_v38  ;;  %10133 = vmatmul.mubr.bf16.vlgmr.msra.gmra.mxu0 %v7466_v19  ;;  %10190 = vmatprep.subr.bf16.mxu1 %v10402_v11  ;;  %v13669_v38 = vld [vmem:[#allocation22_spill] sm:$0xff]  ;;  %v10408_v39 = vld [vmem:[%s13373_s5 + $0xd8] sm:$0xff]   ;;  %v6868_v15 = vpop.f32.mrf.mxu0 }
 0x3f5   : > { %v10110_v53 = vpop.f32.mrf.mxu1  ;;  %10165 = vmatpush3.bf16.msra.mxu0 %v13662_v54  ;;  %v6244_v62 = vadd.f32 %v13670_v7, %v13669_v38  ;;  %v6620_v24 = vadd.f32 %v13127_v5, %v6246_v34  ;;  %v6940_v52 = vadd.f32 %v6865_v8, %v6617_v18  ;;  %v10411_v8 = vld [vmem:[%s13373_s5 + $0x50] sm:$0xff]   ;;  %v7769_v0 = vld [vmem:[#allocation3 + $0x21] ss:$2 sm:$0xff] }
 0x3f6   : > { %7422 = vst [vmem:[#allocation3 + $0xa0] sm:$0xff] %v7390_v1  ;;  %v7393_v37 = vmax.f32 %v7361_v63, 0.0  ;;  %v7359_v48 = vadd.f32 %v13140_v12, %v7256_v44  ;;  %v7261_v57 = vadd.f32 %v10110_v53, %v6938_v60  ;;  %10166 = vmatprep.subr.bf16.mxu0 %v10403_v17  ;;  %v7765_v28 = vld [vmem:[#allocation3 + $0x1] ss:$2 sm:$0xff] }
 0x3f7   : > { %v7172_v16 = vpop.f32.mrf.mxu1  ;;  %10191 = vmatpush3.bf16.msra.mxu1 %v10402_v11  ;;  %v6618_v19 = vadd.f32 %v13135_v22, %v6244_v62  ;;  %v6943_v26 = vadd.f32 %v10067_v13, %v6620_v24  ;;  %v7452_v29 = vld [vmem:[#allocation3 + $0x90] ss:$2 sm:$0xff]  ;;  %v7796_v18 = vpack.c.bf16 %v7769_v0, %v7765_v28  ;;  %v7779_v13 = vld [vmem:[#allocation3 + $0x71] ss:$2 sm:$0xff]  ;;  %v7773_v24 = vld [vmem:[#allocation3 + $0x41] ss:$2 sm:$0xff] }
 0x3f8   : > { %7425 = vst [vmem:[#allocation3 + $0xb8] sm:$0xff] %v7393_v37  ;;  %v7391_v43 = vmax.f32 %v7359_v48, 0.0  ;;  %v7364_v20 = vadd.f32 %v13140_v12, %v7261_v57  ;;  %v7259_v25 = vadd.f32 %v7172_v16, %v6936_v46  ;;  %10192 = vmatprep.subr.bf16.mxu1 %v10404_v41  ;;  %v7783_v38 = vld [vmem:[#allocation3 + $0x91] ss:$2 sm:$0xff] }
 0x3f9   : > { %v10111_v42 = vpop.f32.mrf.mxu1  ;;  %10167 = vmatpush3.bf16.msra.mxu0 %v10403_v17  ;;  %v6941_v14 = vadd.f32 %v6868_v15, %v6618_v19  ;;  %v7450_v23 = vld [vmem:[#allocation3 + $0x80] ss:$2 sm:$0xff] }
 0x3fa   : > { %7423 = vst [vmem:[#allocation3 + $0xa8] sm:$0xff] %v7391_v43  ;;  %v7396_v11 = vmax.f32 %v7364_v20, 0.0  ;;  %v7362_v56 = vadd.f32 %v13140_v12, %v7259_v25  ;;  %v7262_v6 = vadd.f32 %v10111_v42, %v6939_v2  ;;  %10168 = vmatprep.subr.bf16.mxu0 %v10405_v40  ;;  %v10413_v2 = vld [vmem:[%s13373_s5 + $0x48] sm:$0xff]  }
 0x3fb   : > { %v7175_v10 = vpop.f32.mrf.mxu1  ;;  %10193 = vmatpush3.bf16.msra.mxu1 %v10404_v41  ;;  %v10410_v41 = vld [vmem:[%s13373_s5 + $0xd0] sm:$0xff]  }
 0x3fc   : > { %7428 = vst [vmem:[#allocation3 + $0xd0] sm:$0xff] %v7396_v11  ;;  %v7394_v3 = vmax.f32 %v7362_v56, 0.0  ;;  %v7365_v31 = vadd.f32 %v13140_v12, %v7262_v6  ;;  %v7260_v4 = vadd.f32 %v7175_v10, %v6937_v9  ;;  %10194 = vmatprep.subr.bf16.mxu1 %v10406_v21  ;;  %v7775_v56 = vld [vmem:[#allocation3 + $0x51] ss:$2 sm:$0xff]  ;;  %v7777_v6 = vld [vmem:[#allocation3 + $0x61] ss:$2 sm:$0xff] }
 0x3fd   : > { %v10114_v17 = vpop.f32.mrf.mxu1  ;;  %10169 = vmatpush3.bf16.msra.mxu0 %v10405_v40  ;;  %v7797_v10 = vpack.c.bf16 %v7777_v6, %v7773_v24 }
 0x3fe   : > { %7426 = vst [vmem:[#allocation3 + $0xc0] sm:$0xff] %v7394_v3  ;;  %v7397_v5 = vmax.f32 %v7365_v31, 0.0  ;;  %v7363_v32 = vadd.f32 %v13140_v12, %v7260_v4  ;;  %v7265_v45 = vadd.f32 %v10114_v17, %v6942_v27  ;;  %10170 = vmatprep.subr.bf16.mxu0 %v10407_v55  ;;  %v7781_v27 = vld [vmem:[#allocation3 + $0x81] ss:$2 sm:$0xff] }
 0x3ff   : > { %v7188_v50 = vpop.f32.mrf.mxu1  ;;  %v7456_v60 = vld [vmem:[#allocation3 + $0xb0] ss:$2 sm:$0xff]  ;;  %10195 = vmatpush3.bf16.msra.mxu1 %v10406_v21  ;;  %v7767_v21 = vld [vmem:[#allocation3 + $0x11] ss:$2 sm:$0xff] }
 0x400   : > { %7429 = vst [vmem:[#allocation3 + $0xd8] sm:$0xff] %v7397_v5  ;;  %v7395_v22 = vmax.f32 %v7363_v32, 0.0  ;;  %v7368_v1 = vadd.f32 %v13140_v12, %v7265_v45  ;;  %v7263_v63 = vadd.f32 %v7188_v50, %v6940_v52  ;;  %v7608_v44 = vpack.c.bf16 %v7456_v60, %v7452_v29  ;;  %10196 = vmatprep.subr.bf16.mxu1 %v10408_v39  ;;  %v7787_v11 = vld [vmem:[#allocation3 + $0xb1] ss:$2 sm:$0xff] }
 0x401   : > { %v10115_v51 = vpop.f32.mrf.mxu1  ;;  %v7454_v36 = vld [vmem:[#allocation3 + $0xa0] ss:$2 sm:$0xff]  ;;  %10171 = vmatpush3.bf16.msra.mxu0 %v10407_v55  ;;  %v7954_v30 = vpack.c.bf16 %v7771_v61, %v7767_v21  ;;  %v7955_v55 = vpack.c.bf16 %v7779_v13, %v7775_v56  ;;  %v7785_v7 = vld [vmem:[#allocation3 + $0xa1] ss:$2 sm:$0xff]  ;;  %v7956_v62 = vpack.c.bf16 %v7787_v11, %v7783_v38 }
 0x402   : > { %7427 = vst [vmem:[#allocation3 + $0xc8] sm:$0xff] %v7395_v22  ;;  %v7400_v49 = vmax.f32 %v7368_v1, 0.0  ;;  %v7366_v53 = vadd.f32 %v13140_v12, %v7263_v63  ;;  %v7266_v54 = vadd.f32 %v10115_v51, %v6943_v26  ;;  %10160 = vmatprep.mubr.bf16.mxu1 %v7608_v44  ;;  %v7467_v46 = vpack.c.bf16 %v7454_v36, %v7450_v23 }
 0x403   : > { %10172 = vmatprep.subr.bf16.mxu0 %v10409_v35  ;;  %v7191_v37 = vpop.f32.mrf.mxu1  ;;  %10197 = vmatpush3.bf16.msra.mxu1 %v10408_v39  ;;  %v7798_v3 = vpack.c.bf16 %v7785_v7, %v7781_v27 }
 0x404   : > { %7432 = vst [vmem:[#allocation3 + $0xf0] sm:$0xff] %v7400_v49  ;;  %v7398_v48 = vmax.f32 %v7366_v53, 0.0  ;;  %v7369_v57 = vadd.f32 %v13140_v12, %v7266_v54  ;;  %v7264_v40 = vadd.f32 %v7191_v37, %v6941_v14  ;;  %10136 = vmatprep.mubr.bf16.mxu0 %v7467_v46  ;;  %10198 = vmatprep.subr.bf16.mxu1 %v10410_v41 }
 0x405   : > { %10173 = vmatpush3.bf16.msra.mxu0 %v10409_v35 }
 0x406   : > { %7430 = vst [vmem:[#allocation3 + $0xe0] sm:$0xff] %v7398_v48  ;;  %v7401_v59 = vmax.f32 %v7369_v57, 0.0  ;;  %v7367_v58 = vadd.f32 %v13140_v12, %v7264_v40  ;;  %10174 = vmatprep.subr.bf16.mxu0 %v10411_v8  ;;  %v10415_v12 = vld [vmem:[%s13373_s5 + $0x40] sm:$0xff]  }
 0x407   : > { %10199 = vmatpush3.bf16.msra.mxu1 %v10410_v41  ;;  %v7460_v43 = vld [vmem:[#allocation3 + $0xd0] ss:$2 sm:$0xff]  ;;  %v7791_v4 = vld [vmem:[#allocation3 + $0xd1] ss:$2 sm:$0xff] }
 0x408   : > { %7433 = vst [vmem:[#allocation3 + $0xf8] sm:$0xff] %v7401_v59  ;;  %v7399_v16 = vmax.f32 %v7367_v58, 0.0  ;;  %10200 = vmatprep.subr.bf16.mxu1 %v10412_v47 }
 0x409   : > { %10175 = vmatpush3.bf16.msra.mxu0 %v10411_v8  ;;  %v7458_v34 = vld [vmem:[#allocation3 + $0xc0] ss:$2 sm:$0xff]  ;;  %v7789_v17 = vld [vmem:[#allocation3 + $0xc1] ss:$2 sm:$0xff] }
 0x40a   : > { %7431 = vst [vmem:[#allocation3 + $0xe8] sm:$0xff] %v7399_v16  ;;  %10176 = vmatprep.subr.bf16.mxu0 %v10413_v2  ;;  %v8768_v8 = vld [vmem:[%s13374_s6] ss:$0 sm:$0xff] }
 0x40b   : > { %10201 = vmatpush3.bf16.msra.mxu1 %v10412_v47 }
 0x40c   : > { %10202 = vmatprep.subr.bf16.mxu1 %v10414_v33 }
 0x40d   : > { %10177 = vmatpush3.bf16.msra.mxu0 %v10413_v2 }
 0x40e   : > { %10178 = vmatprep.subr.bf16.mxu0 %v10415_v12 }
 0x40f   : > { %v7464_v20 = vld [vmem:[#allocation3 + $0xf0] ss:$2 sm:$0xff]  ;;  %10203 = vmatpush3.bf16.msra.mxu1 %v10414_v33  ;;  %v7795_v31 = vld [vmem:[#allocation3 + $0xf1] ss:$2 sm:$0xff] }
 0x410   : > { %v7609_v25 = vpack.c.bf16 %v7464_v20, %v7460_v43  ;;  %v7957_v19 = vpack.c.bf16 %v7795_v31, %v7791_v4 }
 0x411   : > { %v7462_v9 = vld [vmem:[#allocation3 + $0xe0] ss:$2 sm:$0xff]  ;;  %10179 = vmatpush3.bf16.msra.mxu0 %v10415_v12  ;;  %v7793_v39 = vld [vmem:[#allocation3 + $0xe1] ss:$2 sm:$0xff] }
 0x412   : > { %10161 = vmatmul.mubr.bf16.gmra.mxu1 %v7609_v25  ;;  %v7468_v42 = vpack.c.bf16 %v7462_v9, %v7458_v34  ;;  %v7799_v52 = vpack.c.bf16 %v7793_v39, %v7789_v17 }
 0x413   : > { %10204 = vmatprep.mubr.bf16.mxu1 %v7954_v30 }
 0x414   : > { %10137 = vmatmul.mubr.bf16.gmra.mxu0 %v7468_v42 }
 0x415   : > { %10180 = vmatprep.mubr.bf16.mxu0 %v7796_v18 }
 0x41a   : > { %10205 = vmatmul.mubr.bf16.vlgmr.msra.gmra.mxu1 %v7955_v55 }
 0x41b   : > { %10208 = vmatprep.mubr.bf16.mxu1 %v7956_v62 }
 0x41c   : > { %10181 = vmatmul.mubr.bf16.vlgmr.msra.gmra.mxu0 %v7797_v10 }
 0x41d   : > { %10184 = vmatprep.mubr.bf16.mxu0 %v7798_v3 }
 0x422   : > { %10209 = vmatmul.mubr.bf16.gmra.mxu1 %v7957_v19 }
 0x424   : > { %10185 = vmatmul.mubr.bf16.gmra.mxu0 %v7799_v52 }
 0x4b2   : > { %v10158_v15 = vpop.f32.mrf.mxu1 }
 0x4b4   : > { %v10134_v5 = vpop.f32.mrf.mxu0  ;;  %v7709_v32 = vpop.f32.mrf.mxu1 }
 0x4b5   : > { %v7750_v36 = vadd.f32 %v10158_v15, %v10134_v5 }
 0x4b6   : > { %v7567_v45 = vpop.f32.mrf.mxu0  ;;  %v10159_v35 = vpop.f32.mrf.mxu1 }
 0x4b7   : > { %v7748_v54 = vadd.f32 %v7709_v32, %v7567_v45 }
 0x4b8   : > { %v10135_v26 = vpop.f32.mrf.mxu0  ;;  %v7712_v50 = vpop.f32.mrf.mxu1 }
 0x4b9   : > { %v7751_v57 = vadd.f32 %v10159_v35, %v10135_v26 }
 0x4ba   : > { %v7570_v29 = vpop.f32.mrf.mxu0 }
 0x4bb   : > { %v7749_v2 = vadd.f32 %v7712_v50, %v7570_v29 }
 0x4d2   : > { %v10162_v60 = vpop.f32.mrf.mxu1 }
 0x4d4   : > { %v10138_v22 = vpop.f32.mrf.mxu0  ;;  %v7725_v1 = vpop.f32.mrf.mxu1 }
 0x4d5   : > { %v7754_v61 = vadd.f32 %v10162_v60, %v10138_v22 }
 0x4d6   : > { %v7583_v63 = vpop.f32.mrf.mxu0  ;;  %v10163_v44 = vpop.f32.mrf.mxu1 }
 0x4d7   : > { %v7752_v34 = vadd.f32 %v7725_v1, %v7583_v63 }
 0x4d8   : > { %v10139_v41 = vpop.f32.mrf.mxu0  ;;  %v7728_v14 = vpop.f32.mrf.mxu1 }
 0x4d9   : > { %v7755_v56 = vadd.f32 %v10163_v44, %v10139_v41 }
 0x4da   : > { %v7586_v51 = vpop.f32.mrf.mxu0  ;;  %v10206_v23 = vpop.f32.mrf.mxu1 }
 0x4db   : > { %v7753_v24 = vadd.f32 %v7728_v14, %v7586_v51 }
 0x4dc   : > { %v10182_v49 = vpop.f32.mrf.mxu0  ;;  %v8057_v53 = vpop.f32.mrf.mxu1 }
 0x4dd   : > { %v7940_v46 = vadd.f32 %v10182_v49, %v7750_v36 }
 0x4de   : > { %v7899_v37 = vpop.f32.mrf.mxu0  ;;  %v10207_v48 = vpop.f32.mrf.mxu1 }
 0x4df   : > { %v8098_v40 = vadd.f32 %v10206_v23, %v7940_v46  ;;  %v7938_v47 = vadd.f32 %v7899_v37, %v7748_v54 }
 0x4e0   : > { %v10183_v59 = vpop.f32.mrf.mxu0  ;;  %v8060_v58 = vpop.f32.mrf.mxu1 }
 0x4e1   : > { %v8129_v16 = vadd.f32 %v8768_v8, %v8098_v40  ;;  %v8096_v33 = vadd.f32 %v8057_v53, %v7938_v47  ;;  %v7941_v12 = vadd.f32 %v10183_v59, %v7751_v57 }
 0x4e2   : > { %v7902_v43 = vpop.f32.mrf.mxu0  ;;  %v10210_v20 = vpop.f32.mrf.mxu1 }
 0x4e3   : > { %v8137_v25 = vmax.f32 %v8129_v16, 0.0  ;;  %v8127_v21 = vadd.f32 %v8768_v8, %v8096_v33  ;;  %v8099_v0 = vadd.f32 %v10207_v48, %v7941_v12  ;;  %v7939_v30 = vadd.f32 %v7902_v43, %v7749_v2 }
 0x4e4   : > { %v10186_v9 = vpop.f32.mrf.mxu0  ;;  %v8073_v42 = vpop.f32.mrf.mxu1 }
 0x4e5   : > { %8145 = vst [vmem:[%s13355_s16 + $0x10] sm:$0xff] %v8137_v25  ;;  %v8135_v28 = vmax.f32 %v8127_v21, 0.0  ;;  %v8130_v18 = vadd.f32 %v8768_v8, %v8099_v0  ;;  %v8097_v13 = vadd.f32 %v8060_v58, %v7939_v30  ;;  %v7944_v11 = vadd.f32 %v10186_v9, %v7754_v61 }
 0x4e6   : > { %v7915_v6 = vpop.f32.mrf.mxu0  ;;  %v10211_v10 = vpop.f32.mrf.mxu1 }
 0x4e7   : > { %8143 = vst [vmem:[%s13355_s16] sm:$0xff] %v8135_v28  ;;  %v8138_v55 = vmax.f32 %v8130_v18, 0.0  ;;  %v8128_v38 = vadd.f32 %v8768_v8, %v8097_v13  ;;  %v8102_v7 = vadd.f32 %v10210_v20, %v7944_v11  ;;  %v7942_v62 = vadd.f32 %v7915_v6, %v7752_v34 }
 0x4e8   : > { %v10187_v27 = vpop.f32.mrf.mxu0  ;;  %v8076_v32 = vpop.f32.mrf.mxu1 }
 0x4e9   : > { %8146 = vst [vmem:[%s13355_s16 + $0x18] sm:$0xff] %v8138_v55  ;;  %v8136_v3 = vmax.f32 %v8128_v38, 0.0  ;;  %v8133_v31 = vadd.f32 %v8768_v8, %v8102_v7  ;;  %v8100_v4 = vadd.f32 %v8073_v42, %v7942_v62  ;;  %v7945_v39 = vadd.f32 %v10187_v27, %v7755_v56 }
 0x4ea   : > { %v7918_v19 = vpop.f32.mrf.mxu0 }
 0x4eb   : > { %8144 = vst [vmem:[%s13355_s16 + $0x8] sm:$0xff] %v8136_v3  ;;  %v8141_v17 = vmax.f32 %v8133_v31, 0.0  ;;  %v8131_v52 = vadd.f32 %v8768_v8, %v8100_v4  ;;  %v8103_v15 = vadd.f32 %v10211_v10, %v7945_v39  ;;  %v7943_v5 = vadd.f32 %v7918_v19, %v7753_v24 }
 0x4ed   : > { %8149 = vst [vmem:[%s13355_s16 + $0x30] sm:$0xff] %v8141_v17  ;;  %v8139_v45 = vmax.f32 %v8131_v52, 0.0  ;;  %v8134_v35 = vadd.f32 %v8768_v8, %v8103_v15  ;;  %v8101_v26 = vadd.f32 %v8076_v32, %v7943_v5 }
 0x4ef   : > { %8147 = vst [vmem:[%s13355_s16 + $0x20] sm:$0xff] %v8139_v45  ;;  %v8142_v50 = vmax.f32 %v8134_v35, 0.0  ;;  %v8132_v29 = vadd.f32 %v8768_v8, %v8101_v26 }
 0x4f1   : > { %8150 = vst [vmem:[%s13355_s16 + $0x38] sm:$0xff] %v8142_v50  ;;  %v8140_v60 = vmax.f32 %v8132_v29, 0.0 }
 0x4f3   : > { %8148 = vst [vmem:[%s13355_s16 + $0x28] sm:$0xff] %v8140_v60 }
 0x4f4 PF: > { %s17_s24 = sadd.s32 1, %s10423_s24  }
 0x4f5   : > { %p14_p4 = scmp.ge.s32.totalorder %s17_s24, 4  }
 0x4f7   :  { %16 = sbr.rel (!%p14_p4) target bundleno = 1 (0x1), region = 130 }

</bundles_post_ra>
